<compile_context>
chip_gen: v5e
topology: v5e:2x2
jax: 0.10.0
libtpu: 0.0.40
codegen_flags: <defaults>
</compile_context>

<pallas_src>
import functools

import jax
import jax.numpy as jnp
from jax.experimental import pallas as pl
from jax.experimental.pallas import tpu as pltpu


def _round_up(x, m):
    return ((x + m - 1) // m) * m


# ----------------------------------------------------------------------------
# Pallas matmul kernel: one (tm, Kp) x (Kp, Np) dot per grid step (K collapsed)
# ----------------------------------------------------------------------------
def _mm_kernel(a_ref, b_ref, o_ref):
    o_ref[...] = jnp.dot(
        a_ref[...], b_ref[...], preferred_element_type=jnp.float32
    ).astype(o_ref.dtype)


def pallas_matmul(a, b, *, tm_max=1024):
    """(M,K) @ (K,N) -> f32 (M,N) with bf16 operands and f32 MXU accumulation.

    K is small for this model (Cin / num_features <= 32) so it is kept as a
    single block; the only grid axis is M and it is marked "parallel".
    """
    M, K = a.shape
    K2, N = b.shape
    assert K == K2

    Kp = _round_up(K, 8)        # sublane-aligned contraction dim
    Np = _round_up(N, 128)      # lane-dense output columns (unmasked stores)
    Mp8 = _round_up(M, 8)
    if Mp8 <= tm_max:
        tm, Mp = Mp8, Mp8       # single-block small-M path (e.g. debedding M=2)
    else:
        tm = tm_max
        Mp = _round_up(M, tm)

    a_p = a.astype(jnp.bfloat16)
    if (Mp, Kp) != (M, K):
        a_p = jnp.pad(a_p, ((0, Mp - M), (0, Kp - K)))
    b_p = b.astype(jnp.bfloat16)
    if (Kp, Np) != (K, N):
        b_p = jnp.pad(b_p, ((0, Kp - K), (0, Np - N)))

    out = pl.pallas_call(
        _mm_kernel,
        out_shape=jax.ShapeDtypeStruct((Mp, Np), jnp.float32),
        grid_spec=pltpu.PrefetchScalarGridSpec(
            num_scalar_prefetch=0,
            grid=(Mp // tm,),
            in_specs=[
                pl.BlockSpec((tm, Kp), lambda i: (i, 0)),
                pl.BlockSpec((Kp, Np), lambda i: (0, 0)),   # resident weights
            ],
            out_specs=pl.BlockSpec((tm, Np), lambda i: (i, 0)),
        ),
        compiler_params=pltpu.CompilerParams(
            dimension_semantics=("parallel",),
            vmem_limit_bytes=32 * 1024 * 1024,   # safe on v5e/v6e/v7x
        ),
    )(a_p, b_p)
    return out[:M, :N]


# ----------------------------------------------------------------------------
# ConvTranspose3d == X @ W(Cin, Cout*K^3) (Pallas) + col2im overlap-add (glue)
# ----------------------------------------------------------------------------
def _tap_range(k, pad, stride, d_in, d_out):
    """Valid input-index range [i_lo, i_hi] and first output index for tap k.

    Output index o = stride*i + k - pad must satisfy 0 <= o <= d_out-1.
    """
    i_lo = max(0, -((k - pad) // stride))                 # ceil((pad-k)/stride)
    i_hi = min(d_in - 1, (d_out - 1 + pad - k) // stride)
    o0 = stride * i_lo + k - pad
    return i_lo, i_hi, o0


def conv_transpose3d(x, W, b, *, stride, pad, out_pad, act=None, neg_slope=0.01):
    """x: (B,D,H,W,Cin) NDHWC.  W: (Cin,Cout,K,K,K) (PyTorch layout).  b: (Cout,)."""
    Bn, D, H, Wsp, Cin = x.shape
    Cout = W.shape[1]
    K = W.shape[2]
    Do = (D - 1) * stride - 2 * pad + K + out_pad
    Ho = (H - 1) * stride - 2 * pad + K + out_pad
    Wo = (Wsp - 1) * stride - 2 * pad + K + out_pad

    # Scatter formulation: out[o] += x[i] * W[ci, co, k] with o = i*s - pad + k.
    # No spatial flip, no dilation, no im2col: one lane-dense MXU matmul.
    Xm = x.reshape(Bn * D * H * Wsp, Cin)
    Wmat = W.reshape(Cin, Cout * K * K * K)
    y = pallas_matmul(Xm, Wmat)                             # (M, Cout*K^3) f32
    y = y.reshape(Bn, D, H, Wsp, Cout, K, K, K)

    out = jnp.zeros((Bn, Do, Ho, Wo, Cout), jnp.float32)
    for kd in range(K):
        d_lo, d_hi, od0 = _tap_range(kd, pad, stride, D, Do)
        if d_lo > d_hi:
            continue
        for kh in range(K):
            h_lo, h_hi, oh0 = _tap_range(kh, pad, stride, H, Ho)
            if h_lo > h_hi:
                continue
            for kw in range(K):
                w_lo, w_hi, ow0 = _tap_range(kw, pad, stride, Wsp, Wo)
                if w_lo > w_hi:
                    continue
                contrib = y[:, d_lo:d_hi + 1, h_lo:h_hi + 1, w_lo:w_hi + 1,
                            :, kd, kh, kw]
                out = out.at[
                    :,
                    od0: od0 + stride * (d_hi - d_lo) + 1: stride,
                    oh0: oh0 + stride * (h_hi - h_lo) + 1: stride,
                    ow0: ow0 + stride * (w_hi - w_lo) + 1: stride,
                    :,
                ].add(contrib)

    out = out + b.reshape(1, 1, 1, 1, Cout)
    if act == "leaky":
        out = jnp.where(out >= 0.0, out, neg_slope * out)
    elif act == "sigmoid":
        out = jax.nn.sigmoid(out)
    return out


def batch_norm3d(x, eps=1e-5):
    """Training-mode BatchNorm3d with weight=1, bias=0. x: (B,D,H,W,C)."""
    mean = jnp.mean(x, axis=(0, 1, 2, 3), keepdims=True)
    var = jnp.mean((x - mean) ** 2, axis=(0, 1, 2, 3), keepdims=True)
    return (x - mean) / jnp.sqrt(var + eps)


# ----------------------------------------------------------------------------
# ConvolutionalDecoder (num_layers == 3)
# ----------------------------------------------------------------------------
def init_params(key, *, input_shape, filters, num_features):
    d0 = input_shape[0]
    d_small = (d0 // 2 // 2 - 1) // 2
    lin_features_len = d_small ** 3 * filters[2]

    ks = jax.random.split(key, 8)

    def u(k, shape, fan_in):
        bound = 1.0 / jnp.sqrt(fan_in)
        return jax.random.uniform(k, shape, jnp.float32, -bound, bound)

    params = {
        # Linear(num_features -> lin_features_len), stored as (in, out)
        "lin_w": u(ks[0], (num_features, lin_features_len), num_features),
        "lin_b": u(ks[1], (lin_features_len,), num_features),
        # deconv3: ConvTranspose3d(f2, f1, k=3)  weight (Cin, Cout, 3,3,3)
        "w3": u(ks[2], (filters[2], filters[1], 3, 3, 3), filters[2] * 27),
        "b3": u(ks[3], (filters[1],), filters[2] * 27),
        # deconv2: ConvTranspose3d(f1, f0, k=5, pad=2)
        "w2": u(ks[4], (filters[1], filters[0], 5, 5, 5), filters[1] * 125),
        "b2": u(ks[5], (filters[0],), filters[1] * 125),
        # deconv1: ConvTranspose3d(f0, C_img, k=5, pad=2)
        "w1": u(ks[6], (filters[0], input_shape[3], 5, 5, 5), filters[0] * 125),
        "b1": u(ks[7], (input_shape[3],), filters[0] * 125),
    }
    return params, d_small


def decoder_forward(x, params, *, input_shape, filters, d_small, neg_slope=0.01):
    """x: (B, num_features).  Returns NCDHW like the PyTorch module."""
    B = x.shape[0]
    d0 = input_shape[0]
    out_pad3 = 1 if (d0 // 2 // 2) % 2 == 0 else 0
    out_pad2 = 1 if (d0 // 2) % 2 == 0 else 0
    out_pad1 = 1 if d0 % 2 == 0 else 0

    # debedding Linear -> small-tile path (tm=8) of the same Pallas kernel
    x = pallas_matmul(x, params["lin_w"]) + params["lin_b"]

    # PyTorch view -> (B, C, d, d, d), then switch to channels-last NDHWC
    x = x.reshape(B, filters[2], d_small, d_small, d_small)
    x = jnp.transpose(x, (0, 2, 3, 4, 1))

    # deconv3 (k=3, s=2, p=0) + LeakyReLU + bn3
    x = conv_transpose3d(x, params["w3"], params["b3"], stride=2, pad=0,
                         out_pad=out_pad3, act="leaky", neg_slope=neg_slope)
    x = batch_norm3d(x)

    # deconv2 (k=5, s=2, p=2) + LeakyReLU + bn2
    x = conv_transpose3d(x, params["w2"], params["b2"], stride=2, pad=2,
                         out_pad=out_pad2, act="leaky", neg_slope=neg_slope)
    x = batch_norm3d(x)

    # deconv1 (k=5, s=2, p=2) + Sigmoid
    x = conv_transpose3d(x, params["w1"], params["b1"], stride=2, pad=2,
                         out_pad=out_pad1, act="sigmoid")

    # back to PyTorch NCDHW
    return jnp.transpose(x, (0, 4, 1, 2, 3))


if __name__ == "__main__":
    # Small configuration consistent with the module (num_layers=3 branch).
    B = 2
    input_shape = (32, 32, 32, 1)        # cubic voxel grid, 1 channel
    filters = (4, 8, 16, 32, 64)         # small filter counts
    num_features = 32

    key = jax.random.PRNGKey(0)
    k_params, k_x = jax.random.split(key)
    params, d_small = init_params(
        k_params, input_shape=input_shape, filters=filters,
        num_features=num_features)

    x = jax.random.normal(k_x, (B, num_features), jnp.float32)

    fwd = jax.jit(functools.partial(
        decoder_forward, input_shape=input_shape, filters=filters,
        d_small=d_small))

    y = fwd(x, params)
    jax.block_until_ready(y)

    expected = (B, input_shape[3], input_shape[0], input_shape[1], input_shape[2])
    assert y.shape == expected, (y.shape, expected)
    assert bool(jnp.all((y >= 0.0) & (y <= 1.0))), "sigmoid output out of range"
    print("KERNEL_OK")
</pallas_src>

<mosaic_0001>
module attributes {stable_mosaic.version = 11 : i64} {
  func.func @_mm_kernel(%arg0: i32, %arg1: memref<8x32xbf16, #tpu.memory_space<vmem>>, %arg2: memref<32x512xbf16, #tpu.memory_space<vmem>>, %arg3: memref<8x512xf32, #tpu.memory_space<vmem>>) attributes {dimension_semantics = [#tpu.dimension_semantics<parallel>], iteration_bounds = array<i64: 1>, scalar_prefetch = 0 : i64, scratch_operands = 0 : i64, tpu.core_type = #tpu.core_type<tc>, window_params = [{transform_indices = @transform_0, window_bounds = array<i64: 8, 32>}, {pipeline_mode = #tpu.pipeline_mode<synchronous>, transform_indices = @transform_1, window_bounds = array<i64: 32, 512>}, {transform_indices = @transform_2, window_bounds = array<i64: 8, 512>}]} {
    %c0 = arith.constant 0 : index
    %c0_0 = arith.constant 0 : index
    %0 = vector.load %arg1[%c0, %c0_0] : memref<8x32xbf16, #tpu.memory_space<vmem>>, vector<8x32xbf16>
    %c0_1 = arith.constant 0 : index
    %c0_2 = arith.constant 0 : index
    %1 = vector.load %arg2[%c0_1, %c0_2] : memref<32x512xbf16, #tpu.memory_space<vmem>>, vector<32x512xbf16>
    %cst = arith.constant dense<0.000000e+00> : vector<8x512xf32>
    %2 = tpu.matmul %0, %1, %cst {dimension_numbers = #tpu.dot_dimension_numbers<[1], [0], [0], [1], [0, 0, 1, 1], [], []>} : vector<8x32xbf16>, vector<32x512xbf16>, vector<8x512xf32> -> vector<8x512xf32>
    %c0_3 = arith.constant 0 : index
    %c0_4 = arith.constant 0 : index
    %3 = vector.load %arg3[%c0_3, %c0_4] : memref<8x512xf32, #tpu.memory_space<vmem>>, vector<8x512xf32>
    tpu.vector_store %arg3[%c0_3, %c0_4], %2 {strides = array<i32>} : memref<8x512xf32, #tpu.memory_space<vmem>>, vector<8x512xf32>,
    return
  }
  func.func @transform_0(%arg0: i32) -> (i32, i32) {
    %c0_i32 = arith.constant 0 : i32
    %c0_i32_0 = arith.constant 0 : i32
    return %arg0, %c0_i32 : i32, i32
  }
  func.func @transform_1(%arg0: i32) -> (i32, i32) {
    %c0_i32 = arith.constant 0 : i32
    %c0_i32_0 = arith.constant 0 : i32
    %c0_i32_1 = arith.constant 0 : i32
    return %c0_i32, %c0_i32_0 : i32, i32
  }
  func.func @transform_2(%arg0: i32) -> (i32, i32) {
    %c0_i32 = arith.constant 0 : i32
    %c0_i32_0 = arith.constant 0 : i32
    return %arg0, %c0_i32 : i32, i32
  }
}

module attributes {stable_mosaic.version = 11 : i64} {
  func.func @_mm_kernel(%arg0: i32, %arg1: memref<56x16xbf16, #tpu.memory_space<vmem>>, %arg2: memref<16x256xbf16, #tpu.memory_space<vmem>>, %arg3: memref<56x256xf32, #tpu.memory_space<vmem>>) attributes {dimension_semantics = [#tpu.dimension_semantics<parallel>], iteration_bounds = array<i64: 1>, scalar_prefetch = 0 : i64, scratch_operands = 0 : i64, tpu.core_type = #tpu.core_type<tc>, window_params = [{transform_indices = @transform_0, window_bounds = array<i64: 56, 16>}, {pipeline_mode = #tpu.pipeline_mode<synchronous>, transform_indices = @transform_1, window_bounds = array<i64: 16, 256>}, {transform_indices = @transform_2, window_bounds = array<i64: 56, 256>}]} {
    %c0 = arith.constant 0 : index
    %c0_0 = arith.constant 0 : index
    %0 = vector.load %arg1[%c0, %c0_0] : memref<56x16xbf16, #tpu.memory_space<vmem>>, vector<56x16xbf16>
    %c0_1 = arith.constant 0 : index
    %c0_2 = arith.constant 0 : index
    %1 = vector.load %arg2[%c0_1, %c0_2] : memref<16x256xbf16, #tpu.memory_space<vmem>>, vector<16x256xbf16>
    %cst = arith.constant dense<0.000000e+00> : vector<56x256xf32>
    %2 = tpu.matmul %0, %1, %cst {dimension_numbers = #tpu.dot_dimension_numbers<[1], [0], [0], [1], [0, 0, 1, 1], [], []>} : vector<56x16xbf16>, vector<16x256xbf16>, vector<56x256xf32> -> vector<56x256xf32>
    %c0_3 = arith.constant 0 : index
    %c0_4 = arith.constant 0 : index
    %3 = vector.load %arg3[%c0_3, %c0_4] : memref<56x256xf32, #tpu.memory_space<vmem>>, vector<56x256xf32>
    tpu.vector_store %arg3[%c0_3, %c0_4], %2 {strides = array<i32>} : memref<56x256xf32, #tpu.memory_space<vmem>>, vector<56x256xf32>,
    return
  }
  func.func @transform_0(%arg0: i32) -> (i32, i32) {
    %c0_i32 = arith.constant 0 : i32
    %c0_i32_0 = arith.constant 0 : i32
    return %arg0, %c0_i32 : i32, i32
  }
  func.func @transform_1(%arg0: i32) -> (i32, i32) {
    %c0_i32 = arith.constant 0 : i32
    %c0_i32_0 = arith.constant 0 : i32
    %c0_i32_1 = arith.constant 0 : i32
    return %c0_i32, %c0_i32_0 : i32, i32
  }
  func.func @transform_2(%arg0: i32) -> (i32, i32) {
    %c0_i32 = arith.constant 0 : i32
    %c0_i32_0 = arith.constant 0 : i32
    return %arg0, %c0_i32 : i32, i32
  }
}

module attributes {stable_mosaic.version = 11 : i64} {
  func.func @_mm_kernel(%arg0: i32, %arg1: memref<1024x8xbf16, #tpu.memory_space<vmem>>, %arg2: memref<8x512xbf16, #tpu.memory_space<vmem>>, %arg3: memref<1024x512xf32, #tpu.memory_space<vmem>>) attributes {dimension_semantics = [#tpu.dimension_semantics<parallel>], iteration_bounds = array<i64: 1>, scalar_prefetch = 0 : i64, scratch_operands = 0 : i64, tpu.core_type = #tpu.core_type<tc>, window_params = [{transform_indices = @transform_0, window_bounds = array<i64: 1024, 8>}, {pipeline_mode = #tpu.pipeline_mode<synchronous>, transform_indices = @transform_1, window_bounds = array<i64: 8, 512>}, {transform_indices = @transform_2, window_bounds = array<i64: 1024, 512>}]} {
    %c0 = arith.constant 0 : index
    %c0_0 = arith.constant 0 : index
    %0 = vector.load %arg1[%c0, %c0_0] : memref<1024x8xbf16, #tpu.memory_space<vmem>>, vector<1024x8xbf16>
    %c0_1 = arith.constant 0 : index
    %c0_2 = arith.constant 0 : index
    %1 = vector.load %arg2[%c0_1, %c0_2] : memref<8x512xbf16, #tpu.memory_space<vmem>>, vector<8x512xbf16>
    %cst = arith.constant dense<0.000000e+00> : vector<1024x512xf32>
    %2 = tpu.matmul %0, %1, %cst {dimension_numbers = #tpu.dot_dimension_numbers<[1], [0], [0], [1], [0, 0, 1, 1], [], []>} : vector<1024x8xbf16>, vector<8x512xbf16>, vector<1024x512xf32> -> vector<1024x512xf32>
    %c0_3 = arith.constant 0 : index
    %c0_4 = arith.constant 0 : index
    %3 = vector.load %arg3[%c0_3, %c0_4] : memref<1024x512xf32, #tpu.memory_space<vmem>>, vector<1024x512xf32>
    tpu.vector_store %arg3[%c0_3, %c0_4], %2 {strides = array<i32>} : memref<1024x512xf32, #tpu.memory_space<vmem>>, vector<1024x512xf32>,
    return
  }
  func.func @transform_0(%arg0: i32) -> (i32, i32) {
    %c0_i32 = arith.constant 0 : i32
    %c0_i32_0 = arith.constant 0 : i32
    return %arg0, %c0_i32 : i32, i32
  }
  func.func @transform_1(%arg0: i32) -> (i32, i32) {
    %c0_i32 = arith.constant 0 : i32
    %c0_i32_0 = arith.constant 0 : i32
    %c0_i32_1 = arith.constant 0 : i32
    return %c0_i32, %c0_i32_0 : i32, i32
  }
  func.func @transform_2(%arg0: i32) -> (i32, i32) {
    %c0_i32 = arith.constant 0 : i32
    %c0_i32_0 = arith.constant 0 : i32
    return %arg0, %c0_i32 : i32, i32
  }
}

module attributes {stable_mosaic.version = 11 : i64} {
  func.func @_mm_kernel(%arg0: i32, %arg1: memref<1024x8xbf16, #tpu.memory_space<vmem>>, %arg2: memref<8x128xbf16, #tpu.memory_space<vmem>>, %arg3: memref<1024x128xf32, #tpu.memory_space<vmem>>) attributes {dimension_semantics = [#tpu.dimension_semantics<parallel>], iteration_bounds = array<i64: 8>, scalar_prefetch = 0 : i64, scratch_operands = 0 : i64, tpu.core_type = #tpu.core_type<tc>, window_params = [{transform_indices = @transform_0, window_bounds = array<i64: 1024, 8>}, {pipeline_mode = #tpu.pipeline_mode<synchronous>, transform_indices = @transform_1, window_bounds = array<i64: 8, 128>}, {transform_indices = @transform_2, window_bounds = array<i64: 1024, 128>}]} {
    %c0 = arith.constant 0 : index
    %c0_0 = arith.constant 0 : index
    %0 = vector.load %arg1[%c0, %c0_0] : memref<1024x8xbf16, #tpu.memory_space<vmem>>, vector<1024x8xbf16>
    %c0_1 = arith.constant 0 : index
    %c0_2 = arith.constant 0 : index
    %1 = vector.load %arg2[%c0_1, %c0_2] : memref<8x128xbf16, #tpu.memory_space<vmem>>, vector<8x128xbf16>
    %cst = arith.constant dense<0.000000e+00> : vector<1024x128xf32>
    %2 = tpu.matmul %0, %1, %cst {dimension_numbers = #tpu.dot_dimension_numbers<[1], [0], [0], [1], [0, 0, 1, 1], [], []>} : vector<1024x8xbf16>, vector<8x128xbf16>, vector<1024x128xf32> -> vector<1024x128xf32>
    %c0_3 = arith.constant 0 : index
    %c0_4 = arith.constant 0 : index
    %3 = vector.load %arg3[%c0_3, %c0_4] : memref<1024x128xf32, #tpu.memory_space<vmem>>, vector<1024x128xf32>
    tpu.vector_store %arg3[%c0_3, %c0_4], %2 {strides = array<i32>} : memref<1024x128xf32, #tpu.memory_space<vmem>>, vector<1024x128xf32>,
    return
  }
  func.func @transform_0(%arg0: i32) -> (i32, i32) {
    %c0_i32 = arith.constant 0 : i32
    %c0_i32_0 = arith.constant 0 : i32
    return %arg0, %c0_i32 : i32, i32
  }
  func.func @transform_1(%arg0: i32) -> (i32, i32) {
    %c0_i32 = arith.constant 0 : i32
    %c0_i32_0 = arith.constant 0 : i32
    %c0_i32_1 = arith.constant 0 : i32
    return %c0_i32, %c0_i32_0 : i32, i32
  }
  func.func @transform_2(%arg0: i32) -> (i32, i32) {
    %c0_i32 = arith.constant 0 : i32
    %c0_i32_0 = arith.constant 0 : i32
    return %arg0, %c0_i32 : i32, i32
  }
}

</mosaic_0001>

<bundles_post_ra>
// kernel: decoder_forward.4
= control target key start
LH: loop header
LB: loop body
LE: loop exit
PB: predicated region body
PF: predicated region fallthrough
CT: control target
= control target key end

     0   :  { %vm61_vm0 = vcmask 261120   ;;  %s247_s1 = inlined_call_operand.vmem [shape: bf16[32,512], index: 1, kind: input, shape index: {}]   ;;  %s248_s0 = inlined_call_operand.vmem [shape: bf16[8,32], index: 0, kind: input, shape index: {}]   ;;  %s249_s2 = inlined_call_operand.vmem [shape: f32[8,512], index: 2, kind: output, shape index: {}]  }
   0x1   :  { %v143_v0 = vld [vmem:[%s247_s1 + $0x20] sm:$0xf]  ;;  %v167_v1 = vld [vmem:[%s247_s1 + $0x2c] sm:$0xf0]  ;;  %v165_v2 = vld [vmem:[%s247_s1 + $0x24] sm:$0xf] }
   0x2   :  { %v144_v3 = vor.u32 %v167_v1, %v143_v0  ;;  %v145_v4 = vld [vmem:[%s247_s1 + $0x30] sm:$0xf0]  ;;  %v151_v5 = vld [vmem:[%s247_s1 + $0x28] sm:$0xf]  ;;  %v168_v6 = vld [vmem:[%s247_s1 + $0x34] sm:$0xf0] }
   0x3   :  { %v148_v7 = vor.u32 %v165_v2, %v145_v4  ;;  %v152_v8 = vor.u32 %v168_v6, %v151_v5  ;;  %v166_v9 = vld [vmem:[%s247_s1 + $0x2c] sm:$0xf]  ;;  %v153_v10 = vld [vmem:[%s247_s1 + $0x38] sm:$0xf0]  ;;  %v127_v11 = vld [vmem:[%s247_s1] sm:$0xf] }
   0x4   :  { %71 = vmatpush.bf16.msra.mxu0 %v144_v3  ;;  %v156_v12 = vor.u32 %v166_v9, %v153_v10  ;;  %v163_v13 = vld [vmem:[%s247_s1 + $0xc] sm:$0xf0]  ;;  %v161_v14 = vld [vmem:[%s247_s1 + $0x4] sm:$0xf]  ;;  %v129_v15 = vld [vmem:[%s247_s1 + $0x10] sm:$0xf0] }
   0x5   :  { %84 = vmatpush.bf16.msra.mxu1 %v148_v7  ;;  %97 = vmatpush.bf16.msra.mxu2 %v152_v8  ;;  %v128_v16 = vor.u32 %v163_v13, %v127_v11  ;;  %v132_v17 = vor.u32 %v161_v14, %v129_v15  ;;  %v135_v18 = vld [vmem:[%s247_s1 + $0x8] sm:$0xf]  ;;  %v164_v19 = vld [vmem:[%s247_s1 + $0x14] sm:$0xf0]  ;;  %v162_v20 = vld [vmem:[%s247_s1 + $0xc] sm:$0xf] }
   0x6   :  { %110 = vmatpush.bf16.msra.mxu3 %v156_v12  ;;  %v136_v21 = vor.u32 %v164_v19, %v135_v18  ;;  %v137_v22 = vld [vmem:[%s247_s1 + $0x18] sm:$0xf0]  ;;  %v12_v24 = vld [vmem:[%s248_s0] sm:$0xf] }
   0x7   :  { %v140_v23 = vor.u32 %v162_v20, %v137_v22 }
   0x8   :  { %72 = vmatpush.bf16.msra.mxu0 %v128_v16 }
   0x9   :  { %85 = vmatpush.bf16.msra.mxu1 %v132_v17  ;;  %98 = vmatpush.bf16.msra.mxu2 %v136_v21 }
   0xa   :  { %111 = vmatpush.bf16.msra.mxu3 %v140_v23 }
   0xb   :  { %157 = vmatmul.msk.bf16.vlgmr.msra.gmra.mxu0 %vm61_vm0, %v12_v24 }
   0xc   :  { %158 = vmatmul.msk.bf16.vlgmr.msra.gmra.mxu1 %vm61_vm0, %v12_v24  ;;  %159 = vmatmul.msk.bf16.vlgmr.msra.gmra.mxu2 %vm61_vm0, %v12_v24 }
   0xd   :  { %160 = vmatmul.msk.bf16.vlgmr.msra.gmra.mxu3 %vm61_vm0, %v12_v24 }
  0x88   :  { %v74_v25 = vpop.f32.mrf.mxu0 }
  0x89   :  { %117 = vst [vmem:[%s249_s2] sm:$0xff] %v74_v25  ;;  %v87_v26 = vpop.f32.mrf.mxu1 }
  0x8a   :  { %118 = vst [vmem:[%s249_s2 + $0x8] sm:$0xff] %v87_v26 }
  0x8f   :  { %v100_v27 = vpop.f32.mrf.mxu2 }
  0x90   :  { %119 = vst [vmem:[%s249_s2 + $0x10] sm:$0xff] %v100_v27  ;;  %v113_v28 = vpop.f32.mrf.mxu3  ;;  %v76_v29 = vpop.f32.mrf.mxu0 }
  0x91   :  { %120 = vst [vmem:[%s249_s2 + $0x18] sm:$0xff] %v113_v28  ;;  %v89_v30 = vpop.f32.mrf.mxu1 }
  0x97   :  { %v102_v31 = vpop.f32.mrf.mxu2 }
  0x98   :  { %v115_v32 = vpop.f32.mrf.mxu3 }

// kernel: decoder_forward.5
= control target key start
LH: loop header
LB: loop body
LE: loop exit
PB: predicated region body
PF: predicated region fallthrough
CT: control target
= control target key end

     0   :  { %vm49_vm0 = vcmask 130048   ;;  %s252_s1 = inlined_call_operand.vmem [shape: bf16[16,256], index: 1, kind: input, shape index: {}]   ;;  %s253_s0 = inlined_call_operand.vmem [shape: bf16[56,16], index: 0, kind: input, shape index: {}]   ;;  %s254_s2 = inlined_call_operand.vmem [shape: f32[56,256], index: 2, kind: output, shape index: {}]  }
   0x1   :  { %v150_v0 = vld [vmem:[%s252_s1] sm:$0xf]  ;;  %v168_v1 = vld [vmem:[%s252_s1 + $0x4] sm:$0xf0]  ;;  %v167_v2 = vld [vmem:[%s252_s1 + $0x4] sm:$0xf] }
   0x2   :  { %v151_v3 = vor.u32 %v168_v1, %v150_v0  ;;  %v152_v4 = vld [vmem:[%s252_s1 + $0x8] sm:$0xf0]  ;;  %v164_v6 = vld [vmem:[%s253_s0] sm:$0xff]  ;;  %v166_v7 = vld [vmem:[%s253_s0 + $0x10] sm:$0xff] }
   0x3   :  { %v155_v5 = vor.u32 %v167_v2, %v152_v4  ;;  %v18_v8 = vld [vmem:[%s253_s0 + $0x18] sm:$0xf]  ;;  %v165_v10 = vld [vmem:[%s253_s0 + $0x8] sm:$0xff] }
   0x4   :  { %69 = vmatpush.bf16.msra.mxu0 %v151_v3  ;;  %169 = vmatpush.bf16.msra.mxu2 %v151_v3  ;;  %v34_v9 = vunpack.c.l.b16 %v18_v8 }
   0x5   :  { %97 = vmatpush.bf16.msra.mxu1 %v155_v5  ;;  %170 = vmatpush.bf16.msra.mxu3 %v155_v5 }
   0x6   :  { %v38_v11 = vpack.c.b16 %v34_v9, %v34_v9 }
   0x7   :  { %156 = vmatmul.msk.bf16.vlgmr.msra.gmra.mxu0 %vm49_vm0, %v164_v6  ;;  %158 = vmatmul.msk.bf16.vlgmr.msra.gmra.mxu2 %vm49_vm0, %v166_v7 }
   0x8   :  { %160 = vmatmul.msk.bf16.vlgmr.msra.gmra.mxu1 %vm49_vm0, %v164_v6  ;;  %162 = vmatmul.msk.bf16.vlgmr.msra.gmra.mxu3 %vm49_vm0, %v166_v7 }
  0x17   :  { %157 = vmatmul.msk.bf16.gmra.mxu0 %vm49_vm0, %v165_v10  ;;  %159 = vmatmul.msk.bf16.gmra.mxu2 %vm49_vm0, %v38_v11 }
  0x18   :  { %161 = vmatmul.msk.bf16.gmra.mxu1 %vm49_vm0, %v165_v10  ;;  %163 = vmatmul.msk.bf16.gmra.mxu3 %vm49_vm0, %v38_v11 }
  0x84   :  { %v71_v12 = vpop.f32.mrf.mxu0 }
  0x85   :  { %118 = vst [vmem:[%s254_s2] sm:$0xff] %v71_v12  ;;  %v99_v13 = vpop.f32.mrf.mxu1 }
  0x86   :  { %119 = vst [vmem:[%s254_s2 + $0x8] sm:$0xff] %v99_v13 }
  0x8a   :  { %v81_v14 = vpop.f32.mrf.mxu2 }
  0x8b   :  { %126 = vst [vmem:[%s254_s2 + $0x40] sm:$0xff] %v81_v14  ;;  %v109_v15 = vpop.f32.mrf.mxu3 }
  0x8c   :  { %127 = vst [vmem:[%s254_s2 + $0x48] sm:$0xff] %v109_v15  ;;  %v73_v16 = vpop.f32.mrf.mxu0 }
  0x8d   :  { %120 = vst [vmem:[%s254_s2 + $0x10] sm:$0xff] %v73_v16  ;;  %v101_v17 = vpop.f32.mrf.mxu1 }
  0x8e   :  { %121 = vst [vmem:[%s254_s2 + $0x18] sm:$0xff] %v101_v17 }
  0x92   :  { %v83_v18 = vpop.f32.mrf.mxu2 }
  0x93   :  { %128 = vst [vmem:[%s254_s2 + $0x50] sm:$0xff] %v83_v18  ;;  %v111_v19 = vpop.f32.mrf.mxu3 }
  0x94   :  { %129 = vst [vmem:[%s254_s2 + $0x58] sm:$0xff] %v111_v19  ;;  %v76_v20 = vpop.f32.mrf.mxu0 }
  0x95   :  { %122 = vst [vmem:[%s254_s2 + $0x20] sm:$0xff] %v76_v20  ;;  %v104_v21 = vpop.f32.mrf.mxu1 }
  0x96   :  { %123 = vst [vmem:[%s254_s2 + $0x28] sm:$0xff] %v104_v21 }
  0x9a   :  { %v86_v22 = vpop.f32.mrf.mxu2 }
  0x9b   :  { %130 = vst [vmem:[%s254_s2 + $0x60] sm:$0xff] %v86_v22  ;;  %v114_v23 = vpop.f32.mrf.mxu3 }
  0x9c   :  { %131 = vst [vmem:[%s254_s2 + $0x68] sm:$0xff] %v114_v23  ;;  %v78_v24 = vpop.f32.mrf.mxu0 }
  0x9d   :  { %124 = vst [vmem:[%s254_s2 + $0x30] sm:$0xff] %v78_v24  ;;  %v106_v25 = vpop.f32.mrf.mxu1 }
  0x9e   :  { %125 = vst [vmem:[%s254_s2 + $0x38] sm:$0xff] %v106_v25 }
  0xa2   :  { %v88_v26 = vpop.f32.mrf.mxu2 }
  0xa3   :  { %v116_v27 = vpop.f32.mrf.mxu3 }

// kernel: decoder_forward.6
= control target key start
LH: loop header
LB: loop body
LE: loop exit
PB: predicated region body
PF: predicated region fallthrough
CT: control target
= control target key end

     0   :  { %vm665_vm0 = vcmask 1043456   ;;  %vm472_vm1 = vcmask 64512   ;;  %s5091_s1 = inlined_call_operand.vmem [shape: bf16[8,512], index: 1, kind: input, shape index: {}]   ;;  %s5092_s0 = inlined_call_operand.vmem [shape: bf16[1024,8], index: 0, kind: input, shape index: {}]   ;;  %s5093_s2 = inlined_call_operand.vmem [shape: f32[1024,512], index: 2, kind: output, shape index: {}]  }
   0x1   :  { %v140_v0 = vld [vmem:[%s5091_s1] sm:$0xff]  ;;  %v141_v1 = vld [vmem:[%s5091_s1 + $0x8] sm:$0xff]  ;;  %v3024_v16 = vld [vmem:[%s5092_s0 + $0x10] sm:$0xff] }
   0x2   :  { %v464_v2 = vunpack.c.l.b16 %v140_v0  ;;  %v465_v3 = vunpack.c.h.b16 %v140_v0  ;;  %v466_v4 = vunpack.c.l.b16 %v141_v1  ;;  %v467_v5 = vunpack.c.h.b16 %v141_v1  ;;  %v3022_v14 = vld [vmem:[%s5092_s0] sm:$0xff]  ;;  %v3023_v15 = vld [vmem:[%s5092_s0 + $0x8] sm:$0xff]  ;;  %v3025_v17 = vld [vmem:[%s5092_s0 + $0x18] sm:$0xff] }
   0x3   :  { %v3026_v18 = vld [vmem:[%s5092_s0 + $0x20] sm:$0xff]  ;;  %v3027_v19 = vld [vmem:[%s5092_s0 + $0x28] sm:$0xff]  ;;  %v3028_v20 = vld [vmem:[%s5092_s0 + $0x30] sm:$0xff] }
   0x4   :  { %v468_v6 = vpack.c.b16 %v464_v2, %v464_v2  ;;  %v469_v7 = vpack.c.b16 %v465_v3, %v465_v3  ;;  %v470_v8 = vpack.c.b16 %v466_v4, %v466_v4  ;;  %v471_v9 = vpack.c.b16 %v467_v5, %v467_v5  ;;  %v3029_v21 = vld [vmem:[%s5092_s0 + $0x38] sm:$0xff]  ;;  %v3030_v22 = vld [vmem:[%s5092_s0 + $0x40] sm:$0xff]  ;;  %v3031_v31 = vld [vmem:[%s5092_s0 + $0x48] sm:$0xff] }
   0x5   :  { %v3032_v40 = vld [vmem:[%s5092_s0 + $0x50] sm:$0xff]  ;;  %v3033_v49 = vld [vmem:[%s5092_s0 + $0x58] sm:$0xff]  ;;  %v3034_v58 = vld [vmem:[%s5092_s0 + $0x60] sm:$0xff] }
   0x6   :  { %v667_v10 = vsel %vm665_vm0, %v468_v6, 0  ;;  %v670_v11 = vsel %vm665_vm0, %v469_v7, 0  ;;  %v673_v12 = vsel %vm665_vm0, %v470_v8, 0  ;;  %v676_v13 = vsel %vm665_vm0, %v471_v9, 0  ;;  %v3035_v3 = vld [vmem:[%s5092_s0 + $0x68] sm:$0xff] }
   0x7   :  { %685 = vmatpush.bf16.msra.mxu0 %v667_v10  ;;  %1014 = vmatpush.bf16.msra.mxu1 %v670_v11 }
   0x8   :  { %1343 = vmatpush.bf16.msra.mxu2 %v673_v12  ;;  %1672 = vmatpush.bf16.msra.mxu3 %v676_v13  ;;  %v3036_v12 = vld [vmem:[%s5092_s0 + $0x70] sm:$0xff] }
   0xa   :  { %2766 = vmatmul.msk.bf16.vlgmr.msra.gmra.mxu0 %vm472_vm1, %v3022_v14  ;;  %2830 = vmatmul.msk.bf16.vlgmr.msra.gmra.mxu1 %vm472_vm1, %v3022_v14 }
   0xb   :  { %2894 = vmatmul.msk.bf16.vlgmr.msra.gmra.mxu2 %vm472_vm1, %v3022_v14  ;;  %2958 = vmatmul.msk.bf16.vlgmr.msra.gmra.mxu3 %vm472_vm1, %v3022_v14 }
  0x1a   :  { %2767 = vmatmul.msk.bf16.gmra.mxu0 %vm472_vm1, %v3023_v15  ;;  %2831 = vmatmul.msk.bf16.gmra.mxu1 %vm472_vm1, %v3023_v15 }
  0x1b   :  { %2895 = vmatmul.msk.bf16.gmra.mxu2 %vm472_vm1, %v3023_v15  ;;  %2959 = vmatmul.msk.bf16.gmra.mxu3 %vm472_vm1, %v3023_v15 }
  0x2a   :  { %2768 = vmatmul.msk.bf16.gmra.mxu0 %vm472_vm1, %v3024_v16  ;;  %2832 = vmatmul.msk.bf16.gmra.mxu1 %vm472_vm1, %v3024_v16 }
  0x2b   :  { %2896 = vmatmul.msk.bf16.gmra.mxu2 %vm472_vm1, %v3024_v16  ;;  %2960 = vmatmul.msk.bf16.gmra.mxu3 %vm472_vm1, %v3024_v16 }
  0x3a   :  { %2769 = vmatmul.msk.bf16.gmra.mxu0 %vm472_vm1, %v3025_v17  ;;  %2833 = vmatmul.msk.bf16.gmra.mxu1 %vm472_vm1, %v3025_v17 }
  0x3b   :  { %2897 = vmatmul.msk.bf16.gmra.mxu2 %vm472_vm1, %v3025_v17  ;;  %2961 = vmatmul.msk.bf16.gmra.mxu3 %vm472_vm1, %v3025_v17 }
  0x4a   :  { %2770 = vmatmul.msk.bf16.gmra.mxu0 %vm472_vm1, %v3026_v18  ;;  %2834 = vmatmul.msk.bf16.gmra.mxu1 %vm472_vm1, %v3026_v18 }
  0x4b   :  { %2898 = vmatmul.msk.bf16.gmra.mxu2 %vm472_vm1, %v3026_v18  ;;  %2962 = vmatmul.msk.bf16.gmra.mxu3 %vm472_vm1, %v3026_v18 }
  0x5a   :  { %2771 = vmatmul.msk.bf16.gmra.mxu0 %vm472_vm1, %v3027_v19  ;;  %2835 = vmatmul.msk.bf16.gmra.mxu1 %vm472_vm1, %v3027_v19 }
  0x5b   :  { %2899 = vmatmul.msk.bf16.gmra.mxu2 %vm472_vm1, %v3027_v19  ;;  %2963 = vmatmul.msk.bf16.gmra.mxu3 %vm472_vm1, %v3027_v19 }
  0x6a   :  { %2772 = vmatmul.msk.bf16.gmra.mxu0 %vm472_vm1, %v3028_v20  ;;  %2836 = vmatmul.msk.bf16.gmra.mxu1 %vm472_vm1, %v3028_v20 }
  0x6b   :  { %2900 = vmatmul.msk.bf16.gmra.mxu2 %vm472_vm1, %v3028_v20  ;;  %2964 = vmatmul.msk.bf16.gmra.mxu3 %vm472_vm1, %v3028_v20 }
  0x7a   :  { %2773 = vmatmul.msk.bf16.gmra.mxu0 %vm472_vm1, %v3029_v21  ;;  %2837 = vmatmul.msk.bf16.gmra.mxu1 %vm472_vm1, %v3029_v21 }
  0x7b   :  { %2901 = vmatmul.msk.bf16.gmra.mxu2 %vm472_vm1, %v3029_v21  ;;  %2965 = vmatmul.msk.bf16.gmra.mxu3 %vm472_vm1, %v3029_v21  ;;  %v3037_v21 = vld [vmem:[%s5092_s0 + $0x78] sm:$0xff] }
  0x87   :  { %v687_v23 = vpop.f32.mrf.mxu0  ;;  %v1016_v24 = vpop.f32.mrf.mxu1 }
  0x88   :  { %1994 = vst [vmem:[%s5093_s2] sm:$0xff] %v687_v23 }
  0x89   :  { %1995 = vst [vmem:[%s5093_s2 + $0x8] sm:$0xff] %v1016_v24 }
  0x8a   :  { %2774 = vmatmul.msk.bf16.gmra.mxu0 %vm472_vm1, %v3030_v22  ;;  %2838 = vmatmul.msk.bf16.gmra.mxu1 %vm472_vm1, %v3030_v22 }
  0x8b   :  { %2902 = vmatmul.msk.bf16.gmra.mxu2 %vm472_vm1, %v3030_v22  ;;  %2966 = vmatmul.msk.bf16.gmra.mxu3 %vm472_vm1, %v3030_v22 }
  0x8e   :  { %v1345_v25 = vpop.f32.mrf.mxu2  ;;  %v1674_v26 = vpop.f32.mrf.mxu3 }
  0x8f   :  { %1996 = vst [vmem:[%s5093_s2 + $0x10] sm:$0xff] %v1345_v25  ;;  %v689_v27 = vpop.f32.mrf.mxu0  ;;  %v1018_v28 = vpop.f32.mrf.mxu1 }
  0x90   :  { %1997 = vst [vmem:[%s5093_s2 + $0x18] sm:$0xff] %v1674_v26 }
  0x91   :  { %1998 = vst [vmem:[%s5093_s2 + $0x20] sm:$0xff] %v689_v27 }
  0x92   :  { %1999 = vst [vmem:[%s5093_s2 + $0x28] sm:$0xff] %v1018_v28 }
  0x96   :  { %v1347_v29 = vpop.f32.mrf.mxu2  ;;  %v1676_v30 = vpop.f32.mrf.mxu3 }
  0x97   :  { %2000 = vst [vmem:[%s5093_s2 + $0x30] sm:$0xff] %v1347_v29  ;;  %v692_v32 = vpop.f32.mrf.mxu0  ;;  %v1021_v33 = vpop.f32.mrf.mxu1 }
  0x98   :  { %2001 = vst [vmem:[%s5093_s2 + $0x38] sm:$0xff] %v1676_v30  ;;  %v3038_v30 = vld [vmem:[%s5092_s0 + $0x80] sm:$0xff] }
  0x99   :  { %2002 = vst [vmem:[%s5093_s2 + $0x40] sm:$0xff] %v692_v32 }
  0x9a   :  { %2003 = vst [vmem:[%s5093_s2 + $0x48] sm:$0xff] %v1021_v33  ;;  %2775 = vmatmul.msk.bf16.gmra.mxu0 %vm472_vm1, %v3031_v31  ;;  %2839 = vmatmul.msk.bf16.gmra.mxu1 %vm472_vm1, %v3031_v31 }
  0x9b   :  { %2903 = vmatmul.msk.bf16.gmra.mxu2 %vm472_vm1, %v3031_v31  ;;  %2967 = vmatmul.msk.bf16.gmra.mxu3 %vm472_vm1, %v3031_v31 }
  0x9e   :  { %v1350_v34 = vpop.f32.mrf.mxu2  ;;  %v1679_v35 = vpop.f32.mrf.mxu3 }
  0x9f   :  { %2004 = vst [vmem:[%s5093_s2 + $0x50] sm:$0xff] %v1350_v34  ;;  %v694_v36 = vpop.f32.mrf.mxu0  ;;  %v1023_v37 = vpop.f32.mrf.mxu1 }
  0xa0   :  { %2005 = vst [vmem:[%s5093_s2 + $0x58] sm:$0xff] %v1679_v35 }
  0xa1   :  { %2006 = vst [vmem:[%s5093_s2 + $0x60] sm:$0xff] %v694_v36 }
  0xa2   :  { %2007 = vst [vmem:[%s5093_s2 + $0x68] sm:$0xff] %v1023_v37 }
  0xa6   :  { %v1352_v38 = vpop.f32.mrf.mxu2  ;;  %v1681_v39 = vpop.f32.mrf.mxu3 }
  0xa7   :  { %2008 = vst [vmem:[%s5093_s2 + $0x70] sm:$0xff] %v1352_v38  ;;  %v697_v41 = vpop.f32.mrf.mxu0  ;;  %v1026_v42 = vpop.f32.mrf.mxu1 }
  0xa8   :  { %2009 = vst [vmem:[%s5093_s2 + $0x78] sm:$0xff] %v1681_v39  ;;  %v3039_v39 = vld [vmem:[%s5092_s0 + $0x88] sm:$0xff] }
  0xa9   :  { %2010 = vst [vmem:[%s5093_s2 + $0x80] sm:$0xff] %v697_v41 }
  0xaa   :  { %2011 = vst [vmem:[%s5093_s2 + $0x88] sm:$0xff] %v1026_v42  ;;  %2776 = vmatmul.msk.bf16.gmra.mxu0 %vm472_vm1, %v3032_v40  ;;  %2840 = vmatmul.msk.bf16.gmra.mxu1 %vm472_vm1, %v3032_v40 }
  0xab   :  { %2904 = vmatmul.msk.bf16.gmra.mxu2 %vm472_vm1, %v3032_v40  ;;  %2968 = vmatmul.msk.bf16.gmra.mxu3 %vm472_vm1, %v3032_v40 }
  0xae   :  { %v1355_v43 = vpop.f32.mrf.mxu2  ;;  %v1684_v44 = vpop.f32.mrf.mxu3 }
  0xaf   :  { %2012 = vst [vmem:[%s5093_s2 + $0x90] sm:$0xff] %v1355_v43  ;;  %v699_v45 = vpop.f32.mrf.mxu0  ;;  %v1028_v46 = vpop.f32.mrf.mxu1 }
  0xb0   :  { %2013 = vst [vmem:[%s5093_s2 + $0x98] sm:$0xff] %v1684_v44 }
  0xb1   :  { %2014 = vst [vmem:[%s5093_s2 + $0xa0] sm:$0xff] %v699_v45 }
  0xb2   :  { %2015 = vst [vmem:[%s5093_s2 + $0xa8] sm:$0xff] %v1028_v46 }
  0xb6   :  { %v1357_v47 = vpop.f32.mrf.mxu2  ;;  %v1686_v48 = vpop.f32.mrf.mxu3 }
  0xb7   :  { %2016 = vst [vmem:[%s5093_s2 + $0xb0] sm:$0xff] %v1357_v47  ;;  %v702_v50 = vpop.f32.mrf.mxu0  ;;  %v1031_v51 = vpop.f32.mrf.mxu1 }
  0xb8   :  { %2017 = vst [vmem:[%s5093_s2 + $0xb8] sm:$0xff] %v1686_v48  ;;  %v3040_v48 = vld [vmem:[%s5092_s0 + $0x90] sm:$0xff] }
  0xb9   :  { %2018 = vst [vmem:[%s5093_s2 + $0xc0] sm:$0xff] %v702_v50 }
  0xba   :  { %2019 = vst [vmem:[%s5093_s2 + $0xc8] sm:$0xff] %v1031_v51  ;;  %2777 = vmatmul.msk.bf16.gmra.mxu0 %vm472_vm1, %v3033_v49  ;;  %2841 = vmatmul.msk.bf16.gmra.mxu1 %vm472_vm1, %v3033_v49 }
  0xbb   :  { %2905 = vmatmul.msk.bf16.gmra.mxu2 %vm472_vm1, %v3033_v49  ;;  %2969 = vmatmul.msk.bf16.gmra.mxu3 %vm472_vm1, %v3033_v49 }
  0xbe   :  { %v1360_v52 = vpop.f32.mrf.mxu2  ;;  %v1689_v53 = vpop.f32.mrf.mxu3 }
  0xbf   :  { %2020 = vst [vmem:[%s5093_s2 + $0xd0] sm:$0xff] %v1360_v52  ;;  %v704_v54 = vpop.f32.mrf.mxu0  ;;  %v1033_v55 = vpop.f32.mrf.mxu1 }
  0xc0   :  { %2021 = vst [vmem:[%s5093_s2 + $0xd8] sm:$0xff] %v1689_v53 }
  0xc1   :  { %2022 = vst [vmem:[%s5093_s2 + $0xe0] sm:$0xff] %v704_v54 }
  0xc2   :  { %2023 = vst [vmem:[%s5093_s2 + $0xe8] sm:$0xff] %v1033_v55 }
  0xc6   :  { %v1362_v56 = vpop.f32.mrf.mxu2  ;;  %v1691_v57 = vpop.f32.mrf.mxu3 }
  0xc7   :  { %2024 = vst [vmem:[%s5093_s2 + $0xf0] sm:$0xff] %v1362_v56  ;;  %v707_v59 = vpop.f32.mrf.mxu0  ;;  %v1036_v60 = vpop.f32.mrf.mxu1 }
  0xc8   :  { %2025 = vst [vmem:[%s5093_s2 + $0xf8] sm:$0xff] %v1691_v57  ;;  %v3041_v57 = vld [vmem:[%s5092_s0 + $0x98] sm:$0xff] }
  0xc9   :  { %2026 = vst [vmem:[%s5093_s2 + $0x100] sm:$0xff] %v707_v59 }
  0xca   :  { %2027 = vst [vmem:[%s5093_s2 + $0x108] sm:$0xff] %v1036_v60  ;;  %2778 = vmatmul.msk.bf16.gmra.mxu0 %vm472_vm1, %v3034_v58  ;;  %2842 = vmatmul.msk.bf16.gmra.mxu1 %vm472_vm1, %v3034_v58 }
  0xcb   :  { %2906 = vmatmul.msk.bf16.gmra.mxu2 %vm472_vm1, %v3034_v58  ;;  %2970 = vmatmul.msk.bf16.gmra.mxu3 %vm472_vm1, %v3034_v58 }
  0xce   :  { %v1365_v61 = vpop.f32.mrf.mxu2  ;;  %v1694_v62 = vpop.f32.mrf.mxu3 }
  0xcf   :  { %2028 = vst [vmem:[%s5093_s2 + $0x110] sm:$0xff] %v1365_v61  ;;  %v709_v63 = vpop.f32.mrf.mxu0  ;;  %v1038_v0 = vpop.f32.mrf.mxu1 }
  0xd0   :  { %2029 = vst [vmem:[%s5093_s2 + $0x118] sm:$0xff] %v1694_v62 }
  0xd1   :  { %2030 = vst [vmem:[%s5093_s2 + $0x120] sm:$0xff] %v709_v63 }
  0xd2   :  { %2031 = vst [vmem:[%s5093_s2 + $0x128] sm:$0xff] %v1038_v0 }
  0xd6   :  { %v1367_v1 = vpop.f32.mrf.mxu2  ;;  %v1696_v2 = vpop.f32.mrf.mxu3 }
  0xd7   :  { %2032 = vst [vmem:[%s5093_s2 + $0x130] sm:$0xff] %v1367_v1  ;;  %v712_v4 = vpop.f32.mrf.mxu0  ;;  %v1041_v5 = vpop.f32.mrf.mxu1 }
  0xd8   :  { %2033 = vst [vmem:[%s5093_s2 + $0x138] sm:$0xff] %v1696_v2  ;;  %v3042_v2 = vld [vmem:[%s5092_s0 + $0xa0] sm:$0xff] }
  0xd9   :  { %2034 = vst [vmem:[%s5093_s2 + $0x140] sm:$0xff] %v712_v4 }
  0xda   :  { %2035 = vst [vmem:[%s5093_s2 + $0x148] sm:$0xff] %v1041_v5  ;;  %2779 = vmatmul.msk.bf16.gmra.mxu0 %vm472_vm1, %v3035_v3  ;;  %2843 = vmatmul.msk.bf16.gmra.mxu1 %vm472_vm1, %v3035_v3 }
  0xdb   :  { %2907 = vmatmul.msk.bf16.gmra.mxu2 %vm472_vm1, %v3035_v3  ;;  %2971 = vmatmul.msk.bf16.gmra.mxu3 %vm472_vm1, %v3035_v3 }
  0xde   :  { %v1370_v6 = vpop.f32.mrf.mxu2  ;;  %v1699_v7 = vpop.f32.mrf.mxu3 }
  0xdf   :  { %2036 = vst [vmem:[%s5093_s2 + $0x150] sm:$0xff] %v1370_v6  ;;  %v714_v8 = vpop.f32.mrf.mxu0  ;;  %v1043_v9 = vpop.f32.mrf.mxu1 }
  0xe0   :  { %2037 = vst [vmem:[%s5093_s2 + $0x158] sm:$0xff] %v1699_v7 }
  0xe1   :  { %2038 = vst [vmem:[%s5093_s2 + $0x160] sm:$0xff] %v714_v8 }
  0xe2   :  { %2039 = vst [vmem:[%s5093_s2 + $0x168] sm:$0xff] %v1043_v9 }
  0xe6   :  { %v1372_v10 = vpop.f32.mrf.mxu2  ;;  %v1701_v11 = vpop.f32.mrf.mxu3 }
  0xe7   :  { %2040 = vst [vmem:[%s5093_s2 + $0x170] sm:$0xff] %v1372_v10  ;;  %v717_v13 = vpop.f32.mrf.mxu0  ;;  %v1046_v14 = vpop.f32.mrf.mxu1 }
  0xe8   :  { %2041 = vst [vmem:[%s5093_s2 + $0x178] sm:$0xff] %v1701_v11  ;;  %v3043_v11 = vld [vmem:[%s5092_s0 + $0xa8] sm:$0xff] }
  0xe9   :  { %2042 = vst [vmem:[%s5093_s2 + $0x180] sm:$0xff] %v717_v13 }
  0xea   :  { %2043 = vst [vmem:[%s5093_s2 + $0x188] sm:$0xff] %v1046_v14  ;;  %2780 = vmatmul.msk.bf16.gmra.mxu0 %vm472_vm1, %v3036_v12  ;;  %2844 = vmatmul.msk.bf16.gmra.mxu1 %vm472_vm1, %v3036_v12 }
  0xeb   :  { %2908 = vmatmul.msk.bf16.gmra.mxu2 %vm472_vm1, %v3036_v12  ;;  %2972 = vmatmul.msk.bf16.gmra.mxu3 %vm472_vm1, %v3036_v12 }
  0xee   :  { %v1375_v15 = vpop.f32.mrf.mxu2  ;;  %v1704_v16 = vpop.f32.mrf.mxu3 }
  0xef   :  { %2044 = vst [vmem:[%s5093_s2 + $0x190] sm:$0xff] %v1375_v15  ;;  %v719_v17 = vpop.f32.mrf.mxu0  ;;  %v1048_v18 = vpop.f32.mrf.mxu1 }
  0xf0   :  { %2045 = vst [vmem:[%s5093_s2 + $0x198] sm:$0xff] %v1704_v16 }
  0xf1   :  { %2046 = vst [vmem:[%s5093_s2 + $0x1a0] sm:$0xff] %v719_v17 }
  0xf2   :  { %2047 = vst [vmem:[%s5093_s2 + $0x1a8] sm:$0xff] %v1048_v18 }
  0xf6   :  { %v1377_v19 = vpop.f32.mrf.mxu2  ;;  %v1706_v20 = vpop.f32.mrf.mxu3 }
  0xf7   :  { %2048 = vst [vmem:[%s5093_s2 + $0x1b0] sm:$0xff] %v1377_v19  ;;  %v722_v22 = vpop.f32.mrf.mxu0  ;;  %v1051_v23 = vpop.f32.mrf.mxu1 }
  0xf8   :  { %2049 = vst [vmem:[%s5093_s2 + $0x1b8] sm:$0xff] %v1706_v20  ;;  %v3044_v20 = vld [vmem:[%s5092_s0 + $0xb0] sm:$0xff] }
  0xf9   :  { %2050 = vst [vmem:[%s5093_s2 + $0x1c0] sm:$0xff] %v722_v22 }
  0xfa   :  { %2051 = vst [vmem:[%s5093_s2 + $0x1c8] sm:$0xff] %v1051_v23  ;;  %2781 = vmatmul.msk.bf16.gmra.mxu0 %vm472_vm1, %v3037_v21  ;;  %2845 = vmatmul.msk.bf16.gmra.mxu1 %vm472_vm1, %v3037_v21 }
  0xfb   :  { %2909 = vmatmul.msk.bf16.gmra.mxu2 %vm472_vm1, %v3037_v21  ;;  %2973 = vmatmul.msk.bf16.gmra.mxu3 %vm472_vm1, %v3037_v21 }
  0xfe   :  { %v1380_v24 = vpop.f32.mrf.mxu2  ;;  %v1709_v25 = vpop.f32.mrf.mxu3 }
  0xff   :  { %2052 = vst [vmem:[%s5093_s2 + $0x1d0] sm:$0xff] %v1380_v24  ;;  %v724_v26 = vpop.f32.mrf.mxu0  ;;  %v1053_v27 = vpop.f32.mrf.mxu1 }
 0x100   :  { %2053 = vst [vmem:[%s5093_s2 + $0x1d8] sm:$0xff] %v1709_v25 }
 0x101   :  { %2054 = vst [vmem:[%s5093_s2 + $0x1e0] sm:$0xff] %v724_v26 }
 0x102   :  { %2055 = vst [vmem:[%s5093_s2 + $0x1e8] sm:$0xff] %v1053_v27 }
 0x106   :  { %v1382_v28 = vpop.f32.mrf.mxu2  ;;  %v1711_v29 = vpop.f32.mrf.mxu3 }
 0x107   :  { %2056 = vst [vmem:[%s5093_s2 + $0x1f0] sm:$0xff] %v1382_v28  ;;  %v727_v31 = vpop.f32.mrf.mxu0  ;;  %v1056_v32 = vpop.f32.mrf.mxu1 }
 0x108   :  { %2057 = vst [vmem:[%s5093_s2 + $0x1f8] sm:$0xff] %v1711_v29  ;;  %v3045_v29 = vld [vmem:[%s5092_s0 + $0xb8] sm:$0xff] }
 0x109   :  { %2058 = vst [vmem:[%s5093_s2 + $0x200] sm:$0xff] %v727_v31 }
 0x10a   :  { %2059 = vst [vmem:[%s5093_s2 + $0x208] sm:$0xff] %v1056_v32  ;;  %2782 = vmatmul.msk.bf16.gmra.mxu0 %vm472_vm1, %v3038_v30  ;;  %2846 = vmatmul.msk.bf16.gmra.mxu1 %vm472_vm1, %v3038_v30 }
 0x10b   :  { %2910 = vmatmul.msk.bf16.gmra.mxu2 %vm472_vm1, %v3038_v30  ;;  %2974 = vmatmul.msk.bf16.gmra.mxu3 %vm472_vm1, %v3038_v30 }
 0x10e   :  { %v1385_v33 = vpop.f32.mrf.mxu2  ;;  %v1714_v34 = vpop.f32.mrf.mxu3 }
 0x10f   :  { %2060 = vst [vmem:[%s5093_s2 + $0x210] sm:$0xff] %v1385_v33  ;;  %v729_v35 = vpop.f32.mrf.mxu0  ;;  %v1058_v36 = vpop.f32.mrf.mxu1 }
 0x110   :  { %2061 = vst [vmem:[%s5093_s2 + $0x218] sm:$0xff] %v1714_v34 }
 0x111   :  { %2062 = vst [vmem:[%s5093_s2 + $0x220] sm:$0xff] %v729_v35 }
 0x112   :  { %2063 = vst [vmem:[%s5093_s2 + $0x228] sm:$0xff] %v1058_v36 }
 0x116   :  { %v1387_v37 = vpop.f32.mrf.mxu2  ;;  %v1716_v38 = vpop.f32.mrf.mxu3 }
 0x117   :  { %2064 = vst [vmem:[%s5093_s2 + $0x230] sm:$0xff] %v1387_v37  ;;  %v732_v40 = vpop.f32.mrf.mxu0  ;;  %v1061_v41 = vpop.f32.mrf.mxu1 }
 0x118   :  { %2065 = vst [vmem:[%s5093_s2 + $0x238] sm:$0xff] %v1716_v38  ;;  %v3046_v38 = vld [vmem:[%s5092_s0 + $0xc0] sm:$0xff] }
 0x119   :  { %2066 = vst [vmem:[%s5093_s2 + $0x240] sm:$0xff] %v732_v40 }
 0x11a   :  { %2067 = vst [vmem:[%s5093_s2 + $0x248] sm:$0xff] %v1061_v41  ;;  %2783 = vmatmul.msk.bf16.gmra.mxu0 %vm472_vm1, %v3039_v39  ;;  %2847 = vmatmul.msk.bf16.gmra.mxu1 %vm472_vm1, %v3039_v39 }
 0x11b   :  { %2911 = vmatmul.msk.bf16.gmra.mxu2 %vm472_vm1, %v3039_v39  ;;  %2975 = vmatmul.msk.bf16.gmra.mxu3 %vm472_vm1, %v3039_v39 }
 0x11e   :  { %v1390_v42 = vpop.f32.mrf.mxu2  ;;  %v1719_v43 = vpop.f32.mrf.mxu3 }
 0x11f   :  { %2068 = vst [vmem:[%s5093_s2 + $0x250] sm:$0xff] %v1390_v42  ;;  %v734_v44 = vpop.f32.mrf.mxu0  ;;  %v1063_v45 = vpop.f32.mrf.mxu1 }
 0x120   :  { %2069 = vst [vmem:[%s5093_s2 + $0x258] sm:$0xff] %v1719_v43 }
 0x121   :  { %2070 = vst [vmem:[%s5093_s2 + $0x260] sm:$0xff] %v734_v44 }
 0x122   :  { %2071 = vst [vmem:[%s5093_s2 + $0x268] sm:$0xff] %v1063_v45 }
 0x126   :  { %v1392_v46 = vpop.f32.mrf.mxu2  ;;  %v1721_v47 = vpop.f32.mrf.mxu3 }
 0x127   :  { %2072 = vst [vmem:[%s5093_s2 + $0x270] sm:$0xff] %v1392_v46  ;;  %v737_v49 = vpop.f32.mrf.mxu0  ;;  %v1066_v50 = vpop.f32.mrf.mxu1 }
 0x128   :  { %2073 = vst [vmem:[%s5093_s2 + $0x278] sm:$0xff] %v1721_v47  ;;  %v3047_v47 = vld [vmem:[%s5092_s0 + $0xc8] sm:$0xff] }
 0x129   :  { %2074 = vst [vmem:[%s5093_s2 + $0x280] sm:$0xff] %v737_v49 }
 0x12a   :  { %2075 = vst [vmem:[%s5093_s2 + $0x288] sm:$0xff] %v1066_v50  ;;  %2784 = vmatmul.msk.bf16.gmra.mxu0 %vm472_vm1, %v3040_v48  ;;  %2848 = vmatmul.msk.bf16.gmra.mxu1 %vm472_vm1, %v3040_v48 }
 0x12b   :  { %2912 = vmatmul.msk.bf16.gmra.mxu2 %vm472_vm1, %v3040_v48  ;;  %2976 = vmatmul.msk.bf16.gmra.mxu3 %vm472_vm1, %v3040_v48 }
 0x12e   :  { %v1395_v51 = vpop.f32.mrf.mxu2  ;;  %v1724_v52 = vpop.f32.mrf.mxu3 }
 0x12f   :  { %2076 = vst [vmem:[%s5093_s2 + $0x290] sm:$0xff] %v1395_v51  ;;  %v739_v53 = vpop.f32.mrf.mxu0  ;;  %v1068_v54 = vpop.f32.mrf.mxu1 }
 0x130   :  { %2077 = vst [vmem:[%s5093_s2 + $0x298] sm:$0xff] %v1724_v52 }
 0x131   :  { %2078 = vst [vmem:[%s5093_s2 + $0x2a0] sm:$0xff] %v739_v53 }
 0x132   :  { %2079 = vst [vmem:[%s5093_s2 + $0x2a8] sm:$0xff] %v1068_v54 }
 0x136   :  { %v1397_v55 = vpop.f32.mrf.mxu2  ;;  %v1726_v56 = vpop.f32.mrf.mxu3 }
 0x137   :  { %2080 = vst [vmem:[%s5093_s2 + $0x2b0] sm:$0xff] %v1397_v55  ;;  %v742_v58 = vpop.f32.mrf.mxu0  ;;  %v1071_v59 = vpop.f32.mrf.mxu1 }
 0x138   :  { %2081 = vst [vmem:[%s5093_s2 + $0x2b8] sm:$0xff] %v1726_v56  ;;  %v3048_v56 = vld [vmem:[%s5092_s0 + $0xd0] sm:$0xff] }
 0x139   :  { %2082 = vst [vmem:[%s5093_s2 + $0x2c0] sm:$0xff] %v742_v58 }
 0x13a   :  { %2083 = vst [vmem:[%s5093_s2 + $0x2c8] sm:$0xff] %v1071_v59  ;;  %2785 = vmatmul.msk.bf16.gmra.mxu0 %vm472_vm1, %v3041_v57  ;;  %2849 = vmatmul.msk.bf16.gmra.mxu1 %vm472_vm1, %v3041_v57 }
 0x13b   :  { %2913 = vmatmul.msk.bf16.gmra.mxu2 %vm472_vm1, %v3041_v57  ;;  %2977 = vmatmul.msk.bf16.gmra.mxu3 %vm472_vm1, %v3041_v57 }
 0x13e   :  { %v1400_v60 = vpop.f32.mrf.mxu2  ;;  %v1729_v61 = vpop.f32.mrf.mxu3 }
 0x13f   :  { %2084 = vst [vmem:[%s5093_s2 + $0x2d0] sm:$0xff] %v1400_v60  ;;  %v744_v62 = vpop.f32.mrf.mxu0  ;;  %v1073_v63 = vpop.f32.mrf.mxu1 }
 0x140   :  { %2085 = vst [vmem:[%s5093_s2 + $0x2d8] sm:$0xff] %v1729_v61 }
 0x141   :  { %2086 = vst [vmem:[%s5093_s2 + $0x2e0] sm:$0xff] %v744_v62 }
 0x142   :  { %2087 = vst [vmem:[%s5093_s2 + $0x2e8] sm:$0xff] %v1073_v63 }
 0x146   :  { %v1402_v0 = vpop.f32.mrf.mxu2  ;;  %v1731_v1 = vpop.f32.mrf.mxu3 }
 0x147   :  { %2088 = vst [vmem:[%s5093_s2 + $0x2f0] sm:$0xff] %v1402_v0  ;;  %v747_v3 = vpop.f32.mrf.mxu0  ;;  %v1076_v4 = vpop.f32.mrf.mxu1 }
 0x148   :  { %2089 = vst [vmem:[%s5093_s2 + $0x2f8] sm:$0xff] %v1731_v1  ;;  %v3049_v1 = vld [vmem:[%s5092_s0 + $0xd8] sm:$0xff] }
 0x149   :  { %2090 = vst [vmem:[%s5093_s2 + $0x300] sm:$0xff] %v747_v3 }
 0x14a   :  { %2091 = vst [vmem:[%s5093_s2 + $0x308] sm:$0xff] %v1076_v4  ;;  %2786 = vmatmul.msk.bf16.gmra.mxu0 %vm472_vm1, %v3042_v2  ;;  %2850 = vmatmul.msk.bf16.gmra.mxu1 %vm472_vm1, %v3042_v2 }
 0x14b   :  { %2914 = vmatmul.msk.bf16.gmra.mxu2 %vm472_vm1, %v3042_v2  ;;  %2978 = vmatmul.msk.bf16.gmra.mxu3 %vm472_vm1, %v3042_v2 }
 0x14e   :  { %v1405_v5 = vpop.f32.mrf.mxu2  ;;  %v1734_v6 = vpop.f32.mrf.mxu3 }
 0x14f   :  { %2092 = vst [vmem:[%s5093_s2 + $0x310] sm:$0xff] %v1405_v5  ;;  %v749_v7 = vpop.f32.mrf.mxu0  ;;  %v1078_v8 = vpop.f32.mrf.mxu1 }
 0x150   :  { %2093 = vst [vmem:[%s5093_s2 + $0x318] sm:$0xff] %v1734_v6 }
 0x151   :  { %2094 = vst [vmem:[%s5093_s2 + $0x320] sm:$0xff] %v749_v7 }
 0x152   :  { %2095 = vst [vmem:[%s5093_s2 + $0x328] sm:$0xff] %v1078_v8 }
 0x156   :  { %v1407_v9 = vpop.f32.mrf.mxu2  ;;  %v1736_v10 = vpop.f32.mrf.mxu3 }
 0x157   :  { %2096 = vst [vmem:[%s5093_s2 + $0x330] sm:$0xff] %v1407_v9  ;;  %v752_v12 = vpop.f32.mrf.mxu0  ;;  %v1081_v13 = vpop.f32.mrf.mxu1 }
 0x158   :  { %2097 = vst [vmem:[%s5093_s2 + $0x338] sm:$0xff] %v1736_v10  ;;  %v3050_v10 = vld [vmem:[%s5092_s0 + $0xe0] sm:$0xff] }
 0x159   :  { %2098 = vst [vmem:[%s5093_s2 + $0x340] sm:$0xff] %v752_v12 }
 0x15a   :  { %2099 = vst [vmem:[%s5093_s2 + $0x348] sm:$0xff] %v1081_v13  ;;  %2787 = vmatmul.msk.bf16.gmra.mxu0 %vm472_vm1, %v3043_v11  ;;  %2851 = vmatmul.msk.bf16.gmra.mxu1 %vm472_vm1, %v3043_v11 }
 0x15b   :  { %2915 = vmatmul.msk.bf16.gmra.mxu2 %vm472_vm1, %v3043_v11  ;;  %2979 = vmatmul.msk.bf16.gmra.mxu3 %vm472_vm1, %v3043_v11 }
 0x15e   :  { %v1410_v14 = vpop.f32.mrf.mxu2  ;;  %v1739_v15 = vpop.f32.mrf.mxu3 }
 0x15f   :  { %2100 = vst [vmem:[%s5093_s2 + $0x350] sm:$0xff] %v1410_v14  ;;  %v754_v16 = vpop.f32.mrf.mxu0  ;;  %v1083_v17 = vpop.f32.mrf.mxu1 }
 0x160   :  { %2101 = vst [vmem:[%s5093_s2 + $0x358] sm:$0xff] %v1739_v15 }
 0x161   :  { %2102 = vst [vmem:[%s5093_s2 + $0x360] sm:$0xff] %v754_v16 }
 0x162   :  { %2103 = vst [vmem:[%s5093_s2 + $0x368] sm:$0xff] %v1083_v17 }
 0x166   :  { %v1412_v18 = vpop.f32.mrf.mxu2  ;;  %v1741_v19 = vpop.f32.mrf.mxu3 }
 0x167   :  { %2104 = vst [vmem:[%s5093_s2 + $0x370] sm:$0xff] %v1412_v18  ;;  %v757_v21 = vpop.f32.mrf.mxu0  ;;  %v1086_v22 = vpop.f32.mrf.mxu1 }
 0x168   :  { %2105 = vst [vmem:[%s5093_s2 + $0x378] sm:$0xff] %v1741_v19  ;;  %v3051_v19 = vld [vmem:[%s5092_s0 + $0xe8] sm:$0xff] }
 0x169   :  { %2106 = vst [vmem:[%s5093_s2 + $0x380] sm:$0xff] %v757_v21 }
 0x16a   :  { %2107 = vst [vmem:[%s5093_s2 + $0x388] sm:$0xff] %v1086_v22  ;;  %2788 = vmatmul.msk.bf16.gmra.mxu0 %vm472_vm1, %v3044_v20  ;;  %2852 = vmatmul.msk.bf16.gmra.mxu1 %vm472_vm1, %v3044_v20 }
 0x16b   :  { %2916 = vmatmul.msk.bf16.gmra.mxu2 %vm472_vm1, %v3044_v20  ;;  %2980 = vmatmul.msk.bf16.gmra.mxu3 %vm472_vm1, %v3044_v20 }
 0x16e   :  { %v1415_v23 = vpop.f32.mrf.mxu2  ;;  %v1744_v24 = vpop.f32.mrf.mxu3 }
 0x16f   :  { %2108 = vst [vmem:[%s5093_s2 + $0x390] sm:$0xff] %v1415_v23  ;;  %v759_v25 = vpop.f32.mrf.mxu0  ;;  %v1088_v26 = vpop.f32.mrf.mxu1 }
 0x170   :  { %2109 = vst [vmem:[%s5093_s2 + $0x398] sm:$0xff] %v1744_v24 }
 0x171   :  { %2110 = vst [vmem:[%s5093_s2 + $0x3a0] sm:$0xff] %v759_v25 }
 0x172   :  { %2111 = vst [vmem:[%s5093_s2 + $0x3a8] sm:$0xff] %v1088_v26 }
 0x176   :  { %v1417_v27 = vpop.f32.mrf.mxu2  ;;  %v1746_v28 = vpop.f32.mrf.mxu3 }
 0x177   :  { %2112 = vst [vmem:[%s5093_s2 + $0x3b0] sm:$0xff] %v1417_v27  ;;  %v762_v30 = vpop.f32.mrf.mxu0  ;;  %v1091_v31 = vpop.f32.mrf.mxu1 }
 0x178   :  { %2113 = vst [vmem:[%s5093_s2 + $0x3b8] sm:$0xff] %v1746_v28  ;;  %v3052_v28 = vld [vmem:[%s5092_s0 + $0xf0] sm:$0xff] }
 0x179   :  { %2114 = vst [vmem:[%s5093_s2 + $0x3c0] sm:$0xff] %v762_v30 }
 0x17a   :  { %2115 = vst [vmem:[%s5093_s2 + $0x3c8] sm:$0xff] %v1091_v31  ;;  %2789 = vmatmul.msk.bf16.gmra.mxu0 %vm472_vm1, %v3045_v29  ;;  %2853 = vmatmul.msk.bf16.gmra.mxu1 %vm472_vm1, %v3045_v29 }
 0x17b   :  { %2917 = vmatmul.msk.bf16.gmra.mxu2 %vm472_vm1, %v3045_v29  ;;  %2981 = vmatmul.msk.bf16.gmra.mxu3 %vm472_vm1, %v3045_v29 }
 0x17e   :  { %v1420_v32 = vpop.f32.mrf.mxu2  ;;  %v1749_v33 = vpop.f32.mrf.mxu3 }
 0x17f   :  { %2116 = vst [vmem:[%s5093_s2 + $0x3d0] sm:$0xff] %v1420_v32  ;;  %v764_v34 = vpop.f32.mrf.mxu0  ;;  %v1093_v35 = vpop.f32.mrf.mxu1 }
 0x180   :  { %2117 = vst [vmem:[%s5093_s2 + $0x3d8] sm:$0xff] %v1749_v33 }
 0x181   :  { %2118 = vst [vmem:[%s5093_s2 + $0x3e0] sm:$0xff] %v764_v34 }
 0x182   :  { %2119 = vst [vmem:[%s5093_s2 + $0x3e8] sm:$0xff] %v1093_v35 }
 0x186   :  { %v1422_v36 = vpop.f32.mrf.mxu2  ;;  %v1751_v37 = vpop.f32.mrf.mxu3 }
 0x187   :  { %2120 = vst [vmem:[%s5093_s2 + $0x3f0] sm:$0xff] %v1422_v36  ;;  %v767_v39 = vpop.f32.mrf.mxu0  ;;  %v1096_v40 = vpop.f32.mrf.mxu1 }
 0x188   :  { %2121 = vst [vmem:[%s5093_s2 + $0x3f8] sm:$0xff] %v1751_v37  ;;  %v3053_v37 = vld [vmem:[%s5092_s0 + $0xf8] sm:$0xff] }
 0x189   :  { %2122 = vst [vmem:[%s5093_s2 + $0x400] sm:$0xff] %v767_v39 }
 0x18a   :  { %2123 = vst [vmem:[%s5093_s2 + $0x408] sm:$0xff] %v1096_v40  ;;  %2790 = vmatmul.msk.bf16.gmra.mxu0 %vm472_vm1, %v3046_v38  ;;  %2854 = vmatmul.msk.bf16.gmra.mxu1 %vm472_vm1, %v3046_v38 }
 0x18b   :  { %2918 = vmatmul.msk.bf16.gmra.mxu2 %vm472_vm1, %v3046_v38  ;;  %2982 = vmatmul.msk.bf16.gmra.mxu3 %vm472_vm1, %v3046_v38 }
 0x18e   :  { %v1425_v41 = vpop.f32.mrf.mxu2  ;;  %v1754_v42 = vpop.f32.mrf.mxu3 }
 0x18f   :  { %2124 = vst [vmem:[%s5093_s2 + $0x410] sm:$0xff] %v1425_v41  ;;  %v769_v43 = vpop.f32.mrf.mxu0  ;;  %v1098_v44 = vpop.f32.mrf.mxu1 }
 0x190   :  { %2125 = vst [vmem:[%s5093_s2 + $0x418] sm:$0xff] %v1754_v42 }
 0x191   :  { %2126 = vst [vmem:[%s5093_s2 + $0x420] sm:$0xff] %v769_v43 }
 0x192   :  { %2127 = vst [vmem:[%s5093_s2 + $0x428] sm:$0xff] %v1098_v44 }
 0x196   :  { %v1427_v45 = vpop.f32.mrf.mxu2  ;;  %v1756_v46 = vpop.f32.mrf.mxu3 }
 0x197   :  { %2128 = vst [vmem:[%s5093_s2 + $0x430] sm:$0xff] %v1427_v45  ;;  %v772_v48 = vpop.f32.mrf.mxu0  ;;  %v1101_v49 = vpop.f32.mrf.mxu1 }
 0x198   :  { %2129 = vst [vmem:[%s5093_s2 + $0x438] sm:$0xff] %v1756_v46  ;;  %v3054_v46 = vld [vmem:[%s5092_s0 + $0x100] sm:$0xff] }
 0x199   :  { %2130 = vst [vmem:[%s5093_s2 + $0x440] sm:$0xff] %v772_v48 }
 0x19a   :  { %2131 = vst [vmem:[%s5093_s2 + $0x448] sm:$0xff] %v1101_v49  ;;  %2791 = vmatmul.msk.bf16.gmra.mxu0 %vm472_vm1, %v3047_v47  ;;  %2855 = vmatmul.msk.bf16.gmra.mxu1 %vm472_vm1, %v3047_v47 }
 0x19b   :  { %2919 = vmatmul.msk.bf16.gmra.mxu2 %vm472_vm1, %v3047_v47  ;;  %2983 = vmatmul.msk.bf16.gmra.mxu3 %vm472_vm1, %v3047_v47 }
 0x19e   :  { %v1430_v50 = vpop.f32.mrf.mxu2  ;;  %v1759_v51 = vpop.f32.mrf.mxu3 }
 0x19f   :  { %2132 = vst [vmem:[%s5093_s2 + $0x450] sm:$0xff] %v1430_v50  ;;  %v774_v52 = vpop.f32.mrf.mxu0  ;;  %v1103_v53 = vpop.f32.mrf.mxu1 }
 0x1a0   :  { %2133 = vst [vmem:[%s5093_s2 + $0x458] sm:$0xff] %v1759_v51 }
 0x1a1   :  { %2134 = vst [vmem:[%s5093_s2 + $0x460] sm:$0xff] %v774_v52 }
 0x1a2   :  { %2135 = vst [vmem:[%s5093_s2 + $0x468] sm:$0xff] %v1103_v53 }
 0x1a6   :  { %v1432_v54 = vpop.f32.mrf.mxu2  ;;  %v1761_v55 = vpop.f32.mrf.mxu3 }
 0x1a7   :  { %2136 = vst [vmem:[%s5093_s2 + $0x470] sm:$0xff] %v1432_v54  ;;  %v777_v57 = vpop.f32.mrf.mxu0  ;;  %v1106_v58 = vpop.f32.mrf.mxu1 }
 0x1a8   :  { %2137 = vst [vmem:[%s5093_s2 + $0x478] sm:$0xff] %v1761_v55  ;;  %v3055_v55 = vld [vmem:[%s5092_s0 + $0x108] sm:$0xff] }
 0x1a9   :  { %2138 = vst [vmem:[%s5093_s2 + $0x480] sm:$0xff] %v777_v57 }
 0x1aa   :  { %2139 = vst [vmem:[%s5093_s2 + $0x488] sm:$0xff] %v1106_v58  ;;  %2792 = vmatmul.msk.bf16.gmra.mxu0 %vm472_vm1, %v3048_v56  ;;  %2856 = vmatmul.msk.bf16.gmra.mxu1 %vm472_vm1, %v3048_v56 }
 0x1ab   :  { %2920 = vmatmul.msk.bf16.gmra.mxu2 %vm472_vm1, %v3048_v56  ;;  %2984 = vmatmul.msk.bf16.gmra.mxu3 %vm472_vm1, %v3048_v56 }
 0x1ae   :  { %v1435_v59 = vpop.f32.mrf.mxu2  ;;  %v1764_v60 = vpop.f32.mrf.mxu3 }
 0x1af   :  { %2140 = vst [vmem:[%s5093_s2 + $0x490] sm:$0xff] %v1435_v59  ;;  %v779_v61 = vpop.f32.mrf.mxu0  ;;  %v1108_v62 = vpop.f32.mrf.mxu1 }
 0x1b0   :  { %2141 = vst [vmem:[%s5093_s2 + $0x498] sm:$0xff] %v1764_v60 }
 0x1b1   :  { %2142 = vst [vmem:[%s5093_s2 + $0x4a0] sm:$0xff] %v779_v61 }
 0x1b2   :  { %2143 = vst [vmem:[%s5093_s2 + $0x4a8] sm:$0xff] %v1108_v62 }
 0x1b6   :  { %v1437_v63 = vpop.f32.mrf.mxu2  ;;  %v1766_v0 = vpop.f32.mrf.mxu3 }
 0x1b7   :  { %2144 = vst [vmem:[%s5093_s2 + $0x4b0] sm:$0xff] %v1437_v63  ;;  %v782_v2 = vpop.f32.mrf.mxu0  ;;  %v1111_v3 = vpop.f32.mrf.mxu1 }
 0x1b8   :  { %2145 = vst [vmem:[%s5093_s2 + $0x4b8] sm:$0xff] %v1766_v0  ;;  %v3056_v0 = vld [vmem:[%s5092_s0 + $0x110] sm:$0xff] }
 0x1b9   :  { %2146 = vst [vmem:[%s5093_s2 + $0x4c0] sm:$0xff] %v782_v2 }
 0x1ba   :  { %2147 = vst [vmem:[%s5093_s2 + $0x4c8] sm:$0xff] %v1111_v3  ;;  %2793 = vmatmul.msk.bf16.gmra.mxu0 %vm472_vm1, %v3049_v1  ;;  %2857 = vmatmul.msk.bf16.gmra.mxu1 %vm472_vm1, %v3049_v1 }
 0x1bb   :  { %2921 = vmatmul.msk.bf16.gmra.mxu2 %vm472_vm1, %v3049_v1  ;;  %2985 = vmatmul.msk.bf16.gmra.mxu3 %vm472_vm1, %v3049_v1 }
 0x1be   :  { %v1440_v4 = vpop.f32.mrf.mxu2  ;;  %v1769_v5 = vpop.f32.mrf.mxu3 }
 0x1bf   :  { %2148 = vst [vmem:[%s5093_s2 + $0x4d0] sm:$0xff] %v1440_v4  ;;  %v784_v6 = vpop.f32.mrf.mxu0  ;;  %v1113_v7 = vpop.f32.mrf.mxu1 }
 0x1c0   :  { %2149 = vst [vmem:[%s5093_s2 + $0x4d8] sm:$0xff] %v1769_v5 }
 0x1c1   :  { %2150 = vst [vmem:[%s5093_s2 + $0x4e0] sm:$0xff] %v784_v6 }
 0x1c2   :  { %2151 = vst [vmem:[%s5093_s2 + $0x4e8] sm:$0xff] %v1113_v7 }
 0x1c6   :  { %v1442_v8 = vpop.f32.mrf.mxu2  ;;  %v1771_v9 = vpop.f32.mrf.mxu3 }
 0x1c7   :  { %2152 = vst [vmem:[%s5093_s2 + $0x4f0] sm:$0xff] %v1442_v8  ;;  %v787_v11 = vpop.f32.mrf.mxu0  ;;  %v1116_v12 = vpop.f32.mrf.mxu1 }
 0x1c8   :  { %2153 = vst [vmem:[%s5093_s2 + $0x4f8] sm:$0xff] %v1771_v9  ;;  %v3057_v9 = vld [vmem:[%s5092_s0 + $0x118] sm:$0xff] }
 0x1c9   :  { %2154 = vst [vmem:[%s5093_s2 + $0x500] sm:$0xff] %v787_v11 }
 0x1ca   :  { %2155 = vst [vmem:[%s5093_s2 + $0x508] sm:$0xff] %v1116_v12  ;;  %2794 = vmatmul.msk.bf16.gmra.mxu0 %vm472_vm1, %v3050_v10  ;;  %2858 = vmatmul.msk.bf16.gmra.mxu1 %vm472_vm1, %v3050_v10 }
 0x1cb   :  { %2922 = vmatmul.msk.bf16.gmra.mxu2 %vm472_vm1, %v3050_v10  ;;  %2986 = vmatmul.msk.bf16.gmra.mxu3 %vm472_vm1, %v3050_v10 }
 0x1ce   :  { %v1445_v13 = vpop.f32.mrf.mxu2  ;;  %v1774_v14 = vpop.f32.mrf.mxu3 }
 0x1cf   :  { %2156 = vst [vmem:[%s5093_s2 + $0x510] sm:$0xff] %v1445_v13  ;;  %v789_v15 = vpop.f32.mrf.mxu0  ;;  %v1118_v16 = vpop.f32.mrf.mxu1 }
 0x1d0   :  { %2157 = vst [vmem:[%s5093_s2 + $0x518] sm:$0xff] %v1774_v14 }
 0x1d1   :  { %2158 = vst [vmem:[%s5093_s2 + $0x520] sm:$0xff] %v789_v15 }
 0x1d2   :  { %2159 = vst [vmem:[%s5093_s2 + $0x528] sm:$0xff] %v1118_v16 }
 0x1d6   :  { %v1447_v17 = vpop.f32.mrf.mxu2  ;;  %v1776_v18 = vpop.f32.mrf.mxu3 }
 0x1d7   :  { %2160 = vst [vmem:[%s5093_s2 + $0x530] sm:$0xff] %v1447_v17  ;;  %v792_v20 = vpop.f32.mrf.mxu0  ;;  %v1121_v21 = vpop.f32.mrf.mxu1 }
 0x1d8   :  { %2161 = vst [vmem:[%s5093_s2 + $0x538] sm:$0xff] %v1776_v18  ;;  %v3058_v18 = vld [vmem:[%s5092_s0 + $0x120] sm:$0xff] }
 0x1d9   :  { %2162 = vst [vmem:[%s5093_s2 + $0x540] sm:$0xff] %v792_v20 }
 0x1da   :  { %2163 = vst [vmem:[%s5093_s2 + $0x548] sm:$0xff] %v1121_v21  ;;  %2795 = vmatmul.msk.bf16.gmra.mxu0 %vm472_vm1, %v3051_v19  ;;  %2859 = vmatmul.msk.bf16.gmra.mxu1 %vm472_vm1, %v3051_v19 }
 0x1db   :  { %2923 = vmatmul.msk.bf16.gmra.mxu2 %vm472_vm1, %v3051_v19  ;;  %2987 = vmatmul.msk.bf16.gmra.mxu3 %vm472_vm1, %v3051_v19 }
 0x1de   :  { %v1450_v22 = vpop.f32.mrf.mxu2  ;;  %v1779_v23 = vpop.f32.mrf.mxu3 }
 0x1df   :  { %2164 = vst [vmem:[%s5093_s2 + $0x550] sm:$0xff] %v1450_v22  ;;  %v794_v24 = vpop.f32.mrf.mxu0  ;;  %v1123_v25 = vpop.f32.mrf.mxu1 }
 0x1e0   :  { %2165 = vst [vmem:[%s5093_s2 + $0x558] sm:$0xff] %v1779_v23 }
 0x1e1   :  { %2166 = vst [vmem:[%s5093_s2 + $0x560] sm:$0xff] %v794_v24 }
 0x1e2   :  { %2167 = vst [vmem:[%s5093_s2 + $0x568] sm:$0xff] %v1123_v25 }
 0x1e6   :  { %v1452_v26 = vpop.f32.mrf.mxu2  ;;  %v1781_v27 = vpop.f32.mrf.mxu3 }
 0x1e7   :  { %2168 = vst [vmem:[%s5093_s2 + $0x570] sm:$0xff] %v1452_v26  ;;  %v797_v29 = vpop.f32.mrf.mxu0  ;;  %v1126_v30 = vpop.f32.mrf.mxu1 }
 0x1e8   :  { %2169 = vst [vmem:[%s5093_s2 + $0x578] sm:$0xff] %v1781_v27  ;;  %v3059_v27 = vld [vmem:[%s5092_s0 + $0x128] sm:$0xff] }
 0x1e9   :  { %2170 = vst [vmem:[%s5093_s2 + $0x580] sm:$0xff] %v797_v29 }
 0x1ea   :  { %2171 = vst [vmem:[%s5093_s2 + $0x588] sm:$0xff] %v1126_v30  ;;  %2796 = vmatmul.msk.bf16.gmra.mxu0 %vm472_vm1, %v3052_v28  ;;  %2860 = vmatmul.msk.bf16.gmra.mxu1 %vm472_vm1, %v3052_v28 }
 0x1eb   :  { %2924 = vmatmul.msk.bf16.gmra.mxu2 %vm472_vm1, %v3052_v28  ;;  %2988 = vmatmul.msk.bf16.gmra.mxu3 %vm472_vm1, %v3052_v28 }
 0x1ee   :  { %v1455_v31 = vpop.f32.mrf.mxu2  ;;  %v1784_v32 = vpop.f32.mrf.mxu3 }
 0x1ef   :  { %2172 = vst [vmem:[%s5093_s2 + $0x590] sm:$0xff] %v1455_v31  ;;  %v799_v33 = vpop.f32.mrf.mxu0  ;;  %v1128_v34 = vpop.f32.mrf.mxu1 }
 0x1f0   :  { %2173 = vst [vmem:[%s5093_s2 + $0x598] sm:$0xff] %v1784_v32 }
 0x1f1   :  { %2174 = vst [vmem:[%s5093_s2 + $0x5a0] sm:$0xff] %v799_v33 }
 0x1f2   :  { %2175 = vst [vmem:[%s5093_s2 + $0x5a8] sm:$0xff] %v1128_v34 }
 0x1f6   :  { %v1457_v35 = vpop.f32.mrf.mxu2  ;;  %v1786_v36 = vpop.f32.mrf.mxu3 }
 0x1f7   :  { %2176 = vst [vmem:[%s5093_s2 + $0x5b0] sm:$0xff] %v1457_v35  ;;  %v802_v38 = vpop.f32.mrf.mxu0  ;;  %v1131_v39 = vpop.f32.mrf.mxu1 }
 0x1f8   :  { %2177 = vst [vmem:[%s5093_s2 + $0x5b8] sm:$0xff] %v1786_v36  ;;  %v3060_v36 = vld [vmem:[%s5092_s0 + $0x130] sm:$0xff] }
 0x1f9   :  { %2178 = vst [vmem:[%s5093_s2 + $0x5c0] sm:$0xff] %v802_v38 }
 0x1fa   :  { %2179 = vst [vmem:[%s5093_s2 + $0x5c8] sm:$0xff] %v1131_v39  ;;  %2797 = vmatmul.msk.bf16.gmra.mxu0 %vm472_vm1, %v3053_v37  ;;  %2861 = vmatmul.msk.bf16.gmra.mxu1 %vm472_vm1, %v3053_v37 }
 0x1fb   :  { %2925 = vmatmul.msk.bf16.gmra.mxu2 %vm472_vm1, %v3053_v37  ;;  %2989 = vmatmul.msk.bf16.gmra.mxu3 %vm472_vm1, %v3053_v37 }
 0x1fe   :  { %v1460_v40 = vpop.f32.mrf.mxu2  ;;  %v1789_v41 = vpop.f32.mrf.mxu3 }
 0x1ff   :  { %2180 = vst [vmem:[%s5093_s2 + $0x5d0] sm:$0xff] %v1460_v40  ;;  %v804_v42 = vpop.f32.mrf.mxu0  ;;  %v1133_v43 = vpop.f32.mrf.mxu1 }
 0x200   :  { %2181 = vst [vmem:[%s5093_s2 + $0x5d8] sm:$0xff] %v1789_v41 }
 0x201   :  { %2182 = vst [vmem:[%s5093_s2 + $0x5e0] sm:$0xff] %v804_v42 }
 0x202   :  { %2183 = vst [vmem:[%s5093_s2 + $0x5e8] sm:$0xff] %v1133_v43 }
 0x206   :  { %v1462_v44 = vpop.f32.mrf.mxu2  ;;  %v1791_v45 = vpop.f32.mrf.mxu3 }
 0x207   :  { %2184 = vst [vmem:[%s5093_s2 + $0x5f0] sm:$0xff] %v1462_v44  ;;  %v807_v47 = vpop.f32.mrf.mxu0  ;;  %v1136_v48 = vpop.f32.mrf.mxu1 }
 0x208   :  { %2185 = vst [vmem:[%s5093_s2 + $0x5f8] sm:$0xff] %v1791_v45  ;;  %v3061_v45 = vld [vmem:[%s5092_s0 + $0x138] sm:$0xff] }
 0x209   :  { %2186 = vst [vmem:[%s5093_s2 + $0x600] sm:$0xff] %v807_v47 }
 0x20a   :  { %2187 = vst [vmem:[%s5093_s2 + $0x608] sm:$0xff] %v1136_v48  ;;  %2798 = vmatmul.msk.bf16.gmra.mxu0 %vm472_vm1, %v3054_v46  ;;  %2862 = vmatmul.msk.bf16.gmra.mxu1 %vm472_vm1, %v3054_v46 }
 0x20b   :  { %2926 = vmatmul.msk.bf16.gmra.mxu2 %vm472_vm1, %v3054_v46  ;;  %2990 = vmatmul.msk.bf16.gmra.mxu3 %vm472_vm1, %v3054_v46 }
 0x20e   :  { %v1465_v49 = vpop.f32.mrf.mxu2  ;;  %v1794_v50 = vpop.f32.mrf.mxu3 }
 0x20f   :  { %2188 = vst [vmem:[%s5093_s2 + $0x610] sm:$0xff] %v1465_v49  ;;  %v809_v51 = vpop.f32.mrf.mxu0  ;;  %v1138_v52 = vpop.f32.mrf.mxu1 }
 0x210   :  { %2189 = vst [vmem:[%s5093_s2 + $0x618] sm:$0xff] %v1794_v50 }
 0x211   :  { %2190 = vst [vmem:[%s5093_s2 + $0x620] sm:$0xff] %v809_v51 }
 0x212   :  { %2191 = vst [vmem:[%s5093_s2 + $0x628] sm:$0xff] %v1138_v52 }
 0x216   :  { %v1467_v53 = vpop.f32.mrf.mxu2  ;;  %v1796_v54 = vpop.f32.mrf.mxu3 }
 0x217   :  { %2192 = vst [vmem:[%s5093_s2 + $0x630] sm:$0xff] %v1467_v53  ;;  %v812_v56 = vpop.f32.mrf.mxu0  ;;  %v1141_v57 = vpop.f32.mrf.mxu1 }
 0x218   :  { %2193 = vst [vmem:[%s5093_s2 + $0x638] sm:$0xff] %v1796_v54  ;;  %v3062_v54 = vld [vmem:[%s5092_s0 + $0x140] sm:$0xff] }
 0x219   :  { %2194 = vst [vmem:[%s5093_s2 + $0x640] sm:$0xff] %v812_v56 }
 0x21a   :  { %2195 = vst [vmem:[%s5093_s2 + $0x648] sm:$0xff] %v1141_v57  ;;  %2799 = vmatmul.msk.bf16.gmra.mxu0 %vm472_vm1, %v3055_v55  ;;  %2863 = vmatmul.msk.bf16.gmra.mxu1 %vm472_vm1, %v3055_v55 }
 0x21b   :  { %2927 = vmatmul.msk.bf16.gmra.mxu2 %vm472_vm1, %v3055_v55  ;;  %2991 = vmatmul.msk.bf16.gmra.mxu3 %vm472_vm1, %v3055_v55 }
 0x21e   :  { %v1470_v58 = vpop.f32.mrf.mxu2  ;;  %v1799_v59 = vpop.f32.mrf.mxu3 }
 0x21f   :  { %2196 = vst [vmem:[%s5093_s2 + $0x650] sm:$0xff] %v1470_v58  ;;  %v814_v60 = vpop.f32.mrf.mxu0  ;;  %v1143_v61 = vpop.f32.mrf.mxu1 }
 0x220   :  { %2197 = vst [vmem:[%s5093_s2 + $0x658] sm:$0xff] %v1799_v59 }
 0x221   :  { %2198 = vst [vmem:[%s5093_s2 + $0x660] sm:$0xff] %v814_v60 }
 0x222   :  { %2199 = vst [vmem:[%s5093_s2 + $0x668] sm:$0xff] %v1143_v61 }
 0x226   :  { %v1472_v62 = vpop.f32.mrf.mxu2  ;;  %v1801_v63 = vpop.f32.mrf.mxu3 }
 0x227   :  { %2200 = vst [vmem:[%s5093_s2 + $0x670] sm:$0xff] %v1472_v62  ;;  %v817_v1 = vpop.f32.mrf.mxu0  ;;  %v1146_v2 = vpop.f32.mrf.mxu1 }
 0x228   :  { %2201 = vst [vmem:[%s5093_s2 + $0x678] sm:$0xff] %v1801_v63  ;;  %v3063_v63 = vld [vmem:[%s5092_s0 + $0x148] sm:$0xff] }
 0x229   :  { %2202 = vst [vmem:[%s5093_s2 + $0x680] sm:$0xff] %v817_v1 }
 0x22a   :  { %2203 = vst [vmem:[%s5093_s2 + $0x688] sm:$0xff] %v1146_v2  ;;  %2800 = vmatmul.msk.bf16.gmra.mxu0 %vm472_vm1, %v3056_v0  ;;  %2864 = vmatmul.msk.bf16.gmra.mxu1 %vm472_vm1, %v3056_v0 }
 0x22b   :  { %2928 = vmatmul.msk.bf16.gmra.mxu2 %vm472_vm1, %v3056_v0  ;;  %2992 = vmatmul.msk.bf16.gmra.mxu3 %vm472_vm1, %v3056_v0 }
 0x22e   :  { %v1475_v3 = vpop.f32.mrf.mxu2  ;;  %v1804_v4 = vpop.f32.mrf.mxu3 }
 0x22f   :  { %2204 = vst [vmem:[%s5093_s2 + $0x690] sm:$0xff] %v1475_v3  ;;  %v819_v5 = vpop.f32.mrf.mxu0  ;;  %v1148_v6 = vpop.f32.mrf.mxu1 }
 0x230   :  { %2205 = vst [vmem:[%s5093_s2 + $0x698] sm:$0xff] %v1804_v4 }
 0x231   :  { %2206 = vst [vmem:[%s5093_s2 + $0x6a0] sm:$0xff] %v819_v5 }
 0x232   :  { %2207 = vst [vmem:[%s5093_s2 + $0x6a8] sm:$0xff] %v1148_v6 }
 0x236   :  { %v1477_v7 = vpop.f32.mrf.mxu2  ;;  %v1806_v8 = vpop.f32.mrf.mxu3 }
 0x237   :  { %2208 = vst [vmem:[%s5093_s2 + $0x6b0] sm:$0xff] %v1477_v7  ;;  %v822_v10 = vpop.f32.mrf.mxu0  ;;  %v1151_v11 = vpop.f32.mrf.mxu1 }
 0x238   :  { %2209 = vst [vmem:[%s5093_s2 + $0x6b8] sm:$0xff] %v1806_v8  ;;  %v3064_v8 = vld [vmem:[%s5092_s0 + $0x150] sm:$0xff] }
 0x239   :  { %2210 = vst [vmem:[%s5093_s2 + $0x6c0] sm:$0xff] %v822_v10 }
 0x23a   :  { %2211 = vst [vmem:[%s5093_s2 + $0x6c8] sm:$0xff] %v1151_v11  ;;  %2801 = vmatmul.msk.bf16.gmra.mxu0 %vm472_vm1, %v3057_v9  ;;  %2865 = vmatmul.msk.bf16.gmra.mxu1 %vm472_vm1, %v3057_v9 }
 0x23b   :  { %2929 = vmatmul.msk.bf16.gmra.mxu2 %vm472_vm1, %v3057_v9  ;;  %2993 = vmatmul.msk.bf16.gmra.mxu3 %vm472_vm1, %v3057_v9 }
 0x23e   :  { %v1480_v12 = vpop.f32.mrf.mxu2  ;;  %v1809_v13 = vpop.f32.mrf.mxu3 }
 0x23f   :  { %2212 = vst [vmem:[%s5093_s2 + $0x6d0] sm:$0xff] %v1480_v12  ;;  %v824_v14 = vpop.f32.mrf.mxu0  ;;  %v1153_v15 = vpop.f32.mrf.mxu1 }
 0x240   :  { %2213 = vst [vmem:[%s5093_s2 + $0x6d8] sm:$0xff] %v1809_v13 }
 0x241   :  { %2214 = vst [vmem:[%s5093_s2 + $0x6e0] sm:$0xff] %v824_v14 }
 0x242   :  { %2215 = vst [vmem:[%s5093_s2 + $0x6e8] sm:$0xff] %v1153_v15 }
 0x246   :  { %v1482_v16 = vpop.f32.mrf.mxu2  ;;  %v1811_v17 = vpop.f32.mrf.mxu3 }
 0x247   :  { %2216 = vst [vmem:[%s5093_s2 + $0x6f0] sm:$0xff] %v1482_v16  ;;  %v827_v19 = vpop.f32.mrf.mxu0  ;;  %v1156_v20 = vpop.f32.mrf.mxu1 }
 0x248   :  { %2217 = vst [vmem:[%s5093_s2 + $0x6f8] sm:$0xff] %v1811_v17  ;;  %v3065_v17 = vld [vmem:[%s5092_s0 + $0x158] sm:$0xff] }
 0x249   :  { %2218 = vst [vmem:[%s5093_s2 + $0x700] sm:$0xff] %v827_v19 }
 0x24a   :  { %2219 = vst [vmem:[%s5093_s2 + $0x708] sm:$0xff] %v1156_v20  ;;  %2802 = vmatmul.msk.bf16.gmra.mxu0 %vm472_vm1, %v3058_v18  ;;  %2866 = vmatmul.msk.bf16.gmra.mxu1 %vm472_vm1, %v3058_v18 }
 0x24b   :  { %2930 = vmatmul.msk.bf16.gmra.mxu2 %vm472_vm1, %v3058_v18  ;;  %2994 = vmatmul.msk.bf16.gmra.mxu3 %vm472_vm1, %v3058_v18 }
 0x24e   :  { %v1485_v21 = vpop.f32.mrf.mxu2  ;;  %v1814_v22 = vpop.f32.mrf.mxu3 }
 0x24f   :  { %2220 = vst [vmem:[%s5093_s2 + $0x710] sm:$0xff] %v1485_v21  ;;  %v829_v23 = vpop.f32.mrf.mxu0  ;;  %v1158_v24 = vpop.f32.mrf.mxu1 }
 0x250   :  { %2221 = vst [vmem:[%s5093_s2 + $0x718] sm:$0xff] %v1814_v22 }
 0x251   :  { %2222 = vst [vmem:[%s5093_s2 + $0x720] sm:$0xff] %v829_v23 }
 0x252   :  { %2223 = vst [vmem:[%s5093_s2 + $0x728] sm:$0xff] %v1158_v24 }
 0x256   :  { %v1487_v25 = vpop.f32.mrf.mxu2  ;;  %v1816_v26 = vpop.f32.mrf.mxu3 }
 0x257   :  { %2224 = vst [vmem:[%s5093_s2 + $0x730] sm:$0xff] %v1487_v25  ;;  %v832_v28 = vpop.f32.mrf.mxu0  ;;  %v1161_v29 = vpop.f32.mrf.mxu1 }
 0x258   :  { %2225 = vst [vmem:[%s5093_s2 + $0x738] sm:$0xff] %v1816_v26  ;;  %v3066_v26 = vld [vmem:[%s5092_s0 + $0x160] sm:$0xff] }
 0x259   :  { %2226 = vst [vmem:[%s5093_s2 + $0x740] sm:$0xff] %v832_v28 }
 0x25a   :  { %2227 = vst [vmem:[%s5093_s2 + $0x748] sm:$0xff] %v1161_v29  ;;  %2803 = vmatmul.msk.bf16.gmra.mxu0 %vm472_vm1, %v3059_v27  ;;  %2867 = vmatmul.msk.bf16.gmra.mxu1 %vm472_vm1, %v3059_v27 }
 0x25b   :  { %2931 = vmatmul.msk.bf16.gmra.mxu2 %vm472_vm1, %v3059_v27  ;;  %2995 = vmatmul.msk.bf16.gmra.mxu3 %vm472_vm1, %v3059_v27 }
 0x25e   :  { %v1490_v30 = vpop.f32.mrf.mxu2  ;;  %v1819_v31 = vpop.f32.mrf.mxu3 }
 0x25f   :  { %2228 = vst [vmem:[%s5093_s2 + $0x750] sm:$0xff] %v1490_v30  ;;  %v834_v32 = vpop.f32.mrf.mxu0  ;;  %v1163_v33 = vpop.f32.mrf.mxu1 }
 0x260   :  { %2229 = vst [vmem:[%s5093_s2 + $0x758] sm:$0xff] %v1819_v31 }
 0x261   :  { %2230 = vst [vmem:[%s5093_s2 + $0x760] sm:$0xff] %v834_v32 }
 0x262   :  { %2231 = vst [vmem:[%s5093_s2 + $0x768] sm:$0xff] %v1163_v33 }
 0x266   :  { %v1492_v34 = vpop.f32.mrf.mxu2  ;;  %v1821_v35 = vpop.f32.mrf.mxu3 }
 0x267   :  { %2232 = vst [vmem:[%s5093_s2 + $0x770] sm:$0xff] %v1492_v34  ;;  %v837_v37 = vpop.f32.mrf.mxu0  ;;  %v1166_v38 = vpop.f32.mrf.mxu1 }
 0x268   :  { %2233 = vst [vmem:[%s5093_s2 + $0x778] sm:$0xff] %v1821_v35  ;;  %v3067_v35 = vld [vmem:[%s5092_s0 + $0x168] sm:$0xff] }
 0x269   :  { %2234 = vst [vmem:[%s5093_s2 + $0x780] sm:$0xff] %v837_v37 }
 0x26a   :  { %2235 = vst [vmem:[%s5093_s2 + $0x788] sm:$0xff] %v1166_v38  ;;  %2804 = vmatmul.msk.bf16.gmra.mxu0 %vm472_vm1, %v3060_v36  ;;  %2868 = vmatmul.msk.bf16.gmra.mxu1 %vm472_vm1, %v3060_v36 }
 0x26b   :  { %2932 = vmatmul.msk.bf16.gmra.mxu2 %vm472_vm1, %v3060_v36  ;;  %2996 = vmatmul.msk.bf16.gmra.mxu3 %vm472_vm1, %v3060_v36 }
 0x26e   :  { %v1495_v39 = vpop.f32.mrf.mxu2  ;;  %v1824_v40 = vpop.f32.mrf.mxu3 }
 0x26f   :  { %2236 = vst [vmem:[%s5093_s2 + $0x790] sm:$0xff] %v1495_v39  ;;  %v839_v41 = vpop.f32.mrf.mxu0  ;;  %v1168_v42 = vpop.f32.mrf.mxu1 }
 0x270   :  { %2237 = vst [vmem:[%s5093_s2 + $0x798] sm:$0xff] %v1824_v40 }
 0x271   :  { %2238 = vst [vmem:[%s5093_s2 + $0x7a0] sm:$0xff] %v839_v41 }
 0x272   :  { %2239 = vst [vmem:[%s5093_s2 + $0x7a8] sm:$0xff] %v1168_v42 }
 0x276   :  { %v1497_v43 = vpop.f32.mrf.mxu2  ;;  %v1826_v44 = vpop.f32.mrf.mxu3 }
 0x277   :  { %2240 = vst [vmem:[%s5093_s2 + $0x7b0] sm:$0xff] %v1497_v43  ;;  %v842_v46 = vpop.f32.mrf.mxu0  ;;  %v1171_v47 = vpop.f32.mrf.mxu1 }
 0x278   :  { %2241 = vst [vmem:[%s5093_s2 + $0x7b8] sm:$0xff] %v1826_v44  ;;  %v3068_v44 = vld [vmem:[%s5092_s0 + $0x170] sm:$0xff] }
 0x279   :  { %2242 = vst [vmem:[%s5093_s2 + $0x7c0] sm:$0xff] %v842_v46 }
 0x27a   :  { %2243 = vst [vmem:[%s5093_s2 + $0x7c8] sm:$0xff] %v1171_v47  ;;  %2805 = vmatmul.msk.bf16.gmra.mxu0 %vm472_vm1, %v3061_v45  ;;  %2869 = vmatmul.msk.bf16.gmra.mxu1 %vm472_vm1, %v3061_v45 }
 0x27b   :  { %2933 = vmatmul.msk.bf16.gmra.mxu2 %vm472_vm1, %v3061_v45  ;;  %2997 = vmatmul.msk.bf16.gmra.mxu3 %vm472_vm1, %v3061_v45 }
 0x27e   :  { %v1500_v48 = vpop.f32.mrf.mxu2  ;;  %v1829_v49 = vpop.f32.mrf.mxu3 }
 0x27f   :  { %2244 = vst [vmem:[%s5093_s2 + $0x7d0] sm:$0xff] %v1500_v48  ;;  %v844_v50 = vpop.f32.mrf.mxu0  ;;  %v1173_v51 = vpop.f32.mrf.mxu1 }
 0x280   :  { %2245 = vst [vmem:[%s5093_s2 + $0x7d8] sm:$0xff] %v1829_v49 }
 0x281   :  { %2246 = vst [vmem:[%s5093_s2 + $0x7e0] sm:$0xff] %v844_v50 }
 0x282   :  { %2247 = vst [vmem:[%s5093_s2 + $0x7e8] sm:$0xff] %v1173_v51 }
 0x286   :  { %v1502_v52 = vpop.f32.mrf.mxu2  ;;  %v1831_v53 = vpop.f32.mrf.mxu3 }
 0x287   :  { %2248 = vst [vmem:[%s5093_s2 + $0x7f0] sm:$0xff] %v1502_v52  ;;  %v847_v55 = vpop.f32.mrf.mxu0  ;;  %v1176_v56 = vpop.f32.mrf.mxu1 }
 0x288   :  { %2249 = vst [vmem:[%s5093_s2 + $0x7f8] sm:$0xff] %v1831_v53  ;;  %v3069_v53 = vld [vmem:[%s5092_s0 + $0x178] sm:$0xff] }
 0x289   :  { %2250 = vst [vmem:[%s5093_s2 + $0x800] sm:$0xff] %v847_v55 }
 0x28a   :  { %2251 = vst [vmem:[%s5093_s2 + $0x808] sm:$0xff] %v1176_v56  ;;  %2806 = vmatmul.msk.bf16.gmra.mxu0 %vm472_vm1, %v3062_v54  ;;  %2870 = vmatmul.msk.bf16.gmra.mxu1 %vm472_vm1, %v3062_v54 }
 0x28b   :  { %2934 = vmatmul.msk.bf16.gmra.mxu2 %vm472_vm1, %v3062_v54  ;;  %2998 = vmatmul.msk.bf16.gmra.mxu3 %vm472_vm1, %v3062_v54 }
 0x28e   :  { %v1505_v57 = vpop.f32.mrf.mxu2  ;;  %v1834_v58 = vpop.f32.mrf.mxu3 }
 0x28f   :  { %2252 = vst [vmem:[%s5093_s2 + $0x810] sm:$0xff] %v1505_v57  ;;  %v849_v59 = vpop.f32.mrf.mxu0  ;;  %v1178_v60 = vpop.f32.mrf.mxu1 }
 0x290   :  { %2253 = vst [vmem:[%s5093_s2 + $0x818] sm:$0xff] %v1834_v58 }
 0x291   :  { %2254 = vst [vmem:[%s5093_s2 + $0x820] sm:$0xff] %v849_v59 }
 0x292   :  { %2255 = vst [vmem:[%s5093_s2 + $0x828] sm:$0xff] %v1178_v60 }
 0x296   :  { %v1507_v61 = vpop.f32.mrf.mxu2  ;;  %v1836_v62 = vpop.f32.mrf.mxu3 }
 0x297   :  { %2256 = vst [vmem:[%s5093_s2 + $0x830] sm:$0xff] %v1507_v61  ;;  %v852_v0 = vpop.f32.mrf.mxu0  ;;  %v1181_v1 = vpop.f32.mrf.mxu1 }
 0x298   :  { %2257 = vst [vmem:[%s5093_s2 + $0x838] sm:$0xff] %v1836_v62  ;;  %v3070_v62 = vld [vmem:[%s5092_s0 + $0x180] sm:$0xff] }
 0x299   :  { %2258 = vst [vmem:[%s5093_s2 + $0x840] sm:$0xff] %v852_v0 }
 0x29a   :  { %2259 = vst [vmem:[%s5093_s2 + $0x848] sm:$0xff] %v1181_v1  ;;  %2807 = vmatmul.msk.bf16.gmra.mxu0 %vm472_vm1, %v3063_v63  ;;  %2871 = vmatmul.msk.bf16.gmra.mxu1 %vm472_vm1, %v3063_v63 }
 0x29b   :  { %2935 = vmatmul.msk.bf16.gmra.mxu2 %vm472_vm1, %v3063_v63  ;;  %2999 = vmatmul.msk.bf16.gmra.mxu3 %vm472_vm1, %v3063_v63 }
 0x29e   :  { %v1510_v2 = vpop.f32.mrf.mxu2  ;;  %v1839_v3 = vpop.f32.mrf.mxu3 }
 0x29f   :  { %2260 = vst [vmem:[%s5093_s2 + $0x850] sm:$0xff] %v1510_v2  ;;  %v854_v4 = vpop.f32.mrf.mxu0  ;;  %v1183_v5 = vpop.f32.mrf.mxu1 }
 0x2a0   :  { %2261 = vst [vmem:[%s5093_s2 + $0x858] sm:$0xff] %v1839_v3 }
 0x2a1   :  { %2262 = vst [vmem:[%s5093_s2 + $0x860] sm:$0xff] %v854_v4 }
 0x2a2   :  { %2263 = vst [vmem:[%s5093_s2 + $0x868] sm:$0xff] %v1183_v5 }
 0x2a6   :  { %v1512_v6 = vpop.f32.mrf.mxu2  ;;  %v1841_v7 = vpop.f32.mrf.mxu3 }
 0x2a7   :  { %2264 = vst [vmem:[%s5093_s2 + $0x870] sm:$0xff] %v1512_v6  ;;  %v857_v9 = vpop.f32.mrf.mxu0  ;;  %v1186_v10 = vpop.f32.mrf.mxu1 }
 0x2a8   :  { %2265 = vst [vmem:[%s5093_s2 + $0x878] sm:$0xff] %v1841_v7  ;;  %v3071_v7 = vld [vmem:[%s5092_s0 + $0x188] sm:$0xff] }
 0x2a9   :  { %2266 = vst [vmem:[%s5093_s2 + $0x880] sm:$0xff] %v857_v9 }
 0x2aa   :  { %2267 = vst [vmem:[%s5093_s2 + $0x888] sm:$0xff] %v1186_v10  ;;  %2808 = vmatmul.msk.bf16.gmra.mxu0 %vm472_vm1, %v3064_v8  ;;  %2872 = vmatmul.msk.bf16.gmra.mxu1 %vm472_vm1, %v3064_v8 }
 0x2ab   :  { %2936 = vmatmul.msk.bf16.gmra.mxu2 %vm472_vm1, %v3064_v8  ;;  %3000 = vmatmul.msk.bf16.gmra.mxu3 %vm472_vm1, %v3064_v8 }
 0x2ae   :  { %v1515_v11 = vpop.f32.mrf.mxu2  ;;  %v1844_v12 = vpop.f32.mrf.mxu3 }
 0x2af   :  { %2268 = vst [vmem:[%s5093_s2 + $0x890] sm:$0xff] %v1515_v11  ;;  %v859_v13 = vpop.f32.mrf.mxu0  ;;  %v1188_v14 = vpop.f32.mrf.mxu1 }
 0x2b0   :  { %2269 = vst [vmem:[%s5093_s2 + $0x898] sm:$0xff] %v1844_v12 }
 0x2b1   :  { %2270 = vst [vmem:[%s5093_s2 + $0x8a0] sm:$0xff] %v859_v13 }
 0x2b2   :  { %2271 = vst [vmem:[%s5093_s2 + $0x8a8] sm:$0xff] %v1188_v14 }
 0x2b6   :  { %v1517_v15 = vpop.f32.mrf.mxu2  ;;  %v1846_v16 = vpop.f32.mrf.mxu3 }
 0x2b7   :  { %2272 = vst [vmem:[%s5093_s2 + $0x8b0] sm:$0xff] %v1517_v15  ;;  %v862_v18 = vpop.f32.mrf.mxu0  ;;  %v1191_v19 = vpop.f32.mrf.mxu1 }
 0x2b8   :  { %2273 = vst [vmem:[%s5093_s2 + $0x8b8] sm:$0xff] %v1846_v16  ;;  %v3072_v16 = vld [vmem:[%s5092_s0 + $0x190] sm:$0xff] }
 0x2b9   :  { %2274 = vst [vmem:[%s5093_s2 + $0x8c0] sm:$0xff] %v862_v18 }
 0x2ba   :  { %2275 = vst [vmem:[%s5093_s2 + $0x8c8] sm:$0xff] %v1191_v19  ;;  %2809 = vmatmul.msk.bf16.gmra.mxu0 %vm472_vm1, %v3065_v17  ;;  %2873 = vmatmul.msk.bf16.gmra.mxu1 %vm472_vm1, %v3065_v17 }
 0x2bb   :  { %2937 = vmatmul.msk.bf16.gmra.mxu2 %vm472_vm1, %v3065_v17  ;;  %3001 = vmatmul.msk.bf16.gmra.mxu3 %vm472_vm1, %v3065_v17 }
 0x2be   :  { %v1520_v20 = vpop.f32.mrf.mxu2  ;;  %v1849_v21 = vpop.f32.mrf.mxu3 }
 0x2bf   :  { %2276 = vst [vmem:[%s5093_s2 + $0x8d0] sm:$0xff] %v1520_v20  ;;  %v864_v22 = vpop.f32.mrf.mxu0  ;;  %v1193_v23 = vpop.f32.mrf.mxu1 }
 0x2c0   :  { %2277 = vst [vmem:[%s5093_s2 + $0x8d8] sm:$0xff] %v1849_v21 }
 0x2c1   :  { %2278 = vst [vmem:[%s5093_s2 + $0x8e0] sm:$0xff] %v864_v22 }
 0x2c2   :  { %2279 = vst [vmem:[%s5093_s2 + $0x8e8] sm:$0xff] %v1193_v23 }
 0x2c6   :  { %v1522_v24 = vpop.f32.mrf.mxu2  ;;  %v1851_v25 = vpop.f32.mrf.mxu3 }
 0x2c7   :  { %2280 = vst [vmem:[%s5093_s2 + $0x8f0] sm:$0xff] %v1522_v24  ;;  %v867_v27 = vpop.f32.mrf.mxu0  ;;  %v1196_v28 = vpop.f32.mrf.mxu1 }
 0x2c8   :  { %2281 = vst [vmem:[%s5093_s2 + $0x8f8] sm:$0xff] %v1851_v25  ;;  %v3073_v25 = vld [vmem:[%s5092_s0 + $0x198] sm:$0xff] }
 0x2c9   :  { %2282 = vst [vmem:[%s5093_s2 + $0x900] sm:$0xff] %v867_v27 }
 0x2ca   :  { %2283 = vst [vmem:[%s5093_s2 + $0x908] sm:$0xff] %v1196_v28  ;;  %2810 = vmatmul.msk.bf16.gmra.mxu0 %vm472_vm1, %v3066_v26  ;;  %2874 = vmatmul.msk.bf16.gmra.mxu1 %vm472_vm1, %v3066_v26 }
 0x2cb   :  { %2938 = vmatmul.msk.bf16.gmra.mxu2 %vm472_vm1, %v3066_v26  ;;  %3002 = vmatmul.msk.bf16.gmra.mxu3 %vm472_vm1, %v3066_v26 }
 0x2ce   :  { %v1525_v29 = vpop.f32.mrf.mxu2  ;;  %v1854_v30 = vpop.f32.mrf.mxu3 }
 0x2cf   :  { %2284 = vst [vmem:[%s5093_s2 + $0x910] sm:$0xff] %v1525_v29  ;;  %v869_v31 = vpop.f32.mrf.mxu0  ;;  %v1198_v32 = vpop.f32.mrf.mxu1 }
 0x2d0   :  { %2285 = vst [vmem:[%s5093_s2 + $0x918] sm:$0xff] %v1854_v30 }
 0x2d1   :  { %2286 = vst [vmem:[%s5093_s2 + $0x920] sm:$0xff] %v869_v31 }
 0x2d2   :  { %2287 = vst [vmem:[%s5093_s2 + $0x928] sm:$0xff] %v1198_v32 }
 0x2d6   :  { %v1527_v33 = vpop.f32.mrf.mxu2  ;;  %v1856_v34 = vpop.f32.mrf.mxu3 }
 0x2d7   :  { %2288 = vst [vmem:[%s5093_s2 + $0x930] sm:$0xff] %v1527_v33  ;;  %v872_v36 = vpop.f32.mrf.mxu0  ;;  %v1201_v37 = vpop.f32.mrf.mxu1 }
 0x2d8   :  { %2289 = vst [vmem:[%s5093_s2 + $0x938] sm:$0xff] %v1856_v34  ;;  %v3074_v34 = vld [vmem:[%s5092_s0 + $0x1a0] sm:$0xff] }
 0x2d9   :  { %2290 = vst [vmem:[%s5093_s2 + $0x940] sm:$0xff] %v872_v36 }
 0x2da   :  { %2291 = vst [vmem:[%s5093_s2 + $0x948] sm:$0xff] %v1201_v37  ;;  %2811 = vmatmul.msk.bf16.gmra.mxu0 %vm472_vm1, %v3067_v35  ;;  %2875 = vmatmul.msk.bf16.gmra.mxu1 %vm472_vm1, %v3067_v35 }
 0x2db   :  { %2939 = vmatmul.msk.bf16.gmra.mxu2 %vm472_vm1, %v3067_v35  ;;  %3003 = vmatmul.msk.bf16.gmra.mxu3 %vm472_vm1, %v3067_v35 }
 0x2de   :  { %v1530_v38 = vpop.f32.mrf.mxu2  ;;  %v1859_v39 = vpop.f32.mrf.mxu3 }
 0x2df   :  { %2292 = vst [vmem:[%s5093_s2 + $0x950] sm:$0xff] %v1530_v38  ;;  %v874_v40 = vpop.f32.mrf.mxu0  ;;  %v1203_v41 = vpop.f32.mrf.mxu1 }
 0x2e0   :  { %2293 = vst [vmem:[%s5093_s2 + $0x958] sm:$0xff] %v1859_v39 }
 0x2e1   :  { %2294 = vst [vmem:[%s5093_s2 + $0x960] sm:$0xff] %v874_v40 }
 0x2e2   :  { %2295 = vst [vmem:[%s5093_s2 + $0x968] sm:$0xff] %v1203_v41 }
 0x2e6   :  { %v1532_v42 = vpop.f32.mrf.mxu2  ;;  %v1861_v43 = vpop.f32.mrf.mxu3 }
 0x2e7   :  { %2296 = vst [vmem:[%s5093_s2 + $0x970] sm:$0xff] %v1532_v42  ;;  %v877_v45 = vpop.f32.mrf.mxu0  ;;  %v1206_v46 = vpop.f32.mrf.mxu1 }
 0x2e8   :  { %2297 = vst [vmem:[%s5093_s2 + $0x978] sm:$0xff] %v1861_v43  ;;  %v3075_v43 = vld [vmem:[%s5092_s0 + $0x1a8] sm:$0xff] }
 0x2e9   :  { %2298 = vst [vmem:[%s5093_s2 + $0x980] sm:$0xff] %v877_v45 }
 0x2ea   :  { %2299 = vst [vmem:[%s5093_s2 + $0x988] sm:$0xff] %v1206_v46  ;;  %2812 = vmatmul.msk.bf16.gmra.mxu0 %vm472_vm1, %v3068_v44  ;;  %2876 = vmatmul.msk.bf16.gmra.mxu1 %vm472_vm1, %v3068_v44 }
 0x2eb   :  { %2940 = vmatmul.msk.bf16.gmra.mxu2 %vm472_vm1, %v3068_v44  ;;  %3004 = vmatmul.msk.bf16.gmra.mxu3 %vm472_vm1, %v3068_v44 }
 0x2ee   :  { %v1535_v47 = vpop.f32.mrf.mxu2  ;;  %v1864_v48 = vpop.f32.mrf.mxu3 }
 0x2ef   :  { %2300 = vst [vmem:[%s5093_s2 + $0x990] sm:$0xff] %v1535_v47  ;;  %v879_v49 = vpop.f32.mrf.mxu0  ;;  %v1208_v50 = vpop.f32.mrf.mxu1 }
 0x2f0   :  { %2301 = vst [vmem:[%s5093_s2 + $0x998] sm:$0xff] %v1864_v48 }
 0x2f1   :  { %2302 = vst [vmem:[%s5093_s2 + $0x9a0] sm:$0xff] %v879_v49 }
 0x2f2   :  { %2303 = vst [vmem:[%s5093_s2 + $0x9a8] sm:$0xff] %v1208_v50 }
 0x2f6   :  { %v1537_v51 = vpop.f32.mrf.mxu2  ;;  %v1866_v52 = vpop.f32.mrf.mxu3 }
 0x2f7   :  { %2304 = vst [vmem:[%s5093_s2 + $0x9b0] sm:$0xff] %v1537_v51  ;;  %v882_v54 = vpop.f32.mrf.mxu0  ;;  %v1211_v55 = vpop.f32.mrf.mxu1 }
 0x2f8   :  { %2305 = vst [vmem:[%s5093_s2 + $0x9b8] sm:$0xff] %v1866_v52  ;;  %v3076_v52 = vld [vmem:[%s5092_s0 + $0x1b0] sm:$0xff] }
 0x2f9   :  { %2306 = vst [vmem:[%s5093_s2 + $0x9c0] sm:$0xff] %v882_v54 }
 0x2fa   :  { %2307 = vst [vmem:[%s5093_s2 + $0x9c8] sm:$0xff] %v1211_v55  ;;  %2813 = vmatmul.msk.bf16.gmra.mxu0 %vm472_vm1, %v3069_v53  ;;  %2877 = vmatmul.msk.bf16.gmra.mxu1 %vm472_vm1, %v3069_v53 }
 0x2fb   :  { %2941 = vmatmul.msk.bf16.gmra.mxu2 %vm472_vm1, %v3069_v53  ;;  %3005 = vmatmul.msk.bf16.gmra.mxu3 %vm472_vm1, %v3069_v53 }
 0x2fe   :  { %v1540_v56 = vpop.f32.mrf.mxu2  ;;  %v1869_v57 = vpop.f32.mrf.mxu3 }
 0x2ff   :  { %2308 = vst [vmem:[%s5093_s2 + $0x9d0] sm:$0xff] %v1540_v56  ;;  %v884_v58 = vpop.f32.mrf.mxu0  ;;  %v1213_v59 = vpop.f32.mrf.mxu1 }
 0x300   :  { %2309 = vst [vmem:[%s5093_s2 + $0x9d8] sm:$0xff] %v1869_v57 }
 0x301   :  { %2310 = vst [vmem:[%s5093_s2 + $0x9e0] sm:$0xff] %v884_v58 }
 0x302   :  { %2311 = vst [vmem:[%s5093_s2 + $0x9e8] sm:$0xff] %v1213_v59 }
 0x306   :  { %v1542_v60 = vpop.f32.mrf.mxu2  ;;  %v1871_v61 = vpop.f32.mrf.mxu3 }
 0x307   :  { %2312 = vst [vmem:[%s5093_s2 + $0x9f0] sm:$0xff] %v1542_v60  ;;  %v887_v63 = vpop.f32.mrf.mxu0  ;;  %v1216_v0 = vpop.f32.mrf.mxu1 }
 0x308   :  { %2313 = vst [vmem:[%s5093_s2 + $0x9f8] sm:$0xff] %v1871_v61  ;;  %v3077_v61 = vld [vmem:[%s5092_s0 + $0x1b8] sm:$0xff] }
 0x309   :  { %2314 = vst [vmem:[%s5093_s2 + $0xa00] sm:$0xff] %v887_v63 }
 0x30a   :  { %2315 = vst [vmem:[%s5093_s2 + $0xa08] sm:$0xff] %v1216_v0  ;;  %2814 = vmatmul.msk.bf16.gmra.mxu0 %vm472_vm1, %v3070_v62  ;;  %2878 = vmatmul.msk.bf16.gmra.mxu1 %vm472_vm1, %v3070_v62 }
 0x30b   :  { %2942 = vmatmul.msk.bf16.gmra.mxu2 %vm472_vm1, %v3070_v62  ;;  %3006 = vmatmul.msk.bf16.gmra.mxu3 %vm472_vm1, %v3070_v62 }
 0x30e   :  { %v1545_v1 = vpop.f32.mrf.mxu2  ;;  %v1874_v2 = vpop.f32.mrf.mxu3 }
 0x30f   :  { %2316 = vst [vmem:[%s5093_s2 + $0xa10] sm:$0xff] %v1545_v1  ;;  %v889_v3 = vpop.f32.mrf.mxu0  ;;  %v1218_v4 = vpop.f32.mrf.mxu1 }
 0x310   :  { %2317 = vst [vmem:[%s5093_s2 + $0xa18] sm:$0xff] %v1874_v2 }
 0x311   :  { %2318 = vst [vmem:[%s5093_s2 + $0xa20] sm:$0xff] %v889_v3 }
 0x312   :  { %2319 = vst [vmem:[%s5093_s2 + $0xa28] sm:$0xff] %v1218_v4 }
 0x316   :  { %v1547_v5 = vpop.f32.mrf.mxu2  ;;  %v1876_v6 = vpop.f32.mrf.mxu3 }
 0x317   :  { %2320 = vst [vmem:[%s5093_s2 + $0xa30] sm:$0xff] %v1547_v5  ;;  %v892_v8 = vpop.f32.mrf.mxu0  ;;  %v1221_v9 = vpop.f32.mrf.mxu1 }
 0x318   :  { %2321 = vst [vmem:[%s5093_s2 + $0xa38] sm:$0xff] %v1876_v6  ;;  %v3078_v6 = vld [vmem:[%s5092_s0 + $0x1c0] sm:$0xff] }
 0x319   :  { %2322 = vst [vmem:[%s5093_s2 + $0xa40] sm:$0xff] %v892_v8 }
 0x31a   :  { %2323 = vst [vmem:[%s5093_s2 + $0xa48] sm:$0xff] %v1221_v9  ;;  %2815 = vmatmul.msk.bf16.gmra.mxu0 %vm472_vm1, %v3071_v7  ;;  %2879 = vmatmul.msk.bf16.gmra.mxu1 %vm472_vm1, %v3071_v7 }
 0x31b   :  { %2943 = vmatmul.msk.bf16.gmra.mxu2 %vm472_vm1, %v3071_v7  ;;  %3007 = vmatmul.msk.bf16.gmra.mxu3 %vm472_vm1, %v3071_v7 }
 0x31e   :  { %v1550_v10 = vpop.f32.mrf.mxu2  ;;  %v1879_v11 = vpop.f32.mrf.mxu3 }
 0x31f   :  { %2324 = vst [vmem:[%s5093_s2 + $0xa50] sm:$0xff] %v1550_v10  ;;  %v894_v12 = vpop.f32.mrf.mxu0  ;;  %v1223_v13 = vpop.f32.mrf.mxu1 }
 0x320   :  { %2325 = vst [vmem:[%s5093_s2 + $0xa58] sm:$0xff] %v1879_v11 }
 0x321   :  { %2326 = vst [vmem:[%s5093_s2 + $0xa60] sm:$0xff] %v894_v12 }
 0x322   :  { %2327 = vst [vmem:[%s5093_s2 + $0xa68] sm:$0xff] %v1223_v13 }
 0x326   :  { %v1552_v14 = vpop.f32.mrf.mxu2  ;;  %v1881_v15 = vpop.f32.mrf.mxu3 }
 0x327   :  { %2328 = vst [vmem:[%s5093_s2 + $0xa70] sm:$0xff] %v1552_v14  ;;  %v897_v17 = vpop.f32.mrf.mxu0  ;;  %v1226_v18 = vpop.f32.mrf.mxu1 }
 0x328   :  { %2329 = vst [vmem:[%s5093_s2 + $0xa78] sm:$0xff] %v1881_v15  ;;  %v3079_v15 = vld [vmem:[%s5092_s0 + $0x1c8] sm:$0xff] }
 0x329   :  { %2330 = vst [vmem:[%s5093_s2 + $0xa80] sm:$0xff] %v897_v17 }
 0x32a   :  { %2331 = vst [vmem:[%s5093_s2 + $0xa88] sm:$0xff] %v1226_v18  ;;  %2816 = vmatmul.msk.bf16.gmra.mxu0 %vm472_vm1, %v3072_v16  ;;  %2880 = vmatmul.msk.bf16.gmra.mxu1 %vm472_vm1, %v3072_v16 }
 0x32b   :  { %2944 = vmatmul.msk.bf16.gmra.mxu2 %vm472_vm1, %v3072_v16  ;;  %3008 = vmatmul.msk.bf16.gmra.mxu3 %vm472_vm1, %v3072_v16 }
 0x32e   :  { %v1555_v19 = vpop.f32.mrf.mxu2  ;;  %v1884_v20 = vpop.f32.mrf.mxu3 }
 0x32f   :  { %2332 = vst [vmem:[%s5093_s2 + $0xa90] sm:$0xff] %v1555_v19  ;;  %v899_v21 = vpop.f32.mrf.mxu0  ;;  %v1228_v22 = vpop.f32.mrf.mxu1 }
 0x330   :  { %2333 = vst [vmem:[%s5093_s2 + $0xa98] sm:$0xff] %v1884_v20 }
 0x331   :  { %2334 = vst [vmem:[%s5093_s2 + $0xaa0] sm:$0xff] %v899_v21 }
 0x332   :  { %2335 = vst [vmem:[%s5093_s2 + $0xaa8] sm:$0xff] %v1228_v22 }
 0x336   :  { %v1557_v23 = vpop.f32.mrf.mxu2  ;;  %v1886_v24 = vpop.f32.mrf.mxu3 }
 0x337   :  { %2336 = vst [vmem:[%s5093_s2 + $0xab0] sm:$0xff] %v1557_v23  ;;  %v902_v26 = vpop.f32.mrf.mxu0  ;;  %v1231_v27 = vpop.f32.mrf.mxu1 }
 0x338   :  { %2337 = vst [vmem:[%s5093_s2 + $0xab8] sm:$0xff] %v1886_v24  ;;  %v3080_v24 = vld [vmem:[%s5092_s0 + $0x1d0] sm:$0xff] }
 0x339   :  { %2338 = vst [vmem:[%s5093_s2 + $0xac0] sm:$0xff] %v902_v26 }
 0x33a   :  { %2339 = vst [vmem:[%s5093_s2 + $0xac8] sm:$0xff] %v1231_v27  ;;  %2817 = vmatmul.msk.bf16.gmra.mxu0 %vm472_vm1, %v3073_v25  ;;  %2881 = vmatmul.msk.bf16.gmra.mxu1 %vm472_vm1, %v3073_v25 }
 0x33b   :  { %2945 = vmatmul.msk.bf16.gmra.mxu2 %vm472_vm1, %v3073_v25  ;;  %3009 = vmatmul.msk.bf16.gmra.mxu3 %vm472_vm1, %v3073_v25 }
 0x33e   :  { %v1560_v28 = vpop.f32.mrf.mxu2  ;;  %v1889_v29 = vpop.f32.mrf.mxu3 }
 0x33f   :  { %2340 = vst [vmem:[%s5093_s2 + $0xad0] sm:$0xff] %v1560_v28  ;;  %v904_v30 = vpop.f32.mrf.mxu0  ;;  %v1233_v31 = vpop.f32.mrf.mxu1 }
 0x340   :  { %2341 = vst [vmem:[%s5093_s2 + $0xad8] sm:$0xff] %v1889_v29 }
 0x341   :  { %2342 = vst [vmem:[%s5093_s2 + $0xae0] sm:$0xff] %v904_v30 }
 0x342   :  { %2343 = vst [vmem:[%s5093_s2 + $0xae8] sm:$0xff] %v1233_v31 }
 0x346   :  { %v1562_v32 = vpop.f32.mrf.mxu2  ;;  %v1891_v33 = vpop.f32.mrf.mxu3 }
 0x347   :  { %2344 = vst [vmem:[%s5093_s2 + $0xaf0] sm:$0xff] %v1562_v32  ;;  %v907_v35 = vpop.f32.mrf.mxu0  ;;  %v1236_v36 = vpop.f32.mrf.mxu1 }
 0x348   :  { %2345 = vst [vmem:[%s5093_s2 + $0xaf8] sm:$0xff] %v1891_v33  ;;  %v3081_v33 = vld [vmem:[%s5092_s0 + $0x1d8] sm:$0xff] }
 0x349   :  { %2346 = vst [vmem:[%s5093_s2 + $0xb00] sm:$0xff] %v907_v35 }
 0x34a   :  { %2347 = vst [vmem:[%s5093_s2 + $0xb08] sm:$0xff] %v1236_v36  ;;  %2818 = vmatmul.msk.bf16.gmra.mxu0 %vm472_vm1, %v3074_v34  ;;  %2882 = vmatmul.msk.bf16.gmra.mxu1 %vm472_vm1, %v3074_v34 }
 0x34b   :  { %2946 = vmatmul.msk.bf16.gmra.mxu2 %vm472_vm1, %v3074_v34  ;;  %3010 = vmatmul.msk.bf16.gmra.mxu3 %vm472_vm1, %v3074_v34 }
 0x34e   :  { %v1565_v37 = vpop.f32.mrf.mxu2  ;;  %v1894_v38 = vpop.f32.mrf.mxu3 }
 0x34f   :  { %2348 = vst [vmem:[%s5093_s2 + $0xb10] sm:$0xff] %v1565_v37  ;;  %v909_v39 = vpop.f32.mrf.mxu0  ;;  %v1238_v40 = vpop.f32.mrf.mxu1 }
 0x350   :  { %2349 = vst [vmem:[%s5093_s2 + $0xb18] sm:$0xff] %v1894_v38 }
 0x351   :  { %2350 = vst [vmem:[%s5093_s2 + $0xb20] sm:$0xff] %v909_v39 }
 0x352   :  { %2351 = vst [vmem:[%s5093_s2 + $0xb28] sm:$0xff] %v1238_v40 }
 0x356   :  { %v1567_v41 = vpop.f32.mrf.mxu2  ;;  %v1896_v42 = vpop.f32.mrf.mxu3 }
 0x357   :  { %2352 = vst [vmem:[%s5093_s2 + $0xb30] sm:$0xff] %v1567_v41  ;;  %v912_v44 = vpop.f32.mrf.mxu0  ;;  %v1241_v45 = vpop.f32.mrf.mxu1 }
 0x358   :  { %2353 = vst [vmem:[%s5093_s2 + $0xb38] sm:$0xff] %v1896_v42  ;;  %v3082_v42 = vld [vmem:[%s5092_s0 + $0x1e0] sm:$0xff] }
 0x359   :  { %2354 = vst [vmem:[%s5093_s2 + $0xb40] sm:$0xff] %v912_v44 }
 0x35a   :  { %2355 = vst [vmem:[%s5093_s2 + $0xb48] sm:$0xff] %v1241_v45  ;;  %2819 = vmatmul.msk.bf16.gmra.mxu0 %vm472_vm1, %v3075_v43  ;;  %2883 = vmatmul.msk.bf16.gmra.mxu1 %vm472_vm1, %v3075_v43 }
 0x35b   :  { %2947 = vmatmul.msk.bf16.gmra.mxu2 %vm472_vm1, %v3075_v43  ;;  %3011 = vmatmul.msk.bf16.gmra.mxu3 %vm472_vm1, %v3075_v43 }
 0x35e   :  { %v1570_v46 = vpop.f32.mrf.mxu2  ;;  %v1899_v47 = vpop.f32.mrf.mxu3 }
 0x35f   :  { %2356 = vst [vmem:[%s5093_s2 + $0xb50] sm:$0xff] %v1570_v46  ;;  %v914_v48 = vpop.f32.mrf.mxu0  ;;  %v1243_v49 = vpop.f32.mrf.mxu1 }
 0x360   :  { %2357 = vst [vmem:[%s5093_s2 + $0xb58] sm:$0xff] %v1899_v47 }
 0x361   :  { %2358 = vst [vmem:[%s5093_s2 + $0xb60] sm:$0xff] %v914_v48 }
 0x362   :  { %2359 = vst [vmem:[%s5093_s2 + $0xb68] sm:$0xff] %v1243_v49 }
 0x366   :  { %v1572_v50 = vpop.f32.mrf.mxu2  ;;  %v1901_v51 = vpop.f32.mrf.mxu3 }
 0x367   :  { %2360 = vst [vmem:[%s5093_s2 + $0xb70] sm:$0xff] %v1572_v50  ;;  %v917_v53 = vpop.f32.mrf.mxu0  ;;  %v1246_v54 = vpop.f32.mrf.mxu1 }
 0x368   :  { %2361 = vst [vmem:[%s5093_s2 + $0xb78] sm:$0xff] %v1901_v51  ;;  %v3083_v51 = vld [vmem:[%s5092_s0 + $0x1e8] sm:$0xff] }
 0x369   :  { %2362 = vst [vmem:[%s5093_s2 + $0xb80] sm:$0xff] %v917_v53 }
 0x36a   :  { %2363 = vst [vmem:[%s5093_s2 + $0xb88] sm:$0xff] %v1246_v54  ;;  %2820 = vmatmul.msk.bf16.gmra.mxu0 %vm472_vm1, %v3076_v52  ;;  %2884 = vmatmul.msk.bf16.gmra.mxu1 %vm472_vm1, %v3076_v52 }
 0x36b   :  { %2948 = vmatmul.msk.bf16.gmra.mxu2 %vm472_vm1, %v3076_v52  ;;  %3012 = vmatmul.msk.bf16.gmra.mxu3 %vm472_vm1, %v3076_v52 }
 0x36e   :  { %v1575_v55 = vpop.f32.mrf.mxu2  ;;  %v1904_v56 = vpop.f32.mrf.mxu3 }
 0x36f   :  { %2364 = vst [vmem:[%s5093_s2 + $0xb90] sm:$0xff] %v1575_v55  ;;  %v919_v57 = vpop.f32.mrf.mxu0  ;;  %v1248_v58 = vpop.f32.mrf.mxu1 }
 0x370   :  { %2365 = vst [vmem:[%s5093_s2 + $0xb98] sm:$0xff] %v1904_v56 }
 0x371   :  { %2366 = vst [vmem:[%s5093_s2 + $0xba0] sm:$0xff] %v919_v57 }
 0x372   :  { %2367 = vst [vmem:[%s5093_s2 + $0xba8] sm:$0xff] %v1248_v58 }
 0x376   :  { %v1577_v59 = vpop.f32.mrf.mxu2  ;;  %v1906_v60 = vpop.f32.mrf.mxu3 }
 0x377   :  { %2368 = vst [vmem:[%s5093_s2 + $0xbb0] sm:$0xff] %v1577_v59  ;;  %v922_v62 = vpop.f32.mrf.mxu0  ;;  %v1251_v63 = vpop.f32.mrf.mxu1 }
 0x378   :  { %2369 = vst [vmem:[%s5093_s2 + $0xbb8] sm:$0xff] %v1906_v60  ;;  %v3084_v60 = vld [vmem:[%s5092_s0 + $0x1f0] sm:$0xff] }
 0x379   :  { %2370 = vst [vmem:[%s5093_s2 + $0xbc0] sm:$0xff] %v922_v62 }
 0x37a   :  { %2371 = vst [vmem:[%s5093_s2 + $0xbc8] sm:$0xff] %v1251_v63  ;;  %2821 = vmatmul.msk.bf16.gmra.mxu0 %vm472_vm1, %v3077_v61  ;;  %2885 = vmatmul.msk.bf16.gmra.mxu1 %vm472_vm1, %v3077_v61 }
 0x37b   :  { %2949 = vmatmul.msk.bf16.gmra.mxu2 %vm472_vm1, %v3077_v61  ;;  %3013 = vmatmul.msk.bf16.gmra.mxu3 %vm472_vm1, %v3077_v61 }
 0x37e   :  { %v1580_v0 = vpop.f32.mrf.mxu2  ;;  %v1909_v1 = vpop.f32.mrf.mxu3 }
 0x37f   :  { %2372 = vst [vmem:[%s5093_s2 + $0xbd0] sm:$0xff] %v1580_v0  ;;  %v924_v2 = vpop.f32.mrf.mxu0  ;;  %v1253_v3 = vpop.f32.mrf.mxu1 }
 0x380   :  { %2373 = vst [vmem:[%s5093_s2 + $0xbd8] sm:$0xff] %v1909_v1 }
 0x381   :  { %2374 = vst [vmem:[%s5093_s2 + $0xbe0] sm:$0xff] %v924_v2 }
 0x382   :  { %2375 = vst [vmem:[%s5093_s2 + $0xbe8] sm:$0xff] %v1253_v3 }
 0x386   :  { %v1582_v4 = vpop.f32.mrf.mxu2  ;;  %v1911_v5 = vpop.f32.mrf.mxu3 }
 0x387   :  { %2376 = vst [vmem:[%s5093_s2 + $0xbf0] sm:$0xff] %v1582_v4  ;;  %v927_v7 = vpop.f32.mrf.mxu0  ;;  %v1256_v8 = vpop.f32.mrf.mxu1 }
 0x388   :  { %2377 = vst [vmem:[%s5093_s2 + $0xbf8] sm:$0xff] %v1911_v5  ;;  %v3085_v5 = vld [vmem:[%s5092_s0 + $0x1f8] sm:$0xff] }
 0x389   :  { %2378 = vst [vmem:[%s5093_s2 + $0xc00] sm:$0xff] %v927_v7 }
 0x38a   :  { %2379 = vst [vmem:[%s5093_s2 + $0xc08] sm:$0xff] %v1256_v8  ;;  %2822 = vmatmul.msk.bf16.gmra.mxu0 %vm472_vm1, %v3078_v6  ;;  %2886 = vmatmul.msk.bf16.gmra.mxu1 %vm472_vm1, %v3078_v6 }
 0x38b   :  { %2950 = vmatmul.msk.bf16.gmra.mxu2 %vm472_vm1, %v3078_v6  ;;  %3014 = vmatmul.msk.bf16.gmra.mxu3 %vm472_vm1, %v3078_v6 }
 0x38e   :  { %v1585_v9 = vpop.f32.mrf.mxu2  ;;  %v1914_v10 = vpop.f32.mrf.mxu3 }
 0x38f   :  { %2380 = vst [vmem:[%s5093_s2 + $0xc10] sm:$0xff] %v1585_v9  ;;  %v929_v11 = vpop.f32.mrf.mxu0  ;;  %v1258_v12 = vpop.f32.mrf.mxu1 }
 0x390   :  { %2381 = vst [vmem:[%s5093_s2 + $0xc18] sm:$0xff] %v1914_v10 }
 0x391   :  { %2382 = vst [vmem:[%s5093_s2 + $0xc20] sm:$0xff] %v929_v11 }
 0x392   :  { %2383 = vst [vmem:[%s5093_s2 + $0xc28] sm:$0xff] %v1258_v12 }
 0x396   :  { %v1587_v13 = vpop.f32.mrf.mxu2  ;;  %v1916_v14 = vpop.f32.mrf.mxu3 }
 0x397   :  { %2384 = vst [vmem:[%s5093_s2 + $0xc30] sm:$0xff] %v1587_v13  ;;  %v932_v16 = vpop.f32.mrf.mxu0  ;;  %v1261_v17 = vpop.f32.mrf.mxu1 }
 0x398   :  { %2385 = vst [vmem:[%s5093_s2 + $0xc38] sm:$0xff] %v1916_v14 }
 0x399   :  { %2386 = vst [vmem:[%s5093_s2 + $0xc40] sm:$0xff] %v932_v16 }
 0x39a   :  { %2387 = vst [vmem:[%s5093_s2 + $0xc48] sm:$0xff] %v1261_v17  ;;  %2823 = vmatmul.msk.bf16.gmra.mxu0 %vm472_vm1, %v3079_v15  ;;  %2887 = vmatmul.msk.bf16.gmra.mxu1 %vm472_vm1, %v3079_v15 }
 0x39b   :  { %2951 = vmatmul.msk.bf16.gmra.mxu2 %vm472_vm1, %v3079_v15  ;;  %3015 = vmatmul.msk.bf16.gmra.mxu3 %vm472_vm1, %v3079_v15 }
 0x39e   :  { %v1590_v18 = vpop.f32.mrf.mxu2  ;;  %v1919_v19 = vpop.f32.mrf.mxu3 }
 0x39f   :  { %2388 = vst [vmem:[%s5093_s2 + $0xc50] sm:$0xff] %v1590_v18  ;;  %v934_v20 = vpop.f32.mrf.mxu0  ;;  %v1263_v21 = vpop.f32.mrf.mxu1 }
 0x3a0   :  { %2389 = vst [vmem:[%s5093_s2 + $0xc58] sm:$0xff] %v1919_v19 }
 0x3a1   :  { %2390 = vst [vmem:[%s5093_s2 + $0xc60] sm:$0xff] %v934_v20 }
 0x3a2   :  { %2391 = vst [vmem:[%s5093_s2 + $0xc68] sm:$0xff] %v1263_v21 }
 0x3a6   :  { %v1592_v22 = vpop.f32.mrf.mxu2  ;;  %v1921_v23 = vpop.f32.mrf.mxu3 }
 0x3a7   :  { %2392 = vst [vmem:[%s5093_s2 + $0xc70] sm:$0xff] %v1592_v22  ;;  %v937_v25 = vpop.f32.mrf.mxu0  ;;  %v1266_v26 = vpop.f32.mrf.mxu1 }
 0x3a8   :  { %2393 = vst [vmem:[%s5093_s2 + $0xc78] sm:$0xff] %v1921_v23 }
 0x3a9   :  { %2394 = vst [vmem:[%s5093_s2 + $0xc80] sm:$0xff] %v937_v25 }
 0x3aa   :  { %2395 = vst [vmem:[%s5093_s2 + $0xc88] sm:$0xff] %v1266_v26  ;;  %2824 = vmatmul.msk.bf16.gmra.mxu0 %vm472_vm1, %v3080_v24  ;;  %2888 = vmatmul.msk.bf16.gmra.mxu1 %vm472_vm1, %v3080_v24 }
 0x3ab   :  { %2952 = vmatmul.msk.bf16.gmra.mxu2 %vm472_vm1, %v3080_v24  ;;  %3016 = vmatmul.msk.bf16.gmra.mxu3 %vm472_vm1, %v3080_v24 }
 0x3ae   :  { %v1595_v27 = vpop.f32.mrf.mxu2  ;;  %v1924_v28 = vpop.f32.mrf.mxu3 }
 0x3af   :  { %2396 = vst [vmem:[%s5093_s2 + $0xc90] sm:$0xff] %v1595_v27  ;;  %v939_v29 = vpop.f32.mrf.mxu0  ;;  %v1268_v30 = vpop.f32.mrf.mxu1 }
 0x3b0   :  { %2397 = vst [vmem:[%s5093_s2 + $0xc98] sm:$0xff] %v1924_v28 }
 0x3b1   :  { %2398 = vst [vmem:[%s5093_s2 + $0xca0] sm:$0xff] %v939_v29 }
 0x3b2   :  { %2399 = vst [vmem:[%s5093_s2 + $0xca8] sm:$0xff] %v1268_v30 }
 0x3b6   :  { %v1597_v31 = vpop.f32.mrf.mxu2  ;;  %v1926_v32 = vpop.f32.mrf.mxu3 }
 0x3b7   :  { %2400 = vst [vmem:[%s5093_s2 + $0xcb0] sm:$0xff] %v1597_v31  ;;  %v942_v34 = vpop.f32.mrf.mxu0  ;;  %v1271_v35 = vpop.f32.mrf.mxu1 }
 0x3b8   :  { %2401 = vst [vmem:[%s5093_s2 + $0xcb8] sm:$0xff] %v1926_v32 }
 0x3b9   :  { %2402 = vst [vmem:[%s5093_s2 + $0xcc0] sm:$0xff] %v942_v34 }
 0x3ba   :  { %2403 = vst [vmem:[%s5093_s2 + $0xcc8] sm:$0xff] %v1271_v35  ;;  %2825 = vmatmul.msk.bf16.gmra.mxu0 %vm472_vm1, %v3081_v33  ;;  %2889 = vmatmul.msk.bf16.gmra.mxu1 %vm472_vm1, %v3081_v33 }
 0x3bb   :  { %2953 = vmatmul.msk.bf16.gmra.mxu2 %vm472_vm1, %v3081_v33  ;;  %3017 = vmatmul.msk.bf16.gmra.mxu3 %vm472_vm1, %v3081_v33 }
 0x3be   :  { %v1600_v36 = vpop.f32.mrf.mxu2  ;;  %v1929_v37 = vpop.f32.mrf.mxu3 }
 0x3bf   :  { %2404 = vst [vmem:[%s5093_s2 + $0xcd0] sm:$0xff] %v1600_v36  ;;  %v944_v38 = vpop.f32.mrf.mxu0  ;;  %v1273_v39 = vpop.f32.mrf.mxu1 }
 0x3c0   :  { %2405 = vst [vmem:[%s5093_s2 + $0xcd8] sm:$0xff] %v1929_v37 }
 0x3c1   :  { %2406 = vst [vmem:[%s5093_s2 + $0xce0] sm:$0xff] %v944_v38 }
 0x3c2   :  { %2407 = vst [vmem:[%s5093_s2 + $0xce8] sm:$0xff] %v1273_v39 }
 0x3c6   :  { %v1602_v40 = vpop.f32.mrf.mxu2  ;;  %v1931_v41 = vpop.f32.mrf.mxu3 }
 0x3c7   :  { %2408 = vst [vmem:[%s5093_s2 + $0xcf0] sm:$0xff] %v1602_v40  ;;  %v947_v43 = vpop.f32.mrf.mxu0  ;;  %v1276_v44 = vpop.f32.mrf.mxu1 }
 0x3c8   :  { %2409 = vst [vmem:[%s5093_s2 + $0xcf8] sm:$0xff] %v1931_v41 }
 0x3c9   :  { %2410 = vst [vmem:[%s5093_s2 + $0xd00] sm:$0xff] %v947_v43 }
 0x3ca   :  { %2411 = vst [vmem:[%s5093_s2 + $0xd08] sm:$0xff] %v1276_v44  ;;  %2826 = vmatmul.msk.bf16.gmra.mxu0 %vm472_vm1, %v3082_v42  ;;  %2890 = vmatmul.msk.bf16.gmra.mxu1 %vm472_vm1, %v3082_v42 }
 0x3cb   :  { %2954 = vmatmul.msk.bf16.gmra.mxu2 %vm472_vm1, %v3082_v42  ;;  %3018 = vmatmul.msk.bf16.gmra.mxu3 %vm472_vm1, %v3082_v42 }
 0x3ce   :  { %v1605_v45 = vpop.f32.mrf.mxu2  ;;  %v1934_v46 = vpop.f32.mrf.mxu3 }
 0x3cf   :  { %2412 = vst [vmem:[%s5093_s2 + $0xd10] sm:$0xff] %v1605_v45  ;;  %v949_v47 = vpop.f32.mrf.mxu0  ;;  %v1278_v48 = vpop.f32.mrf.mxu1 }
 0x3d0   :  { %2413 = vst [vmem:[%s5093_s2 + $0xd18] sm:$0xff] %v1934_v46 }
 0x3d1   :  { %2414 = vst [vmem:[%s5093_s2 + $0xd20] sm:$0xff] %v949_v47 }
 0x3d2   :  { %2415 = vst [vmem:[%s5093_s2 + $0xd28] sm:$0xff] %v1278_v48 }
 0x3d6   :  { %v1607_v49 = vpop.f32.mrf.mxu2  ;;  %v1936_v50 = vpop.f32.mrf.mxu3 }
 0x3d7   :  { %2416 = vst [vmem:[%s5093_s2 + $0xd30] sm:$0xff] %v1607_v49  ;;  %v952_v52 = vpop.f32.mrf.mxu0  ;;  %v1281_v53 = vpop.f32.mrf.mxu1 }
 0x3d8   :  { %2417 = vst [vmem:[%s5093_s2 + $0xd38] sm:$0xff] %v1936_v50 }
 0x3d9   :  { %2418 = vst [vmem:[%s5093_s2 + $0xd40] sm:$0xff] %v952_v52 }
 0x3da   :  { %2419 = vst [vmem:[%s5093_s2 + $0xd48] sm:$0xff] %v1281_v53  ;;  %2827 = vmatmul.msk.bf16.gmra.mxu0 %vm472_vm1, %v3083_v51  ;;  %2891 = vmatmul.msk.bf16.gmra.mxu1 %vm472_vm1, %v3083_v51 }
 0x3db   :  { %2955 = vmatmul.msk.bf16.gmra.mxu2 %vm472_vm1, %v3083_v51  ;;  %3019 = vmatmul.msk.bf16.gmra.mxu3 %vm472_vm1, %v3083_v51 }
 0x3de   :  { %v1610_v54 = vpop.f32.mrf.mxu2  ;;  %v1939_v55 = vpop.f32.mrf.mxu3 }
 0x3df   :  { %2420 = vst [vmem:[%s5093_s2 + $0xd50] sm:$0xff] %v1610_v54  ;;  %v954_v56 = vpop.f32.mrf.mxu0  ;;  %v1283_v57 = vpop.f32.mrf.mxu1 }
 0x3e0   :  { %2421 = vst [vmem:[%s5093_s2 + $0xd58] sm:$0xff] %v1939_v55 }
 0x3e1   :  { %2422 = vst [vmem:[%s5093_s2 + $0xd60] sm:$0xff] %v954_v56 }
 0x3e2   :  { %2423 = vst [vmem:[%s5093_s2 + $0xd68] sm:$0xff] %v1283_v57 }
 0x3e6   :  { %v1612_v58 = vpop.f32.mrf.mxu2  ;;  %v1941_v59 = vpop.f32.mrf.mxu3 }
 0x3e7   :  { %2424 = vst [vmem:[%s5093_s2 + $0xd70] sm:$0xff] %v1612_v58  ;;  %v957_v61 = vpop.f32.mrf.mxu0  ;;  %v1286_v62 = vpop.f32.mrf.mxu1 }
 0x3e8   :  { %2425 = vst [vmem:[%s5093_s2 + $0xd78] sm:$0xff] %v1941_v59 }
 0x3e9   :  { %2426 = vst [vmem:[%s5093_s2 + $0xd80] sm:$0xff] %v957_v61 }
 0x3ea   :  { %2427 = vst [vmem:[%s5093_s2 + $0xd88] sm:$0xff] %v1286_v62  ;;  %2828 = vmatmul.msk.bf16.gmra.mxu0 %vm472_vm1, %v3084_v60  ;;  %2892 = vmatmul.msk.bf16.gmra.mxu1 %vm472_vm1, %v3084_v60 }
 0x3eb   :  { %2956 = vmatmul.msk.bf16.gmra.mxu2 %vm472_vm1, %v3084_v60  ;;  %3020 = vmatmul.msk.bf16.gmra.mxu3 %vm472_vm1, %v3084_v60 }
 0x3ee   :  { %v1615_v63 = vpop.f32.mrf.mxu2  ;;  %v1944_v0 = vpop.f32.mrf.mxu3 }
 0x3ef   :  { %2428 = vst [vmem:[%s5093_s2 + $0xd90] sm:$0xff] %v1615_v63  ;;  %v959_v1 = vpop.f32.mrf.mxu0  ;;  %v1288_v2 = vpop.f32.mrf.mxu1 }
 0x3f0   :  { %2429 = vst [vmem:[%s5093_s2 + $0xd98] sm:$0xff] %v1944_v0 }
 0x3f1   :  { %2430 = vst [vmem:[%s5093_s2 + $0xda0] sm:$0xff] %v959_v1 }
 0x3f2   :  { %2431 = vst [vmem:[%s5093_s2 + $0xda8] sm:$0xff] %v1288_v2 }
 0x3f6   :  { %v1617_v3 = vpop.f32.mrf.mxu2  ;;  %v1946_v4 = vpop.f32.mrf.mxu3 }
 0x3f7   :  { %2432 = vst [vmem:[%s5093_s2 + $0xdb0] sm:$0xff] %v1617_v3  ;;  %v962_v6 = vpop.f32.mrf.mxu0  ;;  %v1291_v7 = vpop.f32.mrf.mxu1 }
 0x3f8   :  { %2433 = vst [vmem:[%s5093_s2 + $0xdb8] sm:$0xff] %v1946_v4 }
 0x3f9   :  { %2434 = vst [vmem:[%s5093_s2 + $0xdc0] sm:$0xff] %v962_v6 }
 0x3fa   :  { %2435 = vst [vmem:[%s5093_s2 + $0xdc8] sm:$0xff] %v1291_v7  ;;  %2829 = vmatmul.msk.bf16.gmra.mxu0 %vm472_vm1, %v3085_v5  ;;  %2893 = vmatmul.msk.bf16.gmra.mxu1 %vm472_vm1, %v3085_v5 }
 0x3fb   :  { %2957 = vmatmul.msk.bf16.gmra.mxu2 %vm472_vm1, %v3085_v5  ;;  %3021 = vmatmul.msk.bf16.gmra.mxu3 %vm472_vm1, %v3085_v5 }
 0x3fe   :  { %v1620_v8 = vpop.f32.mrf.mxu2  ;;  %v1949_v9 = vpop.f32.mrf.mxu3 }
 0x3ff   :  { %2436 = vst [vmem:[%s5093_s2 + $0xdd0] sm:$0xff] %v1620_v8  ;;  %v964_v10 = vpop.f32.mrf.mxu0  ;;  %v1293_v11 = vpop.f32.mrf.mxu1 }
 0x400   :  { %2437 = vst [vmem:[%s5093_s2 + $0xdd8] sm:$0xff] %v1949_v9 }
 0x401   :  { %2438 = vst [vmem:[%s5093_s2 + $0xde0] sm:$0xff] %v964_v10 }
 0x402   :  { %2439 = vst [vmem:[%s5093_s2 + $0xde8] sm:$0xff] %v1293_v11 }
 0x406   :  { %v1622_v12 = vpop.f32.mrf.mxu2  ;;  %v1951_v13 = vpop.f32.mrf.mxu3 }
 0x407   :  { %2440 = vst [vmem:[%s5093_s2 + $0xdf0] sm:$0xff] %v1622_v12  ;;  %v967_v14 = vpop.f32.mrf.mxu0  ;;  %v1296_v15 = vpop.f32.mrf.mxu1 }
 0x408   :  { %2441 = vst [vmem:[%s5093_s2 + $0xdf8] sm:$0xff] %v1951_v13 }
 0x409   :  { %2442 = vst [vmem:[%s5093_s2 + $0xe00] sm:$0xff] %v967_v14 }
 0x40a   :  { %2443 = vst [vmem:[%s5093_s2 + $0xe08] sm:$0xff] %v1296_v15 }
 0x40e   :  { %v1625_v16 = vpop.f32.mrf.mxu2  ;;  %v1954_v17 = vpop.f32.mrf.mxu3 }
 0x40f   :  { %2444 = vst [vmem:[%s5093_s2 + $0xe10] sm:$0xff] %v1625_v16  ;;  %v969_v18 = vpop.f32.mrf.mxu0  ;;  %v1298_v19 = vpop.f32.mrf.mxu1 }
 0x410   :  { %2445 = vst [vmem:[%s5093_s2 + $0xe18] sm:$0xff] %v1954_v17 }
 0x411   :  { %2446 = vst [vmem:[%s5093_s2 + $0xe20] sm:$0xff] %v969_v18 }
 0x412   :  { %2447 = vst [vmem:[%s5093_s2 + $0xe28] sm:$0xff] %v1298_v19 }
 0x416   :  { %v1627_v20 = vpop.f32.mrf.mxu2  ;;  %v1956_v21 = vpop.f32.mrf.mxu3 }
 0x417   :  { %2448 = vst [vmem:[%s5093_s2 + $0xe30] sm:$0xff] %v1627_v20  ;;  %v972_v22 = vpop.f32.mrf.mxu0  ;;  %v1301_v23 = vpop.f32.mrf.mxu1 }
 0x418   :  { %2449 = vst [vmem:[%s5093_s2 + $0xe38] sm:$0xff] %v1956_v21 }
 0x419   :  { %2450 = vst [vmem:[%s5093_s2 + $0xe40] sm:$0xff] %v972_v22 }
 0x41a   :  { %2451 = vst [vmem:[%s5093_s2 + $0xe48] sm:$0xff] %v1301_v23 }
 0x41e   :  { %v1630_v24 = vpop.f32.mrf.mxu2  ;;  %v1959_v25 = vpop.f32.mrf.mxu3 }
 0x41f   :  { %2452 = vst [vmem:[%s5093_s2 + $0xe50] sm:$0xff] %v1630_v24  ;;  %v974_v26 = vpop.f32.mrf.mxu0  ;;  %v1303_v27 = vpop.f32.mrf.mxu1 }
 0x420   :  { %2453 = vst [vmem:[%s5093_s2 + $0xe58] sm:$0xff] %v1959_v25 }
 0x421   :  { %2454 = vst [vmem:[%s5093_s2 + $0xe60] sm:$0xff] %v974_v26 }
 0x422   :  { %2455 = vst [vmem:[%s5093_s2 + $0xe68] sm:$0xff] %v1303_v27 }
 0x426   :  { %v1632_v28 = vpop.f32.mrf.mxu2  ;;  %v1961_v29 = vpop.f32.mrf.mxu3 }
 0x427   :  { %2456 = vst [vmem:[%s5093_s2 + $0xe70] sm:$0xff] %v1632_v28  ;;  %v977_v30 = vpop.f32.mrf.mxu0  ;;  %v1306_v31 = vpop.f32.mrf.mxu1 }
 0x428   :  { %2457 = vst [vmem:[%s5093_s2 + $0xe78] sm:$0xff] %v1961_v29 }
 0x429   :  { %2458 = vst [vmem:[%s5093_s2 + $0xe80] sm:$0xff] %v977_v30 }
 0x42a   :  { %2459 = vst [vmem:[%s5093_s2 + $0xe88] sm:$0xff] %v1306_v31 }
 0x42e   :  { %v1635_v32 = vpop.f32.mrf.mxu2  ;;  %v1964_v33 = vpop.f32.mrf.mxu3 }
 0x42f   :  { %2460 = vst [vmem:[%s5093_s2 + $0xe90] sm:$0xff] %v1635_v32  ;;  %v979_v34 = vpop.f32.mrf.mxu0  ;;  %v1308_v35 = vpop.f32.mrf.mxu1 }
 0x430   :  { %2461 = vst [vmem:[%s5093_s2 + $0xe98] sm:$0xff] %v1964_v33 }
 0x431   :  { %2462 = vst [vmem:[%s5093_s2 + $0xea0] sm:$0xff] %v979_v34 }
 0x432   :  { %2463 = vst [vmem:[%s5093_s2 + $0xea8] sm:$0xff] %v1308_v35 }
 0x436   :  { %v1637_v36 = vpop.f32.mrf.mxu2  ;;  %v1966_v37 = vpop.f32.mrf.mxu3 }
 0x437   :  { %2464 = vst [vmem:[%s5093_s2 + $0xeb0] sm:$0xff] %v1637_v36  ;;  %v982_v38 = vpop.f32.mrf.mxu0  ;;  %v1311_v39 = vpop.f32.mrf.mxu1 }
 0x438   :  { %2465 = vst [vmem:[%s5093_s2 + $0xeb8] sm:$0xff] %v1966_v37 }
 0x439   :  { %2466 = vst [vmem:[%s5093_s2 + $0xec0] sm:$0xff] %v982_v38 }
 0x43a   :  { %2467 = vst [vmem:[%s5093_s2 + $0xec8] sm:$0xff] %v1311_v39 }
 0x43e   :  { %v1640_v40 = vpop.f32.mrf.mxu2  ;;  %v1969_v41 = vpop.f32.mrf.mxu3 }
 0x43f   :  { %2468 = vst [vmem:[%s5093_s2 + $0xed0] sm:$0xff] %v1640_v40  ;;  %v984_v42 = vpop.f32.mrf.mxu0  ;;  %v1313_v43 = vpop.f32.mrf.mxu1 }
 0x440   :  { %2469 = vst [vmem:[%s5093_s2 + $0xed8] sm:$0xff] %v1969_v41 }
 0x441   :  { %2470 = vst [vmem:[%s5093_s2 + $0xee0] sm:$0xff] %v984_v42 }
 0x442   :  { %2471 = vst [vmem:[%s5093_s2 + $0xee8] sm:$0xff] %v1313_v43 }
 0x446   :  { %v1642_v44 = vpop.f32.mrf.mxu2  ;;  %v1971_v45 = vpop.f32.mrf.mxu3 }
 0x447   :  { %2472 = vst [vmem:[%s5093_s2 + $0xef0] sm:$0xff] %v1642_v44  ;;  %v987_v46 = vpop.f32.mrf.mxu0  ;;  %v1316_v47 = vpop.f32.mrf.mxu1 }
 0x448   :  { %2473 = vst [vmem:[%s5093_s2 + $0xef8] sm:$0xff] %v1971_v45 }
 0x449   :  { %2474 = vst [vmem:[%s5093_s2 + $0xf00] sm:$0xff] %v987_v46 }
 0x44a   :  { %2475 = vst [vmem:[%s5093_s2 + $0xf08] sm:$0xff] %v1316_v47 }
 0x44e   :  { %v1645_v48 = vpop.f32.mrf.mxu2  ;;  %v1974_v49 = vpop.f32.mrf.mxu3 }
 0x44f   :  { %2476 = vst [vmem:[%s5093_s2 + $0xf10] sm:$0xff] %v1645_v48  ;;  %v989_v50 = vpop.f32.mrf.mxu0  ;;  %v1318_v51 = vpop.f32.mrf.mxu1 }
 0x450   :  { %2477 = vst [vmem:[%s5093_s2 + $0xf18] sm:$0xff] %v1974_v49 }
 0x451   :  { %2478 = vst [vmem:[%s5093_s2 + $0xf20] sm:$0xff] %v989_v50 }
 0x452   :  { %2479 = vst [vmem:[%s5093_s2 + $0xf28] sm:$0xff] %v1318_v51 }
 0x456   :  { %v1647_v52 = vpop.f32.mrf.mxu2  ;;  %v1976_v53 = vpop.f32.mrf.mxu3 }
 0x457   :  { %2480 = vst [vmem:[%s5093_s2 + $0xf30] sm:$0xff] %v1647_v52  ;;  %v992_v54 = vpop.f32.mrf.mxu0  ;;  %v1321_v55 = vpop.f32.mrf.mxu1 }
 0x458   :  { %2481 = vst [vmem:[%s5093_s2 + $0xf38] sm:$0xff] %v1976_v53 }
 0x459   :  { %2482 = vst [vmem:[%s5093_s2 + $0xf40] sm:$0xff] %v992_v54 }
 0x45a   :  { %2483 = vst [vmem:[%s5093_s2 + $0xf48] sm:$0xff] %v1321_v55 }
 0x45e   :  { %v1650_v56 = vpop.f32.mrf.mxu2  ;;  %v1979_v57 = vpop.f32.mrf.mxu3 }
 0x45f   :  { %2484 = vst [vmem:[%s5093_s2 + $0xf50] sm:$0xff] %v1650_v56  ;;  %v994_v58 = vpop.f32.mrf.mxu0  ;;  %v1323_v59 = vpop.f32.mrf.mxu1 }
 0x460   :  { %2485 = vst [vmem:[%s5093_s2 + $0xf58] sm:$0xff] %v1979_v57 }
 0x461   :  { %2486 = vst [vmem:[%s5093_s2 + $0xf60] sm:$0xff] %v994_v58 }
 0x462   :  { %2487 = vst [vmem:[%s5093_s2 + $0xf68] sm:$0xff] %v1323_v59 }
 0x466   :  { %v1652_v60 = vpop.f32.mrf.mxu2  ;;  %v1981_v61 = vpop.f32.mrf.mxu3 }
 0x467   :  { %2488 = vst [vmem:[%s5093_s2 + $0xf70] sm:$0xff] %v1652_v60  ;;  %v997_v62 = vpop.f32.mrf.mxu0  ;;  %v1326_v63 = vpop.f32.mrf.mxu1 }
 0x468   :  { %2489 = vst [vmem:[%s5093_s2 + $0xf78] sm:$0xff] %v1981_v61 }
 0x469   :  { %2490 = vst [vmem:[%s5093_s2 + $0xf80] sm:$0xff] %v997_v62 }
 0x46a   :  { %2491 = vst [vmem:[%s5093_s2 + $0xf88] sm:$0xff] %v1326_v63 }
 0x46e   :  { %v1655_v0 = vpop.f32.mrf.mxu2  ;;  %v1984_v1 = vpop.f32.mrf.mxu3 }
 0x46f   :  { %2492 = vst [vmem:[%s5093_s2 + $0xf90] sm:$0xff] %v1655_v0  ;;  %v999_v2 = vpop.f32.mrf.mxu0  ;;  %v1328_v3 = vpop.f32.mrf.mxu1 }
 0x470   :  { %2493 = vst [vmem:[%s5093_s2 + $0xf98] sm:$0xff] %v1984_v1 }
 0x471   :  { %2494 = vst [vmem:[%s5093_s2 + $0xfa0] sm:$0xff] %v999_v2 }
 0x472   :  { %2495 = vst [vmem:[%s5093_s2 + $0xfa8] sm:$0xff] %v1328_v3 }
 0x476   :  { %v1657_v4 = vpop.f32.mrf.mxu2  ;;  %v1986_v5 = vpop.f32.mrf.mxu3 }
 0x477   :  { %2496 = vst [vmem:[%s5093_s2 + $0xfb0] sm:$0xff] %v1657_v4  ;;  %v1002_v6 = vpop.f32.mrf.mxu0  ;;  %v1331_v7 = vpop.f32.mrf.mxu1 }
 0x478   :  { %2497 = vst [vmem:[%s5093_s2 + $0xfb8] sm:$0xff] %v1986_v5 }
 0x479   :  { %2498 = vst [vmem:[%s5093_s2 + $0xfc0] sm:$0xff] %v1002_v6 }
 0x47a   :  { %2499 = vst [vmem:[%s5093_s2 + $0xfc8] sm:$0xff] %v1331_v7 }
 0x47e   :  { %v1660_v8 = vpop.f32.mrf.mxu2  ;;  %v1989_v9 = vpop.f32.mrf.mxu3 }
 0x47f   :  { %2500 = vst [vmem:[%s5093_s2 + $0xfd0] sm:$0xff] %v1660_v8  ;;  %v1004_v10 = vpop.f32.mrf.mxu0  ;;  %v1333_v11 = vpop.f32.mrf.mxu1 }
 0x480   :  { %2501 = vst [vmem:[%s5093_s2 + $0xfd8] sm:$0xff] %v1989_v9 }
 0x481   :  { %2502 = vst [vmem:[%s5093_s2 + $0xfe0] sm:$0xff] %v1004_v10 }
 0x482   :  { %2503 = vst [vmem:[%s5093_s2 + $0xfe8] sm:$0xff] %v1333_v11 }
 0x486   :  { %v1662_v12 = vpop.f32.mrf.mxu2  ;;  %v1991_v13 = vpop.f32.mrf.mxu3 }
 0x487   :  { %2504 = vst [vmem:[%s5093_s2 + $0xff0] sm:$0xff] %v1662_v12 }
 0x488   :  { %2505 = vst [vmem:[%s5093_s2 + $0xff8] sm:$0xff] %v1991_v13 }

// kernel: decoder_forward.7
= control target key start
LH: loop header
LB: loop body
LE: loop exit
PB: predicated region body
PF: predicated region fallthrough
CT: control target
= control target key end

     0   :  { %s1736_s9 = smov 0   ;;  %s2020_s0 = inlined_call_operand.vmem [shape: bf16[8192,8], index: 0, kind: input, shape index: {}]   ;;  %s2021_s1 = inlined_call_operand.vmem [shape: bf16[8,128], index: 1, kind: input, shape index: {}]   ;;  %s2022_s2 = inlined_call_operand.vmem [shape: f32[8192,128], index: 2, kind: output, shape index: {}]  }
   0x1 LB: > { %s1307_s10 = sadd.s32 4294967295, %s1719_s9   ;;  %p1311_p0 = scmp.ge.s32.totalorder %s1719_s9, 1  ;;  %s1719_s9 = sphi %s1736_s9, %s12_s9  }
   0x2   : > { %p113_p1 = scmp.lt.s32.totalorder %s1719_s9, 9 }
   0x4   : > { %p114_p2 = pnand %p1311_p0, %p113_p1 }
   0x5   : > { %s1312_s13 = sshll.u32 (!%p114_p2), %s1307_s10, 7 }
   0x6   : > { %117 = sbr.rel (%p114_p2) target bundleno = 399 (0x18f), region = 28  ;;  %p136_p3 = scmp.lt.s32.totalorder (!%p114_p2), %s1312_s13, 1023 }
   0xb   : > { %v276_v0 = vld [vmem:[%s2021_s1] sm:$0xf]  ;;  %vm790_vm0 = vcmask 1043456   ;;  %s2024_s13 = smov (!%p136_p3, %s1312_s13), 1023  ;;  %vm597_vm1 = vcmask 64512  }
   0xc   : > { %v792_v1 = vsel %vm790_vm0, %v276_v0, 0  ;;  %s1313_s14 = sshll.u32 %s2024_s13, 2  ;;  %s1315_s18 = sshll.u32 %s2024_s13, 3 }
   0xd   : > { %801 = vmatpush.bf16.msra.mxu0 %v792_v1  ;;  %1702 = vmatpush.bf16.msra.mxu1 %v792_v1  ;;  %s1753_s17 = scalar_lea.vmem %s2020_s0, %s1313_s14  ;;  %s1823_s21 = scalar_lea.vmem %s2022_s2, %s1315_s18 }
   0xe   : > { %1703 = vmatpush.bf16.msra.mxu2 %v792_v1  ;;  %1704 = vmatpush.bf16.msra.mxu3 %v792_v1  ;;  %v1638_v2 = vld [vmem:[%s1753_s17] sm:$0xff]  ;;  %v1639_v6 = vld [vmem:[%s1753_s17 + $0x8] sm:$0xff]  ;;  %v1640_v10 = vld [vmem:[%s1753_s17 + $0x10] sm:$0xff] }
   0xf   : > { %v1654_v3 = vld [vmem:[%s1753_s17 + $0x80] sm:$0xff]  ;;  %v1655_v7 = vld [vmem:[%s1753_s17 + $0x88] sm:$0xff]  ;;  %v1656_v11 = vld [vmem:[%s1753_s17 + $0x90] sm:$0xff] }
  0x10   : > { %v1670_v4 = vld [vmem:[%s1753_s17 + $0x100] sm:$0xff]  ;;  %1572 = vmatmul.msk.bf16.vlgmr.msra.gmra.mxu0 %vm597_vm1, %v1638_v2  ;;  %1588 = vmatmul.msk.bf16.vlgmr.msra.gmra.mxu1 %vm597_vm1, %v1654_v3  ;;  %v1671_v8 = vld [vmem:[%s1753_s17 + $0x108] sm:$0xff]  ;;  %v1672_v12 = vld [vmem:[%s1753_s17 + $0x110] sm:$0xff] }
  0x11   : > { %v1686_v5 = vld [vmem:[%s1753_s17 + $0x180] sm:$0xff]  ;;  %1604 = vmatmul.msk.bf16.vlgmr.msra.gmra.mxu2 %vm597_vm1, %v1670_v4  ;;  %v1687_v9 = vld [vmem:[%s1753_s17 + $0x188] sm:$0xff]  ;;  %v1688_v13 = vld [vmem:[%s1753_s17 + $0x190] sm:$0xff] }
  0x12   : > { %1620 = vmatmul.msk.bf16.vlgmr.msra.gmra.mxu3 %vm597_vm1, %v1686_v5  ;;  %v1641_v14 = vld [vmem:[%s1753_s17 + $0x18] sm:$0xff]  ;;  %v1642_v18 = vld [vmem:[%s1753_s17 + $0x20] sm:$0xff]  ;;  %v1643_v22 = vld [vmem:[%s1753_s17 + $0x28] sm:$0xff] }
  0x13   : > { %v1657_v15 = vld [vmem:[%s1753_s17 + $0x98] sm:$0xff]  ;;  %v1658_v19 = vld [vmem:[%s1753_s17 + $0xa0] sm:$0xff]  ;;  %v1659_v23 = vld [vmem:[%s1753_s17 + $0xa8] sm:$0xff] }
  0x14   : > { %v1673_v16 = vld [vmem:[%s1753_s17 + $0x118] sm:$0xff]  ;;  %v1674_v20 = vld [vmem:[%s1753_s17 + $0x120] sm:$0xff]  ;;  %v1675_v24 = vld [vmem:[%s1753_s17 + $0x128] sm:$0xff] }
  0x15   : > { %v1689_v17 = vld [vmem:[%s1753_s17 + $0x198] sm:$0xff]  ;;  %v1690_v21 = vld [vmem:[%s1753_s17 + $0x1a0] sm:$0xff]  ;;  %v1691_v25 = vld [vmem:[%s1753_s17 + $0x1a8] sm:$0xff] }
  0x16   : > { %v1644_v26 = vld [vmem:[%s1753_s17 + $0x30] sm:$0xff]  ;;  %v1645_v30 = vld [vmem:[%s1753_s17 + $0x38] sm:$0xff]  ;;  %v1646_v34 = vld [vmem:[%s1753_s17 + $0x40] sm:$0xff] }
  0x17   : > { %v1660_v27 = vld [vmem:[%s1753_s17 + $0xb0] sm:$0xff]  ;;  %v1661_v31 = vld [vmem:[%s1753_s17 + $0xb8] sm:$0xff]  ;;  %v1662_v35 = vld [vmem:[%s1753_s17 + $0xc0] sm:$0xff] }
  0x18   : > { %v1676_v28 = vld [vmem:[%s1753_s17 + $0x130] sm:$0xff]  ;;  %v1677_v32 = vld [vmem:[%s1753_s17 + $0x138] sm:$0xff]  ;;  %v1678_v38 = vld [vmem:[%s1753_s17 + $0x140] sm:$0xff] }
  0x19   : > { %v1692_v29 = vld [vmem:[%s1753_s17 + $0x1b0] sm:$0xff]  ;;  %v1693_v33 = vld [vmem:[%s1753_s17 + $0x1b8] sm:$0xff]  ;;  %v1694_v39 = vld [vmem:[%s1753_s17 + $0x1c0] sm:$0xff] }
  0x1a   : > { %v1647_v46 = vld [vmem:[%s1753_s17 + $0x48] sm:$0xff]  ;;  %v1648_v58 = vld [vmem:[%s1753_s17 + $0x50] sm:$0xff] }
  0x1b   : > { %v1663_v47 = vld [vmem:[%s1753_s17 + $0xc8] sm:$0xff]  ;;  %v1664_v59 = vld [vmem:[%s1753_s17 + $0xd0] sm:$0xff] }
  0x1c   : > { %v1679_v50 = vld [vmem:[%s1753_s17 + $0x148] sm:$0xff]  ;;  %v1680_v62 = vld [vmem:[%s1753_s17 + $0x150] sm:$0xff] }
  0x1d   : > { %v1695_v51 = vld [vmem:[%s1753_s17 + $0x1c8] sm:$0xff]  ;;  %v1696_v63 = vld [vmem:[%s1753_s17 + $0x1d0] sm:$0xff] }
  0x20   : > { %1573 = vmatmul.msk.bf16.gmra.mxu0 %vm597_vm1, %v1639_v6  ;;  %1589 = vmatmul.msk.bf16.gmra.mxu1 %vm597_vm1, %v1655_v7  ;;  %v1649_v6 = vld [vmem:[%s1753_s17 + $0x58] sm:$0xff] }
  0x21   : > { %1605 = vmatmul.msk.bf16.gmra.mxu2 %vm597_vm1, %v1671_v8  ;;  %v1665_v7 = vld [vmem:[%s1753_s17 + $0xd8] sm:$0xff] }
  0x22   : > { %1621 = vmatmul.msk.bf16.gmra.mxu3 %vm597_vm1, %v1687_v9 }
  0x30   : > { %1574 = vmatmul.msk.bf16.gmra.mxu0 %vm597_vm1, %v1640_v10  ;;  %1590 = vmatmul.msk.bf16.gmra.mxu1 %vm597_vm1, %v1656_v11  ;;  %v1681_v10 = vld [vmem:[%s1753_s17 + $0x158] sm:$0xff] }
  0x31   : > { %1606 = vmatmul.msk.bf16.gmra.mxu2 %vm597_vm1, %v1672_v12  ;;  %v1697_v11 = vld [vmem:[%s1753_s17 + $0x1d8] sm:$0xff] }
  0x32   : > { %1622 = vmatmul.msk.bf16.gmra.mxu3 %vm597_vm1, %v1688_v13 }
  0x40   : > { %1575 = vmatmul.msk.bf16.gmra.mxu0 %vm597_vm1, %v1641_v14  ;;  %1591 = vmatmul.msk.bf16.gmra.mxu1 %vm597_vm1, %v1657_v15 }
  0x41   : > { %1607 = vmatmul.msk.bf16.gmra.mxu2 %vm597_vm1, %v1673_v16 }
  0x42   : > { %1623 = vmatmul.msk.bf16.gmra.mxu3 %vm597_vm1, %v1689_v17 }
  0x50   : > { %1576 = vmatmul.msk.bf16.gmra.mxu0 %vm597_vm1, %v1642_v18  ;;  %1592 = vmatmul.msk.bf16.gmra.mxu1 %vm597_vm1, %v1658_v19  ;;  %v1650_v18 = vld [vmem:[%s1753_s17 + $0x60] sm:$0xff] }
  0x51   : > { %1608 = vmatmul.msk.bf16.gmra.mxu2 %vm597_vm1, %v1674_v20  ;;  %v1666_v19 = vld [vmem:[%s1753_s17 + $0xe0] sm:$0xff] }
  0x52   : > { %1624 = vmatmul.msk.bf16.gmra.mxu3 %vm597_vm1, %v1690_v21 }
  0x60   : > { %1577 = vmatmul.msk.bf16.gmra.mxu0 %vm597_vm1, %v1643_v22  ;;  %1593 = vmatmul.msk.bf16.gmra.mxu1 %vm597_vm1, %v1659_v23  ;;  %v1682_v22 = vld [vmem:[%s1753_s17 + $0x160] sm:$0xff] }
  0x61   : > { %1609 = vmatmul.msk.bf16.gmra.mxu2 %vm597_vm1, %v1675_v24  ;;  %v1698_v23 = vld [vmem:[%s1753_s17 + $0x1e0] sm:$0xff] }
  0x62   : > { %1625 = vmatmul.msk.bf16.gmra.mxu3 %vm597_vm1, %v1691_v25 }
  0x70   : > { %1578 = vmatmul.msk.bf16.gmra.mxu0 %vm597_vm1, %v1644_v26  ;;  %1594 = vmatmul.msk.bf16.gmra.mxu1 %vm597_vm1, %v1660_v27 }
  0x71   : > { %1610 = vmatmul.msk.bf16.gmra.mxu2 %vm597_vm1, %v1676_v28 }
  0x72   : > { %1626 = vmatmul.msk.bf16.gmra.mxu3 %vm597_vm1, %v1692_v29 }
  0x80   : > { %1579 = vmatmul.msk.bf16.gmra.mxu0 %vm597_vm1, %v1645_v30  ;;  %1595 = vmatmul.msk.bf16.gmra.mxu1 %vm597_vm1, %v1661_v31  ;;  %v1651_v30 = vld [vmem:[%s1753_s17 + $0x68] sm:$0xff] }
  0x81   : > { %1611 = vmatmul.msk.bf16.gmra.mxu2 %vm597_vm1, %v1677_v32  ;;  %v1667_v31 = vld [vmem:[%s1753_s17 + $0xe8] sm:$0xff] }
  0x82   : > { %1627 = vmatmul.msk.bf16.gmra.mxu3 %vm597_vm1, %v1693_v33 }
  0x8d   : > { %v803_v36 = vpop.f32.mrf.mxu0  ;;  %v883_v37 = vpop.f32.mrf.mxu1 }
  0x8e   : > { %1123 = vst [vmem:[%s1823_s21] sm:$0xff] %v803_v36 }
  0x8f   : > { %1155 = vst [vmem:[%s1823_s21 + $0x100] sm:$0xff] %v883_v37 }
  0x90   : > { %1580 = vmatmul.msk.bf16.gmra.mxu0 %vm597_vm1, %v1646_v34  ;;  %1596 = vmatmul.msk.bf16.gmra.mxu1 %vm597_vm1, %v1662_v35  ;;  %v1683_v34 = vld [vmem:[%s1753_s17 + $0x168] sm:$0xff] }
  0x91   : > { %1612 = vmatmul.msk.bf16.gmra.mxu2 %vm597_vm1, %v1678_v38  ;;  %v1699_v35 = vld [vmem:[%s1753_s17 + $0x1e8] sm:$0xff] }
  0x92   : > { %1628 = vmatmul.msk.bf16.gmra.mxu3 %vm597_vm1, %v1694_v39 }
  0x94   : > { %v963_v40 = vpop.f32.mrf.mxu2 }
  0x95   : > { %v1043_v41 = vpop.f32.mrf.mxu3  ;;  %1187 = vst [vmem:[%s1823_s21 + $0x200] sm:$0xff] %v963_v40  ;;  %v805_v42 = vpop.f32.mrf.mxu0 }
  0x96   : > { %v885_v43 = vpop.f32.mrf.mxu1  ;;  %1219 = vst [vmem:[%s1823_s21 + $0x300] sm:$0xff] %v1043_v41 }
  0x97   : > { %1124 = vst [vmem:[%s1823_s21 + $0x8] sm:$0xff] %v805_v42  ;;  %v1652_v42 = vld [vmem:[%s1753_s17 + $0x70] sm:$0xff] }
  0x98   : > { %1156 = vst [vmem:[%s1823_s21 + $0x108] sm:$0xff] %v885_v43  ;;  %v1668_v43 = vld [vmem:[%s1753_s17 + $0xf0] sm:$0xff] }
  0x9c   : > { %v965_v44 = vpop.f32.mrf.mxu2 }
  0x9d   : > { %v1045_v45 = vpop.f32.mrf.mxu3  ;;  %1188 = vst [vmem:[%s1823_s21 + $0x208] sm:$0xff] %v965_v44  ;;  %v808_v48 = vpop.f32.mrf.mxu0 }
  0x9e   : > { %v888_v49 = vpop.f32.mrf.mxu1  ;;  %1220 = vst [vmem:[%s1823_s21 + $0x308] sm:$0xff] %v1045_v45 }
  0x9f   : > { %1125 = vst [vmem:[%s1823_s21 + $0x10] sm:$0xff] %v808_v48 }
  0xa0   : > { %1157 = vst [vmem:[%s1823_s21 + $0x110] sm:$0xff] %v888_v49  ;;  %1581 = vmatmul.msk.bf16.gmra.mxu0 %vm597_vm1, %v1647_v46  ;;  %1597 = vmatmul.msk.bf16.gmra.mxu1 %vm597_vm1, %v1663_v47  ;;  %v1684_v46 = vld [vmem:[%s1753_s17 + $0x170] sm:$0xff] }
  0xa1   : > { %1613 = vmatmul.msk.bf16.gmra.mxu2 %vm597_vm1, %v1679_v50  ;;  %v1700_v47 = vld [vmem:[%s1753_s17 + $0x1f0] sm:$0xff] }
  0xa2   : > { %1629 = vmatmul.msk.bf16.gmra.mxu3 %vm597_vm1, %v1695_v51 }
  0xa4   : > { %v968_v52 = vpop.f32.mrf.mxu2 }
  0xa5   : > { %v1048_v53 = vpop.f32.mrf.mxu3  ;;  %1189 = vst [vmem:[%s1823_s21 + $0x210] sm:$0xff] %v968_v52  ;;  %v810_v54 = vpop.f32.mrf.mxu0 }
  0xa6   : > { %v890_v55 = vpop.f32.mrf.mxu1  ;;  %1221 = vst [vmem:[%s1823_s21 + $0x310] sm:$0xff] %v1048_v53 }
  0xa7   : > { %1126 = vst [vmem:[%s1823_s21 + $0x18] sm:$0xff] %v810_v54  ;;  %v1653_v54 = vld [vmem:[%s1753_s17 + $0x78] sm:$0xff] }
  0xa8   : > { %1158 = vst [vmem:[%s1823_s21 + $0x118] sm:$0xff] %v890_v55  ;;  %v1669_v55 = vld [vmem:[%s1753_s17 + $0xf8] sm:$0xff] }
  0xac   : > { %v970_v56 = vpop.f32.mrf.mxu2 }
  0xad   : > { %v1050_v57 = vpop.f32.mrf.mxu3  ;;  %1190 = vst [vmem:[%s1823_s21 + $0x218] sm:$0xff] %v970_v56  ;;  %v813_v60 = vpop.f32.mrf.mxu0 }
  0xae   : > { %v893_v61 = vpop.f32.mrf.mxu1  ;;  %1222 = vst [vmem:[%s1823_s21 + $0x318] sm:$0xff] %v1050_v57 }
  0xaf   : > { %1127 = vst [vmem:[%s1823_s21 + $0x20] sm:$0xff] %v813_v60 }
  0xb0   : > { %1159 = vst [vmem:[%s1823_s21 + $0x120] sm:$0xff] %v893_v61  ;;  %1582 = vmatmul.msk.bf16.gmra.mxu0 %vm597_vm1, %v1648_v58  ;;  %1598 = vmatmul.msk.bf16.gmra.mxu1 %vm597_vm1, %v1664_v59  ;;  %v1685_v58 = vld [vmem:[%s1753_s17 + $0x178] sm:$0xff] }
  0xb1   : > { %1614 = vmatmul.msk.bf16.gmra.mxu2 %vm597_vm1, %v1680_v62  ;;  %v1701_v59 = vld [vmem:[%s1753_s17 + $0x1f8] sm:$0xff] }
  0xb2   : > { %1630 = vmatmul.msk.bf16.gmra.mxu3 %vm597_vm1, %v1696_v63 }
  0xb4   : > { %v973_v0 = vpop.f32.mrf.mxu2 }
  0xb5   : > { %v1053_v1 = vpop.f32.mrf.mxu3  ;;  %1191 = vst [vmem:[%s1823_s21 + $0x220] sm:$0xff] %v973_v0  ;;  %v815_v2 = vpop.f32.mrf.mxu0 }
  0xb6   : > { %v895_v3 = vpop.f32.mrf.mxu1  ;;  %1223 = vst [vmem:[%s1823_s21 + $0x320] sm:$0xff] %v1053_v1 }
  0xb7   : > { %1128 = vst [vmem:[%s1823_s21 + $0x28] sm:$0xff] %v815_v2 }
  0xb8   : > { %1160 = vst [vmem:[%s1823_s21 + $0x128] sm:$0xff] %v895_v3 }
  0xbc   : > { %v975_v4 = vpop.f32.mrf.mxu2 }
  0xbd   : > { %v1055_v5 = vpop.f32.mrf.mxu3  ;;  %1192 = vst [vmem:[%s1823_s21 + $0x228] sm:$0xff] %v975_v4  ;;  %v818_v8 = vpop.f32.mrf.mxu0 }
  0xbe   : > { %v898_v9 = vpop.f32.mrf.mxu1  ;;  %1224 = vst [vmem:[%s1823_s21 + $0x328] sm:$0xff] %v1055_v5 }
  0xbf   : > { %1129 = vst [vmem:[%s1823_s21 + $0x30] sm:$0xff] %v818_v8 }
  0xc0   : > { %1161 = vst [vmem:[%s1823_s21 + $0x130] sm:$0xff] %v898_v9  ;;  %1583 = vmatmul.msk.bf16.gmra.mxu0 %vm597_vm1, %v1649_v6  ;;  %1599 = vmatmul.msk.bf16.gmra.mxu1 %vm597_vm1, %v1665_v7 }
  0xc1   : > { %1615 = vmatmul.msk.bf16.gmra.mxu2 %vm597_vm1, %v1681_v10 }
  0xc2   : > { %1631 = vmatmul.msk.bf16.gmra.mxu3 %vm597_vm1, %v1697_v11 }
  0xc4   : > { %v978_v12 = vpop.f32.mrf.mxu2 }
  0xc5   : > { %v1058_v13 = vpop.f32.mrf.mxu3  ;;  %1193 = vst [vmem:[%s1823_s21 + $0x230] sm:$0xff] %v978_v12  ;;  %v820_v14 = vpop.f32.mrf.mxu0 }
  0xc6   : > { %v900_v15 = vpop.f32.mrf.mxu1  ;;  %1225 = vst [vmem:[%s1823_s21 + $0x330] sm:$0xff] %v1058_v13 }
  0xc7   : > { %1130 = vst [vmem:[%s1823_s21 + $0x38] sm:$0xff] %v820_v14 }
  0xc8   : > { %1162 = vst [vmem:[%s1823_s21 + $0x138] sm:$0xff] %v900_v15 }
  0xcc   : > { %v980_v16 = vpop.f32.mrf.mxu2 }
  0xcd   : > { %v1060_v17 = vpop.f32.mrf.mxu3  ;;  %1194 = vst [vmem:[%s1823_s21 + $0x238] sm:$0xff] %v980_v16  ;;  %v823_v20 = vpop.f32.mrf.mxu0 }
  0xce   : > { %v903_v21 = vpop.f32.mrf.mxu1  ;;  %1226 = vst [vmem:[%s1823_s21 + $0x338] sm:$0xff] %v1060_v17 }
  0xcf   : > { %1131 = vst [vmem:[%s1823_s21 + $0x40] sm:$0xff] %v823_v20 }
  0xd0   : > { %1163 = vst [vmem:[%s1823_s21 + $0x140] sm:$0xff] %v903_v21  ;;  %1584 = vmatmul.msk.bf16.gmra.mxu0 %vm597_vm1, %v1650_v18  ;;  %1600 = vmatmul.msk.bf16.gmra.mxu1 %vm597_vm1, %v1666_v19 }
  0xd1   : > { %1616 = vmatmul.msk.bf16.gmra.mxu2 %vm597_vm1, %v1682_v22 }
  0xd2   : > { %1632 = vmatmul.msk.bf16.gmra.mxu3 %vm597_vm1, %v1698_v23 }
  0xd4   : > { %v983_v24 = vpop.f32.mrf.mxu2 }
  0xd5   : > { %v1063_v25 = vpop.f32.mrf.mxu3  ;;  %1195 = vst [vmem:[%s1823_s21 + $0x240] sm:$0xff] %v983_v24  ;;  %v825_v26 = vpop.f32.mrf.mxu0 }
  0xd6   : > { %v905_v27 = vpop.f32.mrf.mxu1  ;;  %1227 = vst [vmem:[%s1823_s21 + $0x340] sm:$0xff] %v1063_v25 }
  0xd7   : > { %1132 = vst [vmem:[%s1823_s21 + $0x48] sm:$0xff] %v825_v26 }
  0xd8   : > { %1164 = vst [vmem:[%s1823_s21 + $0x148] sm:$0xff] %v905_v27 }
  0xdc   : > { %v985_v28 = vpop.f32.mrf.mxu2 }
  0xdd   : > { %v1065_v29 = vpop.f32.mrf.mxu3  ;;  %1196 = vst [vmem:[%s1823_s21 + $0x248] sm:$0xff] %v985_v28  ;;  %v828_v32 = vpop.f32.mrf.mxu0 }
  0xde   : > { %v908_v33 = vpop.f32.mrf.mxu1  ;;  %1228 = vst [vmem:[%s1823_s21 + $0x348] sm:$0xff] %v1065_v29 }
  0xdf   : > { %1133 = vst [vmem:[%s1823_s21 + $0x50] sm:$0xff] %v828_v32 }
  0xe0   : > { %1165 = vst [vmem:[%s1823_s21 + $0x150] sm:$0xff] %v908_v33  ;;  %1585 = vmatmul.msk.bf16.gmra.mxu0 %vm597_vm1, %v1651_v30  ;;  %1601 = vmatmul.msk.bf16.gmra.mxu1 %vm597_vm1, %v1667_v31 }
  0xe1   : > { %1617 = vmatmul.msk.bf16.gmra.mxu2 %vm597_vm1, %v1683_v34 }
  0xe2   : > { %1633 = vmatmul.msk.bf16.gmra.mxu3 %vm597_vm1, %v1699_v35 }
  0xe4   : > { %v988_v36 = vpop.f32.mrf.mxu2 }
  0xe5   : > { %v1068_v37 = vpop.f32.mrf.mxu3  ;;  %1197 = vst [vmem:[%s1823_s21 + $0x250] sm:$0xff] %v988_v36  ;;  %v830_v38 = vpop.f32.mrf.mxu0 }
  0xe6   : > { %v910_v39 = vpop.f32.mrf.mxu1  ;;  %1229 = vst [vmem:[%s1823_s21 + $0x350] sm:$0xff] %v1068_v37 }
  0xe7   : > { %1134 = vst [vmem:[%s1823_s21 + $0x58] sm:$0xff] %v830_v38 }
  0xe8   : > { %1166 = vst [vmem:[%s1823_s21 + $0x158] sm:$0xff] %v910_v39 }
  0xec   : > { %v990_v40 = vpop.f32.mrf.mxu2 }
  0xed   : > { %v1070_v41 = vpop.f32.mrf.mxu3  ;;  %1198 = vst [vmem:[%s1823_s21 + $0x258] sm:$0xff] %v990_v40  ;;  %v833_v44 = vpop.f32.mrf.mxu0 }
  0xee   : > { %v913_v45 = vpop.f32.mrf.mxu1  ;;  %1230 = vst [vmem:[%s1823_s21 + $0x358] sm:$0xff] %v1070_v41 }
  0xef   : > { %1135 = vst [vmem:[%s1823_s21 + $0x60] sm:$0xff] %v833_v44 }
  0xf0   : > { %1167 = vst [vmem:[%s1823_s21 + $0x160] sm:$0xff] %v913_v45  ;;  %1586 = vmatmul.msk.bf16.gmra.mxu0 %vm597_vm1, %v1652_v42  ;;  %1602 = vmatmul.msk.bf16.gmra.mxu1 %vm597_vm1, %v1668_v43 }
  0xf1   : > { %1618 = vmatmul.msk.bf16.gmra.mxu2 %vm597_vm1, %v1684_v46 }
  0xf2   : > { %1634 = vmatmul.msk.bf16.gmra.mxu3 %vm597_vm1, %v1700_v47 }
  0xf4   : > { %v993_v48 = vpop.f32.mrf.mxu2 }
  0xf5   : > { %v1073_v49 = vpop.f32.mrf.mxu3  ;;  %1199 = vst [vmem:[%s1823_s21 + $0x260] sm:$0xff] %v993_v48  ;;  %v835_v50 = vpop.f32.mrf.mxu0 }
  0xf6   : > { %v915_v51 = vpop.f32.mrf.mxu1  ;;  %1231 = vst [vmem:[%s1823_s21 + $0x360] sm:$0xff] %v1073_v49 }
  0xf7   : > { %1136 = vst [vmem:[%s1823_s21 + $0x68] sm:$0xff] %v835_v50 }
  0xf8   : > { %1168 = vst [vmem:[%s1823_s21 + $0x168] sm:$0xff] %v915_v51 }
  0xfc   : > { %v995_v52 = vpop.f32.mrf.mxu2 }
  0xfd   : > { %v1075_v53 = vpop.f32.mrf.mxu3  ;;  %1200 = vst [vmem:[%s1823_s21 + $0x268] sm:$0xff] %v995_v52  ;;  %v838_v56 = vpop.f32.mrf.mxu0 }
  0xfe   : > { %v918_v57 = vpop.f32.mrf.mxu1  ;;  %1232 = vst [vmem:[%s1823_s21 + $0x368] sm:$0xff] %v1075_v53 }
  0xff   : > { %1137 = vst [vmem:[%s1823_s21 + $0x70] sm:$0xff] %v838_v56 }
 0x100   : > { %1169 = vst [vmem:[%s1823_s21 + $0x170] sm:$0xff] %v918_v57  ;;  %1587 = vmatmul.msk.bf16.gmra.mxu0 %vm597_vm1, %v1653_v54  ;;  %1603 = vmatmul.msk.bf16.gmra.mxu1 %vm597_vm1, %v1669_v55 }
 0x101   : > { %1619 = vmatmul.msk.bf16.gmra.mxu2 %vm597_vm1, %v1685_v58 }
 0x102   : > { %1635 = vmatmul.msk.bf16.gmra.mxu3 %vm597_vm1, %v1701_v59 }
 0x104   : > { %v998_v60 = vpop.f32.mrf.mxu2 }
 0x105   : > { %v1078_v61 = vpop.f32.mrf.mxu3  ;;  %1201 = vst [vmem:[%s1823_s21 + $0x270] sm:$0xff] %v998_v60  ;;  %v840_v62 = vpop.f32.mrf.mxu0 }
 0x106   : > { %v920_v63 = vpop.f32.mrf.mxu1  ;;  %1233 = vst [vmem:[%s1823_s21 + $0x370] sm:$0xff] %v1078_v61 }
 0x107   : > { %1138 = vst [vmem:[%s1823_s21 + $0x78] sm:$0xff] %v840_v62 }
 0x108   : > { %1170 = vst [vmem:[%s1823_s21 + $0x178] sm:$0xff] %v920_v63 }
 0x10c   : > { %v1000_v0 = vpop.f32.mrf.mxu2 }
 0x10d   : > { %v1080_v1 = vpop.f32.mrf.mxu3  ;;  %1202 = vst [vmem:[%s1823_s21 + $0x278] sm:$0xff] %v1000_v0  ;;  %v843_v2 = vpop.f32.mrf.mxu0 }
 0x10e   : > { %v923_v3 = vpop.f32.mrf.mxu1  ;;  %1234 = vst [vmem:[%s1823_s21 + $0x378] sm:$0xff] %v1080_v1 }
 0x10f   : > { %1139 = vst [vmem:[%s1823_s21 + $0x80] sm:$0xff] %v843_v2 }
 0x110   : > { %1171 = vst [vmem:[%s1823_s21 + $0x180] sm:$0xff] %v923_v3 }
 0x114   : > { %v1003_v4 = vpop.f32.mrf.mxu2 }
 0x115   : > { %v1083_v5 = vpop.f32.mrf.mxu3  ;;  %1203 = vst [vmem:[%s1823_s21 + $0x280] sm:$0xff] %v1003_v4  ;;  %v845_v6 = vpop.f32.mrf.mxu0 }
 0x116   : > { %v925_v7 = vpop.f32.mrf.mxu1  ;;  %1235 = vst [vmem:[%s1823_s21 + $0x380] sm:$0xff] %v1083_v5 }
 0x117   : > { %1140 = vst [vmem:[%s1823_s21 + $0x88] sm:$0xff] %v845_v6 }
 0x118   : > { %1172 = vst [vmem:[%s1823_s21 + $0x188] sm:$0xff] %v925_v7 }
 0x11c   : > { %v1005_v8 = vpop.f32.mrf.mxu2 }
 0x11d   : > { %v1085_v9 = vpop.f32.mrf.mxu3  ;;  %1204 = vst [vmem:[%s1823_s21 + $0x288] sm:$0xff] %v1005_v8  ;;  %v848_v10 = vpop.f32.mrf.mxu0 }
 0x11e   : > { %v928_v11 = vpop.f32.mrf.mxu1  ;;  %1236 = vst [vmem:[%s1823_s21 + $0x388] sm:$0xff] %v1085_v9 }
 0x11f   : > { %1141 = vst [vmem:[%s1823_s21 + $0x90] sm:$0xff] %v848_v10 }
 0x120   : > { %1173 = vst [vmem:[%s1823_s21 + $0x190] sm:$0xff] %v928_v11 }
 0x124   : > { %v1008_v12 = vpop.f32.mrf.mxu2 }
 0x125   : > { %v1088_v13 = vpop.f32.mrf.mxu3  ;;  %1205 = vst [vmem:[%s1823_s21 + $0x290] sm:$0xff] %v1008_v12  ;;  %v850_v14 = vpop.f32.mrf.mxu0 }
 0x126   : > { %v930_v15 = vpop.f32.mrf.mxu1  ;;  %1237 = vst [vmem:[%s1823_s21 + $0x390] sm:$0xff] %v1088_v13 }
 0x127   : > { %1142 = vst [vmem:[%s1823_s21 + $0x98] sm:$0xff] %v850_v14 }
 0x128   : > { %1174 = vst [vmem:[%s1823_s21 + $0x198] sm:$0xff] %v930_v15 }
 0x12c   : > { %v1010_v16 = vpop.f32.mrf.mxu2 }
 0x12d   : > { %v1090_v17 = vpop.f32.mrf.mxu3  ;;  %1206 = vst [vmem:[%s1823_s21 + $0x298] sm:$0xff] %v1010_v16  ;;  %v853_v18 = vpop.f32.mrf.mxu0 }
 0x12e   : > { %v933_v19 = vpop.f32.mrf.mxu1  ;;  %1238 = vst [vmem:[%s1823_s21 + $0x398] sm:$0xff] %v1090_v17 }
 0x12f   : > { %1143 = vst [vmem:[%s1823_s21 + $0xa0] sm:$0xff] %v853_v18 }
 0x130   : > { %1175 = vst [vmem:[%s1823_s21 + $0x1a0] sm:$0xff] %v933_v19 }
 0x134   : > { %v1013_v20 = vpop.f32.mrf.mxu2 }
 0x135   : > { %v1093_v21 = vpop.f32.mrf.mxu3  ;;  %1207 = vst [vmem:[%s1823_s21 + $0x2a0] sm:$0xff] %v1013_v20  ;;  %v855_v22 = vpop.f32.mrf.mxu0 }
 0x136   : > { %v935_v23 = vpop.f32.mrf.mxu1  ;;  %1239 = vst [vmem:[%s1823_s21 + $0x3a0] sm:$0xff] %v1093_v21 }
 0x137   : > { %1144 = vst [vmem:[%s1823_s21 + $0xa8] sm:$0xff] %v855_v22 }
 0x138   : > { %1176 = vst [vmem:[%s1823_s21 + $0x1a8] sm:$0xff] %v935_v23 }
 0x13c   : > { %v1015_v24 = vpop.f32.mrf.mxu2 }
 0x13d   : > { %v1095_v25 = vpop.f32.mrf.mxu3  ;;  %1208 = vst [vmem:[%s1823_s21 + $0x2a8] sm:$0xff] %v1015_v24  ;;  %v858_v26 = vpop.f32.mrf.mxu0 }
 0x13e   : > { %v938_v27 = vpop.f32.mrf.mxu1  ;;  %1240 = vst [vmem:[%s1823_s21 + $0x3a8] sm:$0xff] %v1095_v25 }
 0x13f   : > { %1145 = vst [vmem:[%s1823_s21 + $0xb0] sm:$0xff] %v858_v26 }
 0x140   : > { %1177 = vst [vmem:[%s1823_s21 + $0x1b0] sm:$0xff] %v938_v27 }
 0x144   : > { %v1018_v28 = vpop.f32.mrf.mxu2 }
 0x145   : > { %v1098_v29 = vpop.f32.mrf.mxu3  ;;  %1209 = vst [vmem:[%s1823_s21 + $0x2b0] sm:$0xff] %v1018_v28  ;;  %v860_v30 = vpop.f32.mrf.mxu0 }
 0x146   : > { %v940_v31 = vpop.f32.mrf.mxu1  ;;  %1241 = vst [vmem:[%s1823_s21 + $0x3b0] sm:$0xff] %v1098_v29 }
 0x147   : > { %1146 = vst [vmem:[%s1823_s21 + $0xb8] sm:$0xff] %v860_v30 }
 0x148   : > { %1178 = vst [vmem:[%s1823_s21 + $0x1b8] sm:$0xff] %v940_v31 }
 0x14c   : > { %v1020_v32 = vpop.f32.mrf.mxu2 }
 0x14d   : > { %v1100_v33 = vpop.f32.mrf.mxu3  ;;  %1210 = vst [vmem:[%s1823_s21 + $0x2b8] sm:$0xff] %v1020_v32  ;;  %v863_v34 = vpop.f32.mrf.mxu0 }
 0x14e   : > { %v943_v35 = vpop.f32.mrf.mxu1  ;;  %1242 = vst [vmem:[%s1823_s21 + $0x3b8] sm:$0xff] %v1100_v33 }
 0x14f   : > { %1147 = vst [vmem:[%s1823_s21 + $0xc0] sm:$0xff] %v863_v34 }
 0x150   : > { %1179 = vst [vmem:[%s1823_s21 + $0x1c0] sm:$0xff] %v943_v35 }
 0x154   : > { %v1023_v36 = vpop.f32.mrf.mxu2 }
 0x155   : > { %v1103_v37 = vpop.f32.mrf.mxu3  ;;  %1211 = vst [vmem:[%s1823_s21 + $0x2c0] sm:$0xff] %v1023_v36  ;;  %v865_v38 = vpop.f32.mrf.mxu0 }
 0x156   : > { %v945_v39 = vpop.f32.mrf.mxu1  ;;  %1243 = vst [vmem:[%s1823_s21 + $0x3c0] sm:$0xff] %v1103_v37 }
 0x157   : > { %1148 = vst [vmem:[%s1823_s21 + $0xc8] sm:$0xff] %v865_v38 }
 0x158   : > { %1180 = vst [vmem:[%s1823_s21 + $0x1c8] sm:$0xff] %v945_v39 }
 0x15c   : > { %v1025_v40 = vpop.f32.mrf.mxu2 }
 0x15d   : > { %v1105_v41 = vpop.f32.mrf.mxu3  ;;  %1212 = vst [vmem:[%s1823_s21 + $0x2c8] sm:$0xff] %v1025_v40  ;;  %v868_v42 = vpop.f32.mrf.mxu0 }
 0x15e   : > { %v948_v43 = vpop.f32.mrf.mxu1  ;;  %1244 = vst [vmem:[%s1823_s21 + $0x3c8] sm:$0xff] %v1105_v41 }
 0x15f   : > { %1149 = vst [vmem:[%s1823_s21 + $0xd0] sm:$0xff] %v868_v42 }
 0x160   : > { %1181 = vst [vmem:[%s1823_s21 + $0x1d0] sm:$0xff] %v948_v43 }
 0x164   : > { %v1028_v44 = vpop.f32.mrf.mxu2 }
 0x165   : > { %v1108_v45 = vpop.f32.mrf.mxu3  ;;  %1213 = vst [vmem:[%s1823_s21 + $0x2d0] sm:$0xff] %v1028_v44  ;;  %v870_v46 = vpop.f32.mrf.mxu0 }
 0x166   : > { %v950_v47 = vpop.f32.mrf.mxu1  ;;  %1245 = vst [vmem:[%s1823_s21 + $0x3d0] sm:$0xff] %v1108_v45 }
 0x167   : > { %1150 = vst [vmem:[%s1823_s21 + $0xd8] sm:$0xff] %v870_v46 }
 0x168   : > { %1182 = vst [vmem:[%s1823_s21 + $0x1d8] sm:$0xff] %v950_v47 }
 0x16c   : > { %v1030_v48 = vpop.f32.mrf.mxu2 }
 0x16d   : > { %v1110_v49 = vpop.f32.mrf.mxu3  ;;  %1214 = vst [vmem:[%s1823_s21 + $0x2d8] sm:$0xff] %v1030_v48  ;;  %v873_v50 = vpop.f32.mrf.mxu0 }
 0x16e   : > { %v953_v51 = vpop.f32.mrf.mxu1  ;;  %1246 = vst [vmem:[%s1823_s21 + $0x3d8] sm:$0xff] %v1110_v49 }
 0x16f   : > { %1151 = vst [vmem:[%s1823_s21 + $0xe0] sm:$0xff] %v873_v50 }
 0x170   : > { %1183 = vst [vmem:[%s1823_s21 + $0x1e0] sm:$0xff] %v953_v51 }
 0x174   : > { %v1033_v52 = vpop.f32.mrf.mxu2 }
 0x175   : > { %v1113_v53 = vpop.f32.mrf.mxu3  ;;  %1215 = vst [vmem:[%s1823_s21 + $0x2e0] sm:$0xff] %v1033_v52  ;;  %v875_v54 = vpop.f32.mrf.mxu0 }
 0x176   : > { %v955_v55 = vpop.f32.mrf.mxu1  ;;  %1247 = vst [vmem:[%s1823_s21 + $0x3e0] sm:$0xff] %v1113_v53 }
 0x177   : > { %1152 = vst [vmem:[%s1823_s21 + $0xe8] sm:$0xff] %v875_v54 }
 0x178   : > { %1184 = vst [vmem:[%s1823_s21 + $0x1e8] sm:$0xff] %v955_v55 }
 0x17c   : > { %v1035_v56 = vpop.f32.mrf.mxu2 }
 0x17d   : > { %v1115_v57 = vpop.f32.mrf.mxu3  ;;  %1216 = vst [vmem:[%s1823_s21 + $0x2e8] sm:$0xff] %v1035_v56  ;;  %v878_v58 = vpop.f32.mrf.mxu0 }
 0x17e   : > { %v958_v59 = vpop.f32.mrf.mxu1  ;;  %1248 = vst [vmem:[%s1823_s21 + $0x3e8] sm:$0xff] %v1115_v57 }
 0x17f   : > { %1153 = vst [vmem:[%s1823_s21 + $0xf0] sm:$0xff] %v878_v58 }
 0x180   : > { %1185 = vst [vmem:[%s1823_s21 + $0x1f0] sm:$0xff] %v958_v59 }
 0x184   : > { %v1038_v60 = vpop.f32.mrf.mxu2 }
 0x185   : > { %v1118_v61 = vpop.f32.mrf.mxu3  ;;  %1217 = vst [vmem:[%s1823_s21 + $0x2f0] sm:$0xff] %v1038_v60  ;;  %v880_v62 = vpop.f32.mrf.mxu0 }
 0x186   : > { %v960_v63 = vpop.f32.mrf.mxu1  ;;  %1249 = vst [vmem:[%s1823_s21 + $0x3f0] sm:$0xff] %v1118_v61 }
 0x187   : > { %1154 = vst [vmem:[%s1823_s21 + $0xf8] sm:$0xff] %v880_v62 }
 0x188   : > { %1186 = vst [vmem:[%s1823_s21 + $0x1f8] sm:$0xff] %v960_v63 }
 0x18c   : > { %v1040_v0 = vpop.f32.mrf.mxu2 }
 0x18d   : > { %v1120_v1 = vpop.f32.mrf.mxu3  ;;  %1218 = vst [vmem:[%s1823_s21 + $0x2f8] sm:$0xff] %v1040_v0 }
 0x18e   : > { %1250 = vst [vmem:[%s1823_s21 + $0x3f8] sm:$0xff] %v1120_v1 }
 0x18f PF: > { %s12_s9 = sadd.s32 1, %s1719_s9  }
 0x190   : > { %p9_p4 = scmp.ge.s32.totalorder %s12_s9, 10  }
 0x192   :  { %11 = sbr.rel (!%p9_p4) target bundleno = 1 (0x1), region = 58 }

</bundles_post_ra>
